<compile_context>
chip_gen: v6e
topology: v6e:2x2x1
jax: 0.10.0
libtpu: 0.0.40
codegen_flags: <defaults>
</compile_context>

<pallas_src>
import jax
import jax.numpy as jnp
from jax.experimental import pallas as pl
from jax.experimental.pallas import tpu as pltpu

LANE = 128
SUBLANE = 8

_NUM_TC_CACHE = None


def _tensorcores_per_chip():
    """Best-effort TensorCores-per-chip detection (2 on v7x, else 1).

    Falls back to 1, which is always correct and optimal on 1-TC chips.
    """
    global _NUM_TC_CACHE
    if _NUM_TC_CACHE is not None:
        return _NUM_TC_CACHE
    n = 1
    try:
        info = pltpu.get_tpu_info()
        for attr in ("num_cores", "core_count", "num_tensorcores",
                     "tensorcore_count", "cores_per_chip"):
            v = getattr(info, attr, None)
            if isinstance(v, int) and 1 <= v <= 8:
                n = v
                break
    except Exception:
        pass
    if n == 1:
        try:
            kind = str(jax.devices()[0].device_kind).lower()
            if "v7" in kind:
                n = 2
        except Exception:
            pass
    _NUM_TC_CACHE = n
    return n


def _mae_xla(x, y):
    """Single fused XLA pass: used for tiny inputs and ragged element counts."""
    return jnp.mean(
        jnp.abs(y.astype(jnp.float32) - x.astype(jnp.float32))
    ).astype(jnp.float32)


def _make_mae_kernel(tile_rows, blocks_per_split, rows, total_blocks, needs_mask):
    """Build the kernel with static tiling parameters closed over."""

    def kernel(x_ref, y_ref, o_ref):
        s = pl.program_id(0)   # split axis (one slice per TensorCore on v7x)
        i = pl.program_id(1)   # reduction axis (sequential per split)

        @pl.when(i == 0)
        def _():
            o_ref[...] = jnp.zeros_like(o_ref)

        diff = jnp.abs(
            y_ref[...].astype(jnp.float32) - x_ref[...].astype(jnp.float32)
        )

        if not needs_mask:
            # Common aligned path: pure VPU adds, co-issued with streaming DMAs.
            o_ref[...] += jnp.sum(diff.reshape(-1, SUBLANE, LANE), axis=0)
        else:
            global_block = s * blocks_per_split + i
            # Only the last real block (possibly partial) and clamped duplicate
            # blocks pay the mask; interior blocks accumulate unmasked.
            is_edge = global_block >= (total_blocks - 1)

            @pl.when(jnp.logical_not(is_edge))
            def _():
                o_ref[...] += jnp.sum(diff.reshape(-1, SUBLANE, LANE), axis=0)

            @pl.when(is_edge)
            def _():
                row_ids = global_block * tile_rows + jax.lax.broadcasted_iota(
                    jnp.int32, diff.shape, 0
                )
                # Select (not multiply-by-mask): padded/garbage rows and
                # clamped duplicate blocks contribute exactly 0 and cannot
                # propagate NaN/Inf.
                masked = jnp.where(row_ids < rows, diff, 0.0)
                o_ref[...] += jnp.sum(masked.reshape(-1, SUBLANE, LANE), axis=0)

    return kernel


def mae_loss(x, y, *, tile_block_bytes=2 * 1024 * 1024, num_splits=None,
             small_bytes=512 * 1024):
    """mean(|y - x|) over all elements, matching torch.mean(torch.abs(Y - X))."""
    assert x.shape == y.shape, "X and Y must have the same shape"
    n_elems = int(x.size)

    isz_x = x.dtype.itemsize
    isz_y = y.dtype.itemsize
    max_isz = max(isz_x, isz_y)
    min_isz = min(isz_x, isz_y)

    # Fast path: tiny inputs (pallas_call fixed cost dominates), unsupported
    # wide dtypes, and empty inputs (mean of empty -> nan, matching torch).
    if max_isz > 4 or n_elems * max_isz < small_bytes:
        return _mae_xla(x, y)

    rows, rem = divmod(n_elems, LANE)
    if rem != 0:
        # Non-128-divisible element counts: one fused XLA pass (2N bytes) is
        # strictly cheaper than a prefix-slice copy (+~4N bytes) + kernel pass.
        return _mae_xla(x, y)

    # Contiguous reshape to a lane-dense 2-D view: metadata-only bitcast.
    x2 = x.reshape(rows, LANE)
    y2 = y.reshape(rows, LANE)

    # Dtype-aware tile sizing: block row count is a multiple of the packed
    # sublane group (8 rows f32, 16 bf16, 32 int8/fp8), sized so each input
    # block is ~tile_block_bytes of DMA per step regardless of dtype.
    row_mult = SUBLANE * max(1, 4 // min_isz)
    tile_rows = tile_block_bytes // (LANE * max_isz)
    tile_rows = max(row_mult, (tile_rows // row_mult) * row_mult)
    tile_rows = min(tile_rows, pl.cdiv(rows, row_mult) * row_mult)

    total_blocks = pl.cdiv(rows, tile_rows)

    if num_splits is None:
        num_splits = _tensorcores_per_chip()   # 1 on v5e/v6e, 2 on v7x
    n_split = max(1, min(int(num_splits), total_blocks))
    bps = pl.cdiv(total_blocks, n_split)       # reduction blocks per split
    needs_clamp = (n_split * bps != total_blocks)
    needs_mask = (rows % tile_rows != 0) or needs_clamp

    if needs_clamp:
        # Clamp so the last split never indexes a fully out-of-bounds block;
        # clamped (duplicate) blocks are zeroed by the in-kernel mask.
        def in_map(s, i):
            return (jnp.minimum(s * bps + i, total_blocks - 1), 0)
    else:
        def in_map(s, i):
            return (s * bps + i, 0)

    kernel = _make_mae_kernel(tile_rows, bps, rows, total_blocks, needs_mask)

    partials = pl.pallas_call(
        kernel,
        out_shape=jax.ShapeDtypeStruct((n_split * SUBLANE, LANE), jnp.float32),
        grid_spec=pltpu.PrefetchScalarGridSpec(
            num_scalar_prefetch=0,
            grid=(n_split, bps),
            in_specs=[
                pl.BlockSpec((tile_rows, LANE), in_map),
                pl.BlockSpec((tile_rows, LANE), in_map),
            ],
            out_specs=pl.BlockSpec((SUBLANE, LANE), lambda s, i: (s, 0)),
        ),
        compiler_params=pltpu.CompilerParams(
            # Leading split axis parallel (cross-core on multi-TC chips),
            # reduction axis sequential so the resident output block
            # accumulates correctly.
            dimension_semantics=("parallel", "arbitrary"),
            # Explicit 32 MiB scoped VMEM: covers the 2 MiB/input double-
            # buffered blocks + in-kernel f32 temporaries on every generation
            # (v5e's default scoped limit is only 16 MiB; v7x's physical
            # ceiling is 64 MiB, so 32 MiB is safe there too).
            vmem_limit_bytes=32 * 1024 * 1024,
        ),
        cost_estimate=pl.CostEstimate(
            flops=2 * n_elems,
            transcendentals=0,
            bytes_accessed=n_elems * (isz_x + isz_y),
        ),
    )(x2, y2)

    # Single cross-lane reduce on the tiny partial-sum slab, then normalize.
    total = jnp.sum(partials, dtype=jnp.float32)
    return (total / jnp.float32(n_elems)).astype(jnp.float32)


if __name__ == "__main__":
    keys = jax.random.split(jax.random.PRNGKey(0), 10)

    def ref_mae(a, b):
        return jnp.mean(jnp.abs(b.astype(jnp.float32) - a.astype(jnp.float32)))

    # 1) Primary module-sized case (2,4,16,16): takes the fused-XLA fast path.
    x = jax.random.normal(keys[0], (2, 4, 16, 16), dtype=jnp.float32)
    y = jax.random.normal(keys[1], (2, 4, 16, 16), dtype=jnp.float32)
    out = jax.block_until_ready(mae_loss(x, y))
    assert jnp.allclose(out, ref_mae(x, y), rtol=1e-5, atol=1e-6), (out, ref_mae(x, y))

    # 2) Larger aligned f32 input: default ~2 MiB blocks, multi-step reduction
    #    through the Pallas kernel (rows=8192 -> two 4096-row blocks).
    xa = jax.random.normal(keys[2], (16, 16, 64, 64), dtype=jnp.float32)
    ya = jax.random.normal(keys[3], (16, 16, 64, 64), dtype=jnp.float32)
    la = jax.block_until_ready(mae_loss(xa, ya))
    assert jnp.allclose(la, ref_mae(xa, ya), rtol=1e-4, atol=1e-6), (la, ref_mae(xa, ya))

    # 3) bf16 inputs: dtype-aware tiling (16-row multiples, f32 accumulation).
    xb = jax.random.normal(keys[4], (8, 16, 64, 64), dtype=jnp.float32).astype(jnp.bfloat16)
    yb = jax.random.normal(keys[5], (8, 16, 64, 64), dtype=jnp.float32).astype(jnp.bfloat16)
    lb = jax.block_until_ready(mae_loss(xb, yb))
    assert jnp.allclose(lb, ref_mae(xb, yb), rtol=1e-4, atol=1e-6), (lb, ref_mae(xb, yb))

    # 4) Ragged row count + explicit 2-way split + tiny tiles: exercises the
    #    masked edge block and the clamped duplicate block paths.
    xc = jax.random.normal(keys[6], (70, 128), dtype=jnp.float32)
    yc = jax.random.normal(keys[7], (70, 128), dtype=jnp.float32)
    lc = jax.block_until_ready(
        mae_loss(xc, yc, tile_block_bytes=4096, num_splits=2, small_bytes=0))
    assert jnp.allclose(lc, ref_mae(xc, yc), rtol=1e-5, atol=1e-6), (lc, ref_mae(xc, yc))

    # 5) Element count not divisible by 128: single fused-XLA-pass fallback
    #    (no hidden prefix-slice copies).
    xd = jax.random.normal(keys[8], (3, 5, 17, 11), dtype=jnp.float32)
    yd = jax.random.normal(keys[9], (3, 5, 17, 11), dtype=jnp.float32)
    ld = jax.block_until_ready(mae_loss(xd, yd))
    assert jnp.allclose(ld, ref_mae(xd, yd), rtol=1e-5, atol=1e-6), (ld, ref_mae(xd, yd))

    print("KERNEL_OK")
</pallas_src>

<mosaic_0001>
module attributes {stable_mosaic.version = 11 : i64} {
  func.func @kernel(%arg0: i32, %arg1: i32, %arg2: memref<4096x128xf32, #tpu.memory_space<vmem>>, %arg3: memref<4096x128xf32, #tpu.memory_space<vmem>>, %arg4: memref<8x128xf32, #tpu.memory_space<vmem>>) attributes {dimension_semantics = [#tpu.dimension_semantics<parallel>, #tpu.dimension_semantics<arbitrary>], iteration_bounds = array<i64: 1, 2>, scalar_prefetch = 0 : i64, scratch_operands = 0 : i64, tpu.core_type = #tpu.core_type<tc>, window_params = [{transform_indices = @transform_0, window_bounds = array<i64: 4096, 128>}, {transform_indices = @transform_1, window_bounds = array<i64: 4096, 128>}, {transform_indices = @transform_2, window_bounds = array<i64: 8, 128>}]} {
    %c0_i32 = arith.constant 0 : i32
    %0 = arith.cmpi eq, %arg1, %c0_i32 : i32
    %1 = arith.extui %0 : i1 to i32
    %c0_i32_0 = arith.constant 0 : i32
    %2 = arith.cmpi ne, %1, %c0_i32_0 : i32
    scf.if %2 {
      %cst_8 = arith.constant 0.000000e+00 : f32
      %12 = vector.broadcast %cst_8 : f32 to vector<8x128xf32>
      %c0_9 = arith.constant 0 : index
      %c0_10 = arith.constant 0 : index
      %13 = vector.load %arg4[%c0_9, %c0_10] : memref<8x128xf32, #tpu.memory_space<vmem>>, vector<8x128xf32>
      tpu.vector_store %arg4[%c0_9, %c0_10], %12 {strides = array<i32>} : memref<8x128xf32, #tpu.memory_space<vmem>>, vector<8x128xf32>,
    } else {
    }
    %c0 = arith.constant 0 : index
    %c0_1 = arith.constant 0 : index
    %3 = vector.load %arg3[%c0, %c0_1] : memref<4096x128xf32, #tpu.memory_space<vmem>>, vector<4096x128xf32>
    %c0_2 = arith.constant 0 : index
    %c0_3 = arith.constant 0 : index
    %4 = vector.load %arg2[%c0_2, %c0_3] : memref<4096x128xf32, #tpu.memory_space<vmem>>, vector<4096x128xf32>
    %5 = arith.subf %3, %4 : vector<4096x128xf32>
    %6 = math.absf %5 : vector<4096x128xf32>
    %c0_4 = arith.constant 0 : index
    %c0_5 = arith.constant 0 : index
    %7 = vector.load %arg4[%c0_4, %c0_5] : memref<8x128xf32, #tpu.memory_space<vmem>>, vector<8x128xf32>
    %8 = vector.shape_cast %6 : vector<4096x128xf32> to vector<512x8x128xf32>
    %cst = arith.constant dense<0.000000e+00> : vector<8x128xf32>
    %9 = vector.multi_reduction <add>, %8, %cst [0] : vector<512x8x128xf32> to vector<8x128xf32>
    %10 = arith.addf %7, %9 : vector<8x128xf32>
    %c0_6 = arith.constant 0 : index
    %c0_7 = arith.constant 0 : index
    %11 = vector.load %arg4[%c0_6, %c0_7] : memref<8x128xf32, #tpu.memory_space<vmem>>, vector<8x128xf32>
    tpu.vector_store %arg4[%c0_6, %c0_7], %10 {strides = array<i32>} : memref<8x128xf32, #tpu.memory_space<vmem>>, vector<8x128xf32>,
    return
  }
  func.func @transform_0(%arg0: i32, %arg1: i32) -> (i32, i32) {
    %c2_i32 = arith.constant 2 : i32
    %0 = arith.muli %arg0, %c2_i32 : i32
    %1 = arith.addi %0, %arg1 : i32
    %c0_i32 = arith.constant 0 : i32
    %c0_i32_0 = arith.constant 0 : i32
    return %1, %c0_i32 : i32, i32
  }
  func.func @transform_1(%arg0: i32, %arg1: i32) -> (i32, i32) {
    %c2_i32 = arith.constant 2 : i32
    %0 = arith.muli %arg0, %c2_i32 : i32
    %1 = arith.addi %0, %arg1 : i32
    %c0_i32 = arith.constant 0 : i32
    %c0_i32_0 = arith.constant 0 : i32
    return %1, %c0_i32 : i32, i32
  }
  func.func @transform_2(%arg0: i32, %arg1: i32) -> (i32, i32) {
    %c0_i32 = arith.constant 0 : i32
    %c0_i32_0 = arith.constant 0 : i32
    return %arg0, %c0_i32 : i32, i32
  }
}

</mosaic_0001>

<bundles_post_ra>
// kernel: tpu_custom_call.1
= control target key start
LH: loop header
LB: loop body
LE: loop exit
PB: predicated region body
PF: predicated region fallthrough
CT: control target
= control target key end

     0   :  { %7 = vsyncpa [#allocation3], 0  ;;  %s4308_s0 = inlined_call_operand.hbm [shape: f32[8192,128], index: 0, kind: input, shape index: {}]   ;;  %s4309_s1 = inlined_call_operand.hbm [shape: f32[8192,128], index: 1, kind: input, shape index: {}]   ;;  %s4310_s2 = inlined_call_operand.hbm [shape: f32[8,128], index: 2, kind: output, shape index: {}]  }
   0x1   :  { %9 = vsyncpa [#allocation3 + $0x1], 0 }
   0x2   :  { %10 = vsyncpa [#allocation6], 0 }
   0x3   :  { %12 = vsyncpa [#allocation6 + $0x1], 0 }
   0x4   :  { %13 = vsyncpa [#allocation4], 0  ;;  %s3139_s9 = smov 0   ;;  %s3141_s10 = smov 0  }
   0x5   :  { %s3143_s11 = smov 0   ;;  %s3145_s12 = smov 0  }
   0x6   :  { %s3147_s13 = smov 0   ;;  %s3149_s14 = smov 0  }
   0x7 LB: > { %s2889_s15 = sadd.s32 4294967295, %s3116_s14   ;;  %s28_s16 = sadd.s32 1, %s3112_s13  ;;  %s3116_s14 = sphi %s3149_s14, %s19_s14   ;;  %s3112_s13 = sphi %s3147_s13, %s4320_s13   ;;  %s3108_s12 = sphi %s3145_s12, %s4319_s12   ;;  %s3104_s11 = sphi %s3143_s11, %s4318_s11   ;;  %s3100_s10 = sphi %s3141_s10, %s4317_s10   ;;  %s3096_s9 = sphi %s3139_s9, %s4316_s9  }
   0x8   : > { %p29_p0 = scmp.ge.s32.totalorder %s28_s16, 2  ;;  %s42_s17 = sadd.s32 1, %s3104_s11 }
   0x9   : > { %p49_p1 = scmp.ne.s32.totalorder %s3104_s11, %s3100_s10  ;;  %p50_p2 = scmp.eq.s32.totalorder %s3116_s14, 0 }
   0xa   : > { %s4322_s16 = smov (%p29_p0, %s28_s16), 0  ;;  %p55_p4 = scmp.ne.s32.totalorder %s3100_s10, %s3096_s9 }
   0xb   : > { %p3175_p3 = por %p50_p2, %p49_p1  ;;  %s39_s19 = ssub.s32 %s3112_s13, %s4322_s16 }
   0xc   : > { %p56_p5 = scmp.eq.s32.totalorder %s2889_s15, 0  ;;  %p40_p6 = scmp.eq.s32.totalorder %s39_s19, 0 }
   0xd   : > { %p2923_p8 = scmp.lt.s32.totalorder %s3116_s14, 2  ;;  %s3193_s22 = sand.u32 1, %s3104_s11  }
   0xe   : > { %p3184_p7 = por %p56_p5, %p55_p4  ;;  %s2906_s23 = sshll.u32 %s3112_s13, 16 }
   0xf   : > { %s3190_s21 = scalar_select %p40_p6, %s3104_s11, %s42_s17  }
  0x10   : > { %s2892_s24 = sshll.u32 %s3193_s22, 12  ;;  %s147_s27 = scalar_lea.hbm %s4308_s0, %s2906_s23 }
  0x11   : > { %s139_s28 = scalar_lea.vmem [#allocation2], %s2892_s24  ;;  %p3204_p9 = pnand %p2923_p8, %p3175_p3 }
  0x12   : > { %s148_s29 = sshll.u32 %s139_s28, 4  ;;  %s136_s3 = scalar_lea.sflag [#allocation3], %s3193_s22  ;;  %s149_s29 = int_to_ptr.vmem [resolvable:$true] %s148_s29 }
  0x13   : > { %p2980_p10 = pneg %p3204_p9  ;;  %s2991_s4 = scalar_lea.vmem %s149_s29, 65536 }
  0x14   : > { %p2992_p11 = scmp.ne.s32.totalorder %s149_s29, %s2991_s4  ;;  %s3118_s5 = smov [#allocation2]  }
  0x15   : > { %s2996_s6 = sshll.u32 %s3118_s5, 4  ;;  %s2997_s6 = int_to_ptr.vmem [resolvable:$false] %s2996_s6 }
  0x16   : > { %p2994_p12 = pnand %p2992_p11, %p2980_p10  ;;  %s2998_s7 = scalar_lea.vmem %s2997_s6, 131072 }
  0x17   : > { %p2999_p0 = scmp.lt.s32.totalorder %s149_s29, %s2997_s6  ;;  %p3000_p1 = scmp.lt.s32.totalorder %s2998_s7, %s2991_s4 }
  0x18   : > { %p2995_p13 = pneg %p2994_p12 }
  0x19   : > { %p3001_p2 = por %p3000_p1, %p2999_p0 }
  0x1b   : > { %p3002_p3 = pnand %p3001_p2, %p2995_p13 }
  0x1d   : > { %3005 = shalt.err (!%p3002_p3)
}
  0x1e   : > { %s3119_s8 = smov 128   ;;  %s3120_s9 = smov 8  }
  0x1f   : > { %2919 = dma.hbm_to_vmem [thread:$0]  (!%p3204_p9), %s147_s27, 65536, %s149_s29, %s136_s3, %s3119_s8, %s3119_s8, %s3120_s9  }
  0x20   : > { %p2898_p4 = scmp.ge.s32.totalorder %s3116_s14, 1  ;;  %p179_p5 = scmp.lt.s32.totalorder %s3116_s14, 3 }
  0x21   : > { %s170_s25 = scalar_lea.hbm %s4309_s1, %s2906_s23  ;;  %s162_s26 = scalar_lea.vmem [#allocation5], %s2892_s24 }
  0x22   : > { %p3218_p6 = pnand %p2898_p4, %p179_p5  ;;  %s171_s28 = sshll.u32 %s162_s26, 4  ;;  %s172_s28 = int_to_ptr.vmem [resolvable:$true] %s171_s28 }
  0x23   : > { %s159_s4 = scalar_lea.sflag [#allocation6], %s3193_s22  ;;  %s3019_s5 = scalar_lea.vmem %s172_s28, 65536 }
  0x24   : > { %p3020_p8 = scmp.ne.s32.totalorder %s172_s28, %s3019_s5  ;;  %s3121_s27 = smov [#allocation5]  }
  0x25   : > { %s3024_s29 = sshll.u32 %s3121_s27, 4  ;;  %s3025_s29 = int_to_ptr.vmem [resolvable:$false] %s3024_s29 }
  0x26   : > { %p3022_p11 = pnand %p3020_p8, %p2980_p10  ;;  %s3026_s3 = scalar_lea.vmem %s3025_s29, 131072 }
  0x27   : > { %p3027_p13 = scmp.lt.s32.totalorder %s172_s28, %s3025_s29  ;;  %p3028_p0 = scmp.lt.s32.totalorder %s3026_s3, %s3019_s5 }
  0x28   : > { %p3023_p12 = pneg %p3022_p11 }
  0x29   : > { %p3029_p1 = por %p3028_p0, %p3027_p13 }
  0x2b   : > { %p3030_p2 = pnand %p3029_p1, %p3023_p12 }
  0x2d   : > { %3033 = shalt.err (!%p3030_p2)
}
  0x2e   : > { %2922 = dma.hbm_to_vmem [thread:$0]  (!%p3204_p9), %s170_s25, 65536, %s172_s28, %s159_s4, %s3119_s8, %s3119_s8, %s3120_s9  }
  0x2f   : > { %183 = sbr.rel (%p3218_p6) target bundleno = 1099 (0x44b), region = 28  ;;  %s185_s22 = sand.u32 (!%p3218_p6), 1, %s3100_s10  }
  0x30   : > { %s2899_s23 = sshll.u32 (!%p3218_p6), %s185_s22, 12  ;;  %s186_s24 = scalar_lea.sflag (!%p3218_p6), [#allocation3], %s185_s22 }
  0x31   : > { %s3236_s6 = scalar_lea.vmem (!%p3218_p6), [#allocation2], %s2899_s23 }
  0x34   : > { %3083 = dma.done.wait (%p3184_p7), %s186_s24, 65536  }
  0x35   : > { %3085 = vsyncadd (%p3184_p7), %s186_s24, 4294901760  ;;  %s195_s7 = scalar_lea.sflag [#allocation6], %s185_s22  ;;  %s3242_s18 = scalar_lea.vmem [#allocation5], %s2899_s23 }
  0x36   : > { %3087 = dma.done.wait (%p3184_p7), %s195_s7, 65536  }
  0x37   : > { %3089 = vsyncadd (%p3184_p7), %s195_s7, 4294901760  ;;  %p2901_p9 = scmp.ne.s32.totalorder %s3108_s12, 0 }
  0x39   : > { %228 = sbr.rel (%p2901_p9) target bundleno = 64 (0x40), region = 40 }
  0x3e   : > { %v3122_v0 = vmov 0.0  }
  0x3f   : > { %229 = vst [vmem:[#allocation7] sm:$0xff] %v3122_v0 }
  0x40 PF: > { %v230_v1 = vld [vmem:[%s3242_s18] sm:$0xff]  ;;  %v231_v2 = vld [vmem:[%s3242_s18 + $0x8] sm:$0xff]  ;;  %v232_v7 = vld [vmem:[%s3242_s18 + $0x10] sm:$0xff]  ;;  %s3123_s12 = smov [#allocation7]   ;;  %p4275_p7 = scmp.eq.s32.totalorder %s2889_s15, 1 }
  0x41   : > { %v742_v3 = vld [vmem:[%s3236_s6] sm:$0xff]  ;;  %v743_v4 = vld [vmem:[%s3236_s6 + $0x8] sm:$0xff]  ;;  %v744_v8 = vld [vmem:[%s3236_s6 + $0x10] sm:$0xff]  ;;  %s2801_s20 = sshll.u32 %s3123_s12, 4  ;;  %s2802_s20 = int_to_ptr.vmem [resolvable:$true] %s2801_s20 }
  0x42   : > { %v1254_v5 = vsub.f32 %v230_v1, %v742_v3  ;;  %v1255_v6 = vsub.f32 %v231_v2, %v743_v4  ;;  %v1256_v9 = vsub.f32 %v232_v7, %v744_v8  ;;  %v233_v12 = vld [vmem:[%s3242_s18 + $0x18] sm:$0xff]  ;;  %v234_v17 = vld [vmem:[%s3242_s18 + $0x20] sm:$0xff]  ;;  %v235_v22 = vld [vmem:[%s3242_s18 + $0x28] sm:$0xff]  ;;  %s3034_s8 = scalar_lea.vmem %s2802_s20, 128  ;;  %p3041_p5 = scmp.lt.s32.totalorder %s2802_s20, %s2802_s20 }
  0x43   : > { %v745_v13 = vld [vmem:[%s3236_s6 + $0x18] sm:$0xff]  ;;  %v746_v18 = vld [vmem:[%s3236_s6 + $0x20] sm:$0xff]  ;;  %v747_v23 = vld [vmem:[%s3236_s6 + $0x28] sm:$0xff]  ;;  %p3035_p10 = scmp.ne.s32.totalorder %s2802_s20, %s3034_s8  ;;  %p3042_p6 = scmp.lt.s32.totalorder %s3034_s8, %s3034_s8 }
  0x44   : > { %v1766_v10 = vand.u32 2147483647, %v1254_v5  ;;  %v1767_v11 = vand.u32 2147483647, %v1255_v6  ;;  %v1257_v14 = vsub.f32 %v233_v12, %v745_v13  ;;  %v1768_v15 = vand.u32 2147483647, %v1256_v9 }
  0x45   : > { %v1258_v19 = vsub.f32 %v234_v17, %v746_v18  ;;  %v1259_v24 = vsub.f32 %v235_v22, %v747_v23  ;;  %v236_v27 = vld [vmem:[%s3242_s18 + $0x30] sm:$0xff]  ;;  %v237_v32 = vld [vmem:[%s3242_s18 + $0x38] sm:$0xff]  ;;  %v238_v37 = vld [vmem:[%s3242_s18 + $0x40] sm:$0xff]  ;;  %p3036_p3 = pnand %p3035_p10, %p4275_p7  ;;  %p3043_p8 = por %p3042_p6, %p3041_p5 }
  0x46   : > { %v2279_v16 = vadd.f32 %v1767_v11, %v1766_v10  ;;  %v1769_v20 = vand.u32 2147483647, %v1257_v14  ;;  %v748_v28 = vld [vmem:[%s3236_s6 + $0x30] sm:$0xff]  ;;  %v749_v33 = vld [vmem:[%s3236_s6 + $0x38] sm:$0xff]  ;;  %v750_v38 = vld [vmem:[%s3236_s6 + $0x40] sm:$0xff] }
  0x47   : > { %v1770_v25 = vand.u32 2147483647, %v1258_v19  ;;  %v1260_v29 = vsub.f32 %v236_v27, %v748_v28  ;;  %v1771_v30 = vand.u32 2147483647, %v1259_v24  ;;  %v1261_v34 = vsub.f32 %v237_v32, %v749_v33  ;;  %v239_v42 = vld [vmem:[%s3242_s18 + $0x48] sm:$0xff]  ;;  %v240_v44 = vld [vmem:[%s3242_s18 + $0x50] sm:$0xff]  ;;  %p3037_p4 = pneg %p3036_p3 }
  0x48   : > { %v2280_v21 = vadd.f32 %v2279_v16, %v1768_v15  ;;  %v1262_v39 = vsub.f32 %v238_v37, %v750_v38  ;;  %v751_v43 = vld [vmem:[%s3236_s6 + $0x48] sm:$0xff]  ;;  %v752_v45 = vld [vmem:[%s3236_s6 + $0x50] sm:$0xff]  ;;  %v241_v49 = vld [vmem:[%s3242_s18 + $0x58] sm:$0xff] }
  0x49   : > { %v1772_v35 = vand.u32 2147483647, %v1260_v29  ;;  %v1773_v40 = vand.u32 2147483647, %v1261_v34  ;;  %v1263_v46 = vsub.f32 %v239_v42, %v751_v43  ;;  %v753_v50 = vld [vmem:[%s3236_s6 + $0x58] sm:$0xff]  ;;  %v1264_v51 = vsub.f32 %v240_v44, %v752_v45  ;;  %v242_v52 = vld [vmem:[%s3242_s18 + $0x60] sm:$0xff]  ;;  %p3044_p11 = pnand %p3043_p8, %p3037_p4 }
  0x4a   : > { %v2281_v26 = vadd.f32 %v2280_v21, %v1769_v20  ;;  %v1774_v47 = vand.u32 2147483647, %v1262_v39  ;;  %v754_v53 = vld [vmem:[%s3236_s6 + $0x60] sm:$0xff]  ;;  %v1265_v54 = vsub.f32 %v241_v49, %v753_v50  ;;  %v243_v57 = vld [vmem:[%s3242_s18 + $0x68] sm:$0xff]  ;;  %v244_v61 = vld [vmem:[%s3242_s18 + $0x70] sm:$0xff] }
  0x4b   : > { %v1775_v55 = vand.u32 2147483647, %v1263_v46  ;;  %v755_v58 = vld [vmem:[%s3236_s6 + $0x68] sm:$0xff]  ;;  %v1266_v59 = vsub.f32 %v242_v52, %v754_v53  ;;  %v1776_v60 = vand.u32 2147483647, %v1264_v51  ;;  %v756_v62 = vld [vmem:[%s3236_s6 + $0x70] sm:$0xff] }
  0x4c   : > { %v2282_v31 = vadd.f32 %v2281_v26, %v1770_v25  ;;  %v1267_v63 = vsub.f32 %v243_v57, %v755_v58  ;;  %v1777_v0 = vand.u32 2147483647, %v1265_v54  ;;  %v245_v2 = vld [vmem:[%s3242_s18 + $0x78] sm:$0xff]  ;;  %v1268_v4 = vsub.f32 %v244_v61, %v756_v62  ;;  %v246_v7 = vld [vmem:[%s3242_s18 + $0x80] sm:$0xff]  ;;  %v247_v12 = vld [vmem:[%s3242_s18 + $0x88] sm:$0xff] }
  0x4d   : > { %v757_v3 = vld [vmem:[%s3236_s6 + $0x78] sm:$0xff]  ;;  %v1778_v5 = vand.u32 2147483647, %v1266_v59  ;;  %v758_v8 = vld [vmem:[%s3236_s6 + $0x80] sm:$0xff]  ;;  %v759_v13 = vld [vmem:[%s3236_s6 + $0x88] sm:$0xff] }
  0x4e   : > { %v2283_v36 = vadd.f32 %v2282_v31, %v1771_v30  ;;  %v1269_v9 = vsub.f32 %v245_v2, %v757_v3  ;;  %v1779_v10 = vand.u32 2147483647, %v1267_v63  ;;  %v1270_v14 = vsub.f32 %v246_v7, %v758_v8  ;;  %v248_v17 = vld [vmem:[%s3242_s18 + $0x90] sm:$0xff]  ;;  %v249_v22 = vld [vmem:[%s3242_s18 + $0x98] sm:$0xff]  ;;  %v250_v27 = vld [vmem:[%s3242_s18 + $0xa0] sm:$0xff] }
  0x4f   : > { %v1780_v15 = vand.u32 2147483647, %v1268_v4  ;;  %v760_v18 = vld [vmem:[%s3236_s6 + $0x90] sm:$0xff]  ;;  %v1271_v19 = vsub.f32 %v247_v12, %v759_v13  ;;  %v761_v23 = vld [vmem:[%s3236_s6 + $0x98] sm:$0xff]  ;;  %v762_v28 = vld [vmem:[%s3236_s6 + $0xa0] sm:$0xff] }
  0x50   : > { %v2284_v41 = vadd.f32 %v2283_v36, %v1772_v35  ;;  %v1781_v20 = vand.u32 2147483647, %v1269_v9  ;;  %v1272_v24 = vsub.f32 %v248_v17, %v760_v18  ;;  %v1782_v25 = vand.u32 2147483647, %v1270_v14  ;;  %v251_v32 = vld [vmem:[%s3242_s18 + $0xa8] sm:$0xff]  ;;  %v252_v37 = vld [vmem:[%s3242_s18 + $0xb0] sm:$0xff] }
  0x51   : > { %v1273_v29 = vsub.f32 %v249_v22, %v761_v23  ;;  %v1783_v30 = vand.u32 2147483647, %v1271_v19  ;;  %v763_v33 = vld [vmem:[%s3236_s6 + $0xa8] sm:$0xff]  ;;  %v1274_v34 = vsub.f32 %v250_v27, %v762_v28  ;;  %v764_v38 = vld [vmem:[%s3236_s6 + $0xb0] sm:$0xff]  ;;  %v253_v42 = vld [vmem:[%s3242_s18 + $0xb8] sm:$0xff] }
  0x52   : > { %v2285_v48 = vadd.f32 %v2284_v41, %v1773_v40  ;;  %v1784_v35 = vand.u32 2147483647, %v1272_v24  ;;  %v1275_v39 = vsub.f32 %v251_v32, %v763_v33  ;;  %v765_v43 = vld [vmem:[%s3236_s6 + $0xb8] sm:$0xff]  ;;  %v1276_v44 = vsub.f32 %v252_v37, %v764_v38  ;;  %v255_v52 = vld [vmem:[%s3242_s18 + $0xc8] sm:$0xff]  ;;  %v256_v57 = vld [vmem:[%s3242_s18 + $0xd0] sm:$0xff] }
  0x53   : > { %v1785_v40 = vand.u32 2147483647, %v1273_v29  ;;  %v1786_v45 = vand.u32 2147483647, %v1274_v34  ;;  %v1277_v49 = vsub.f32 %v253_v42, %v765_v43  ;;  %v767_v53 = vld [vmem:[%s3236_s6 + $0xc8] sm:$0xff]  ;;  %v768_v58 = vld [vmem:[%s3236_s6 + $0xd0] sm:$0xff] }
  0x54   : > { %v2286_v56 = vadd.f32 %v2285_v48, %v1774_v47  ;;  %v254_v47 = vld [vmem:[%s3242_s18 + $0xc0] sm:$0xff]  ;;  %v1787_v50 = vand.u32 2147483647, %v1275_v39  ;;  %v1279_v59 = vsub.f32 %v255_v52, %v767_v53  ;;  %v257_v62 = vld [vmem:[%s3242_s18 + $0xd8] sm:$0xff]  ;;  %v259_v8 = vld [vmem:[%s3242_s18 + $0xe8] sm:$0xff] }
  0x55   : > { %v766_v48 = vld [vmem:[%s3236_s6 + $0xc0] sm:$0xff]  ;;  %v769_v63 = vld [vmem:[%s3236_s6 + $0xd8] sm:$0xff]  ;;  %v771_v9 = vld [vmem:[%s3236_s6 + $0xe8] sm:$0xff] }
  0x56   : > { %v2287_v1 = vadd.f32 %v2286_v56, %v1775_v55  ;;  %v1278_v54 = vsub.f32 %v254_v47, %v766_v48  ;;  %v1788_v55 = vand.u32 2147483647, %v1276_v44  ;;  %v258_v3 = vld [vmem:[%s3242_s18 + $0xe0] sm:$0xff]  ;;  %v260_v13 = vld [vmem:[%s3242_s18 + $0xf0] sm:$0xff]  ;;  %v261_v18 = vld [vmem:[%s3242_s18 + $0xf8] sm:$0xff] }
  0x57   : > { %v770_v4 = vld [vmem:[%s3236_s6 + $0xe0] sm:$0xff]  ;;  %v772_v14 = vld [vmem:[%s3236_s6 + $0xf0] sm:$0xff]  ;;  %v773_v19 = vld [vmem:[%s3236_s6 + $0xf8] sm:$0xff] }
  0x58   : > { %v2288_v6 = vadd.f32 %v2287_v1, %v1776_v60  ;;  %v1789_v60 = vand.u32 2147483647, %v1277_v49  ;;  %v1790_v1 = vand.u32 2147483647, %v1278_v54  ;;  %v262_v23 = vld [vmem:[%s3242_s18 + $0x100] sm:$0xff]  ;;  %v263_v28 = vld [vmem:[%s3242_s18 + $0x108] sm:$0xff] }
  0x59   : > { %v774_v24 = vld [vmem:[%s3236_s6 + $0x100] sm:$0xff]  ;;  %v775_v29 = vld [vmem:[%s3236_s6 + $0x108] sm:$0xff]  ;;  %v264_v33 = vld [vmem:[%s3242_s18 + $0x110] sm:$0xff] }
  0x5a   : > { %v2289_v11 = vadd.f32 %v2288_v6, %v1777_v0  ;;  %v1280_v0 = vsub.f32 %v256_v57, %v768_v58  ;;  %v1791_v6 = vand.u32 2147483647, %v1279_v59  ;;  %v776_v34 = vld [vmem:[%s3236_s6 + $0x110] sm:$0xff]  ;;  %v265_v38 = vld [vmem:[%s3242_s18 + $0x118] sm:$0xff]  ;;  %v266_v43 = vld [vmem:[%s3242_s18 + $0x120] sm:$0xff] }
  0x5b   : > { %v777_v39 = vld [vmem:[%s3236_s6 + $0x118] sm:$0xff]  ;;  %v778_v44 = vld [vmem:[%s3236_s6 + $0x120] sm:$0xff]  ;;  %v267_v48 = vld [vmem:[%s3242_s18 + $0x128] sm:$0xff] }
  0x5c   : > { %v2290_v16 = vadd.f32 %v2289_v11, %v1778_v5  ;;  %v1281_v5 = vsub.f32 %v257_v62, %v769_v63  ;;  %v1792_v11 = vand.u32 2147483647, %v1280_v0  ;;  %v779_v49 = vld [vmem:[%s3236_s6 + $0x128] sm:$0xff]  ;;  %v268_v53 = vld [vmem:[%s3242_s18 + $0x130] sm:$0xff]  ;;  %v269_v58 = vld [vmem:[%s3242_s18 + $0x138] sm:$0xff] }
  0x5d   : > { %v780_v54 = vld [vmem:[%s3236_s6 + $0x130] sm:$0xff]  ;;  %v781_v59 = vld [vmem:[%s3236_s6 + $0x138] sm:$0xff]  ;;  %v270_v63 = vld [vmem:[%s3242_s18 + $0x140] sm:$0xff] }
  0x5e   : > { %v2291_v21 = vadd.f32 %v2290_v16, %v1779_v10  ;;  %v1282_v10 = vsub.f32 %v258_v3, %v770_v4  ;;  %v1793_v16 = vand.u32 2147483647, %v1281_v5  ;;  %v782_v0 = vld [vmem:[%s3236_s6 + $0x140] sm:$0xff]  ;;  %v271_v4 = vld [vmem:[%s3242_s18 + $0x148] sm:$0xff] }
  0x5f   : > { %v783_v5 = vld [vmem:[%s3236_s6 + $0x148] sm:$0xff] }
  0x60   : > { %v2292_v26 = vadd.f32 %v2291_v21, %v1780_v15  ;;  %v1283_v15 = vsub.f32 %v259_v8, %v771_v9  ;;  %v1794_v21 = vand.u32 2147483647, %v1282_v10  ;;  %v272_v9 = vld [vmem:[%s3242_s18 + $0x150] sm:$0xff] }
  0x61   : > { %v784_v10 = vld [vmem:[%s3236_s6 + $0x150] sm:$0xff] }
  0x62   : > { %v2293_v31 = vadd.f32 %v2292_v26, %v1781_v20  ;;  %v1284_v20 = vsub.f32 %v260_v13, %v772_v14  ;;  %v1795_v26 = vand.u32 2147483647, %v1283_v15  ;;  %v273_v14 = vld [vmem:[%s3242_s18 + $0x158] sm:$0xff] }
  0x63   : > { %v785_v15 = vld [vmem:[%s3236_s6 + $0x158] sm:$0xff] }
  0x64   : > { %v2294_v36 = vadd.f32 %v2293_v31, %v1782_v25  ;;  %v1285_v25 = vsub.f32 %v261_v18, %v773_v19  ;;  %v1796_v31 = vand.u32 2147483647, %v1284_v20  ;;  %v274_v19 = vld [vmem:[%s3242_s18 + $0x160] sm:$0xff] }
  0x65   : > { %v786_v20 = vld [vmem:[%s3236_s6 + $0x160] sm:$0xff] }
  0x66   : > { %v2295_v41 = vadd.f32 %v2294_v36, %v1783_v30  ;;  %v1286_v30 = vsub.f32 %v262_v23, %v774_v24  ;;  %v1797_v36 = vand.u32 2147483647, %v1285_v25  ;;  %v275_v24 = vld [vmem:[%s3242_s18 + $0x168] sm:$0xff] }
  0x67   : > { %v787_v25 = vld [vmem:[%s3236_s6 + $0x168] sm:$0xff] }
  0x68   : > { %v2296_v46 = vadd.f32 %v2295_v41, %v1784_v35  ;;  %v1287_v35 = vsub.f32 %v263_v28, %v775_v29  ;;  %v1798_v41 = vand.u32 2147483647, %v1286_v30  ;;  %v276_v29 = vld [vmem:[%s3242_s18 + $0x170] sm:$0xff] }
  0x69   : > { %v788_v30 = vld [vmem:[%s3236_s6 + $0x170] sm:$0xff] }
  0x6a   : > { %v2297_v51 = vadd.f32 %v2296_v46, %v1785_v40  ;;  %v1288_v40 = vsub.f32 %v264_v33, %v776_v34  ;;  %v1799_v46 = vand.u32 2147483647, %v1287_v35  ;;  %v277_v34 = vld [vmem:[%s3242_s18 + $0x178] sm:$0xff] }
  0x6b   : > { %v789_v35 = vld [vmem:[%s3236_s6 + $0x178] sm:$0xff] }
  0x6c   : > { %v2298_v56 = vadd.f32 %v2297_v51, %v1786_v45  ;;  %v1289_v45 = vsub.f32 %v265_v38, %v777_v39  ;;  %v1800_v51 = vand.u32 2147483647, %v1288_v40  ;;  %v278_v39 = vld [vmem:[%s3242_s18 + $0x180] sm:$0xff] }
  0x6d   : > { %v790_v40 = vld [vmem:[%s3236_s6 + $0x180] sm:$0xff] }
  0x6e   : > { %v2299_v61 = vadd.f32 %v2298_v56, %v1787_v50  ;;  %v1290_v50 = vsub.f32 %v266_v43, %v778_v44  ;;  %v1801_v56 = vand.u32 2147483647, %v1289_v45  ;;  %v279_v44 = vld [vmem:[%s3242_s18 + $0x188] sm:$0xff] }
  0x6f   : > { %v791_v45 = vld [vmem:[%s3236_s6 + $0x188] sm:$0xff] }
  0x70   : > { %v2300_v2 = vadd.f32 %v2299_v61, %v1788_v55  ;;  %v1291_v55 = vsub.f32 %v267_v48, %v779_v49  ;;  %v1802_v61 = vand.u32 2147483647, %v1290_v50  ;;  %v280_v49 = vld [vmem:[%s3242_s18 + $0x190] sm:$0xff] }
  0x71   : > { %v792_v50 = vld [vmem:[%s3236_s6 + $0x190] sm:$0xff] }
  0x72   : > { %v2301_v7 = vadd.f32 %v2300_v2, %v1789_v60  ;;  %v1292_v60 = vsub.f32 %v268_v53, %v780_v54  ;;  %v1803_v2 = vand.u32 2147483647, %v1291_v55  ;;  %v281_v54 = vld [vmem:[%s3242_s18 + $0x198] sm:$0xff] }
  0x73   : > { %v793_v55 = vld [vmem:[%s3236_s6 + $0x198] sm:$0xff] }
  0x74   : > { %v2302_v12 = vadd.f32 %v2301_v7, %v1790_v1  ;;  %v1293_v1 = vsub.f32 %v269_v58, %v781_v59  ;;  %v1804_v7 = vand.u32 2147483647, %v1292_v60  ;;  %v282_v59 = vld [vmem:[%s3242_s18 + $0x1a0] sm:$0xff] }
  0x75   : > { %v794_v60 = vld [vmem:[%s3236_s6 + $0x1a0] sm:$0xff] }
  0x76   : > { %v2303_v17 = vadd.f32 %v2302_v12, %v1791_v6  ;;  %v1294_v6 = vsub.f32 %v270_v63, %v782_v0  ;;  %v1805_v12 = vand.u32 2147483647, %v1293_v1  ;;  %v283_v0 = vld [vmem:[%s3242_s18 + $0x1a8] sm:$0xff] }
  0x77   : > { %v795_v1 = vld [vmem:[%s3236_s6 + $0x1a8] sm:$0xff] }
  0x78   : > { %v2304_v22 = vadd.f32 %v2303_v17, %v1792_v11  ;;  %v1295_v11 = vsub.f32 %v271_v4, %v783_v5  ;;  %v1806_v17 = vand.u32 2147483647, %v1294_v6  ;;  %v284_v5 = vld [vmem:[%s3242_s18 + $0x1b0] sm:$0xff] }
  0x79   : > { %v796_v6 = vld [vmem:[%s3236_s6 + $0x1b0] sm:$0xff] }
  0x7a   : > { %v2305_v27 = vadd.f32 %v2304_v22, %v1793_v16  ;;  %v1296_v16 = vsub.f32 %v272_v9, %v784_v10  ;;  %v1807_v22 = vand.u32 2147483647, %v1295_v11  ;;  %v285_v10 = vld [vmem:[%s3242_s18 + $0x1b8] sm:$0xff] }
  0x7b   : > { %v797_v11 = vld [vmem:[%s3236_s6 + $0x1b8] sm:$0xff] }
  0x7c   : > { %v2306_v32 = vadd.f32 %v2305_v27, %v1794_v21  ;;  %v1297_v21 = vsub.f32 %v273_v14, %v785_v15  ;;  %v1808_v27 = vand.u32 2147483647, %v1296_v16  ;;  %v286_v15 = vld [vmem:[%s3242_s18 + $0x1c0] sm:$0xff] }
  0x7d   : > { %v798_v16 = vld [vmem:[%s3236_s6 + $0x1c0] sm:$0xff] }
  0x7e   : > { %v2307_v37 = vadd.f32 %v2306_v32, %v1795_v26  ;;  %v1298_v26 = vsub.f32 %v274_v19, %v786_v20  ;;  %v1809_v32 = vand.u32 2147483647, %v1297_v21  ;;  %v287_v20 = vld [vmem:[%s3242_s18 + $0x1c8] sm:$0xff] }
  0x7f   : > { %v799_v21 = vld [vmem:[%s3236_s6 + $0x1c8] sm:$0xff] }
  0x80   : > { %v2308_v42 = vadd.f32 %v2307_v37, %v1796_v31  ;;  %v1299_v31 = vsub.f32 %v275_v24, %v787_v25  ;;  %v1810_v37 = vand.u32 2147483647, %v1298_v26  ;;  %v288_v25 = vld [vmem:[%s3242_s18 + $0x1d0] sm:$0xff] }
  0x81   : > { %v800_v26 = vld [vmem:[%s3236_s6 + $0x1d0] sm:$0xff] }
  0x82   : > { %v2309_v47 = vadd.f32 %v2308_v42, %v1797_v36  ;;  %v1300_v36 = vsub.f32 %v276_v29, %v788_v30  ;;  %v1811_v42 = vand.u32 2147483647, %v1299_v31  ;;  %v289_v30 = vld [vmem:[%s3242_s18 + $0x1d8] sm:$0xff] }
  0x83   : > { %v801_v31 = vld [vmem:[%s3236_s6 + $0x1d8] sm:$0xff] }
  0x84   : > { %v2310_v52 = vadd.f32 %v2309_v47, %v1798_v41  ;;  %v1301_v41 = vsub.f32 %v277_v34, %v789_v35  ;;  %v1812_v47 = vand.u32 2147483647, %v1300_v36  ;;  %v290_v35 = vld [vmem:[%s3242_s18 + $0x1e0] sm:$0xff] }
  0x85   : > { %v802_v36 = vld [vmem:[%s3236_s6 + $0x1e0] sm:$0xff] }
  0x86   : > { %v2311_v57 = vadd.f32 %v2310_v52, %v1799_v46  ;;  %v1302_v46 = vsub.f32 %v278_v39, %v790_v40  ;;  %v1813_v52 = vand.u32 2147483647, %v1301_v41  ;;  %v291_v40 = vld [vmem:[%s3242_s18 + $0x1e8] sm:$0xff] }
  0x87   : > { %v803_v41 = vld [vmem:[%s3236_s6 + $0x1e8] sm:$0xff] }
  0x88   : > { %v2312_v62 = vadd.f32 %v2311_v57, %v1800_v51  ;;  %v1303_v51 = vsub.f32 %v279_v44, %v791_v45  ;;  %v1814_v57 = vand.u32 2147483647, %v1302_v46  ;;  %v292_v45 = vld [vmem:[%s3242_s18 + $0x1f0] sm:$0xff] }
  0x89   : > { %v804_v46 = vld [vmem:[%s3236_s6 + $0x1f0] sm:$0xff] }
  0x8a   : > { %v2313_v3 = vadd.f32 %v2312_v62, %v1801_v56  ;;  %v1304_v56 = vsub.f32 %v280_v49, %v792_v50  ;;  %v1815_v62 = vand.u32 2147483647, %v1303_v51  ;;  %v293_v50 = vld [vmem:[%s3242_s18 + $0x1f8] sm:$0xff] }
  0x8b   : > { %v805_v51 = vld [vmem:[%s3236_s6 + $0x1f8] sm:$0xff] }
  0x8c   : > { %v2314_v8 = vadd.f32 %v2313_v3, %v1802_v61  ;;  %v1305_v61 = vsub.f32 %v281_v54, %v793_v55  ;;  %v1816_v3 = vand.u32 2147483647, %v1304_v56  ;;  %v294_v55 = vld [vmem:[%s3242_s18 + $0x200] sm:$0xff] }
  0x8d   : > { %v806_v56 = vld [vmem:[%s3236_s6 + $0x200] sm:$0xff] }
  0x8e   : > { %v2315_v13 = vadd.f32 %v2314_v8, %v1803_v2  ;;  %v1306_v2 = vsub.f32 %v282_v59, %v794_v60  ;;  %v1817_v8 = vand.u32 2147483647, %v1305_v61  ;;  %v295_v60 = vld [vmem:[%s3242_s18 + $0x208] sm:$0xff] }
  0x8f   : > { %v807_v61 = vld [vmem:[%s3236_s6 + $0x208] sm:$0xff] }
  0x90   : > { %v2316_v18 = vadd.f32 %v2315_v13, %v1804_v7  ;;  %v1307_v7 = vsub.f32 %v283_v0, %v795_v1  ;;  %v1818_v13 = vand.u32 2147483647, %v1306_v2  ;;  %v296_v1 = vld [vmem:[%s3242_s18 + $0x210] sm:$0xff] }
  0x91   : > { %v808_v2 = vld [vmem:[%s3236_s6 + $0x210] sm:$0xff] }
  0x92   : > { %v2317_v23 = vadd.f32 %v2316_v18, %v1805_v12  ;;  %v1308_v12 = vsub.f32 %v284_v5, %v796_v6  ;;  %v1819_v18 = vand.u32 2147483647, %v1307_v7  ;;  %v297_v6 = vld [vmem:[%s3242_s18 + $0x218] sm:$0xff] }
  0x93   : > { %v809_v7 = vld [vmem:[%s3236_s6 + $0x218] sm:$0xff] }
  0x94   : > { %v2318_v28 = vadd.f32 %v2317_v23, %v1806_v17  ;;  %v1309_v17 = vsub.f32 %v285_v10, %v797_v11  ;;  %v1820_v23 = vand.u32 2147483647, %v1308_v12  ;;  %v298_v11 = vld [vmem:[%s3242_s18 + $0x220] sm:$0xff] }
  0x95   : > { %v810_v12 = vld [vmem:[%s3236_s6 + $0x220] sm:$0xff] }
  0x96   : > { %v2319_v33 = vadd.f32 %v2318_v28, %v1807_v22  ;;  %v1310_v22 = vsub.f32 %v286_v15, %v798_v16  ;;  %v1821_v28 = vand.u32 2147483647, %v1309_v17  ;;  %v299_v16 = vld [vmem:[%s3242_s18 + $0x228] sm:$0xff] }
  0x97   : > { %v811_v17 = vld [vmem:[%s3236_s6 + $0x228] sm:$0xff] }
  0x98   : > { %v2320_v38 = vadd.f32 %v2319_v33, %v1808_v27  ;;  %v1311_v27 = vsub.f32 %v287_v20, %v799_v21  ;;  %v1822_v33 = vand.u32 2147483647, %v1310_v22  ;;  %v300_v21 = vld [vmem:[%s3242_s18 + $0x230] sm:$0xff] }
  0x99   : > { %v812_v22 = vld [vmem:[%s3236_s6 + $0x230] sm:$0xff] }
  0x9a   : > { %v2321_v43 = vadd.f32 %v2320_v38, %v1809_v32  ;;  %v1312_v32 = vsub.f32 %v288_v25, %v800_v26  ;;  %v1823_v38 = vand.u32 2147483647, %v1311_v27  ;;  %v301_v26 = vld [vmem:[%s3242_s18 + $0x238] sm:$0xff] }
  0x9b   : > { %v813_v27 = vld [vmem:[%s3236_s6 + $0x238] sm:$0xff] }
  0x9c   : > { %v2322_v48 = vadd.f32 %v2321_v43, %v1810_v37  ;;  %v1313_v37 = vsub.f32 %v289_v30, %v801_v31  ;;  %v1824_v43 = vand.u32 2147483647, %v1312_v32  ;;  %v302_v31 = vld [vmem:[%s3242_s18 + $0x240] sm:$0xff] }
  0x9d   : > { %v814_v32 = vld [vmem:[%s3236_s6 + $0x240] sm:$0xff] }
  0x9e   : > { %v2323_v53 = vadd.f32 %v2322_v48, %v1811_v42  ;;  %v1314_v42 = vsub.f32 %v290_v35, %v802_v36  ;;  %v1825_v48 = vand.u32 2147483647, %v1313_v37  ;;  %v303_v36 = vld [vmem:[%s3242_s18 + $0x248] sm:$0xff] }
  0x9f   : > { %v815_v37 = vld [vmem:[%s3236_s6 + $0x248] sm:$0xff] }
  0xa0   : > { %v2324_v58 = vadd.f32 %v2323_v53, %v1812_v47  ;;  %v1315_v47 = vsub.f32 %v291_v40, %v803_v41  ;;  %v1826_v53 = vand.u32 2147483647, %v1314_v42  ;;  %v304_v41 = vld [vmem:[%s3242_s18 + $0x250] sm:$0xff] }
  0xa1   : > { %v816_v42 = vld [vmem:[%s3236_s6 + $0x250] sm:$0xff] }
  0xa2   : > { %v2325_v63 = vadd.f32 %v2324_v58, %v1813_v52  ;;  %v1316_v52 = vsub.f32 %v292_v45, %v804_v46  ;;  %v1827_v58 = vand.u32 2147483647, %v1315_v47  ;;  %v305_v46 = vld [vmem:[%s3242_s18 + $0x258] sm:$0xff] }
  0xa3   : > { %v817_v47 = vld [vmem:[%s3236_s6 + $0x258] sm:$0xff] }
  0xa4   : > { %v2326_v4 = vadd.f32 %v2325_v63, %v1814_v57  ;;  %v1317_v57 = vsub.f32 %v293_v50, %v805_v51  ;;  %v1828_v63 = vand.u32 2147483647, %v1316_v52  ;;  %v306_v51 = vld [vmem:[%s3242_s18 + $0x260] sm:$0xff] }
  0xa5   : > { %v818_v52 = vld [vmem:[%s3236_s6 + $0x260] sm:$0xff] }
  0xa6   : > { %v2327_v9 = vadd.f32 %v2326_v4, %v1815_v62  ;;  %v1318_v62 = vsub.f32 %v294_v55, %v806_v56  ;;  %v1829_v4 = vand.u32 2147483647, %v1317_v57  ;;  %v307_v56 = vld [vmem:[%s3242_s18 + $0x268] sm:$0xff] }
  0xa7   : > { %v819_v57 = vld [vmem:[%s3236_s6 + $0x268] sm:$0xff] }
  0xa8   : > { %v2328_v14 = vadd.f32 %v2327_v9, %v1816_v3  ;;  %v1319_v3 = vsub.f32 %v295_v60, %v807_v61  ;;  %v1830_v9 = vand.u32 2147483647, %v1318_v62  ;;  %v308_v61 = vld [vmem:[%s3242_s18 + $0x270] sm:$0xff] }
  0xa9   : > { %v820_v62 = vld [vmem:[%s3236_s6 + $0x270] sm:$0xff] }
  0xaa   : > { %v2329_v19 = vadd.f32 %v2328_v14, %v1817_v8  ;;  %v1320_v8 = vsub.f32 %v296_v1, %v808_v2  ;;  %v1831_v14 = vand.u32 2147483647, %v1319_v3  ;;  %v309_v2 = vld [vmem:[%s3242_s18 + $0x278] sm:$0xff] }
  0xab   : > { %v821_v3 = vld [vmem:[%s3236_s6 + $0x278] sm:$0xff] }
  0xac   : > { %v2330_v24 = vadd.f32 %v2329_v19, %v1818_v13  ;;  %v1321_v13 = vsub.f32 %v297_v6, %v809_v7  ;;  %v1832_v19 = vand.u32 2147483647, %v1320_v8  ;;  %v310_v7 = vld [vmem:[%s3242_s18 + $0x280] sm:$0xff] }
  0xad   : > { %v822_v8 = vld [vmem:[%s3236_s6 + $0x280] sm:$0xff] }
  0xae   : > { %v2331_v29 = vadd.f32 %v2330_v24, %v1819_v18  ;;  %v1322_v18 = vsub.f32 %v298_v11, %v810_v12  ;;  %v1833_v24 = vand.u32 2147483647, %v1321_v13  ;;  %v311_v12 = vld [vmem:[%s3242_s18 + $0x288] sm:$0xff] }
  0xaf   : > { %v823_v13 = vld [vmem:[%s3236_s6 + $0x288] sm:$0xff] }
  0xb0   : > { %v2332_v34 = vadd.f32 %v2331_v29, %v1820_v23  ;;  %v1323_v23 = vsub.f32 %v299_v16, %v811_v17  ;;  %v1834_v29 = vand.u32 2147483647, %v1322_v18  ;;  %v312_v17 = vld [vmem:[%s3242_s18 + $0x290] sm:$0xff] }
  0xb1   : > { %v824_v18 = vld [vmem:[%s3236_s6 + $0x290] sm:$0xff] }
  0xb2   : > { %v2333_v39 = vadd.f32 %v2332_v34, %v1821_v28  ;;  %v1324_v28 = vsub.f32 %v300_v21, %v812_v22  ;;  %v1835_v34 = vand.u32 2147483647, %v1323_v23  ;;  %v313_v22 = vld [vmem:[%s3242_s18 + $0x298] sm:$0xff] }
  0xb3   : > { %v825_v23 = vld [vmem:[%s3236_s6 + $0x298] sm:$0xff] }
  0xb4   : > { %v2334_v44 = vadd.f32 %v2333_v39, %v1822_v33  ;;  %v1325_v33 = vsub.f32 %v301_v26, %v813_v27  ;;  %v1836_v39 = vand.u32 2147483647, %v1324_v28  ;;  %v314_v27 = vld [vmem:[%s3242_s18 + $0x2a0] sm:$0xff] }
  0xb5   : > { %v826_v28 = vld [vmem:[%s3236_s6 + $0x2a0] sm:$0xff] }
  0xb6   : > { %v2335_v49 = vadd.f32 %v2334_v44, %v1823_v38  ;;  %v1326_v38 = vsub.f32 %v302_v31, %v814_v32  ;;  %v1837_v44 = vand.u32 2147483647, %v1325_v33  ;;  %v315_v32 = vld [vmem:[%s3242_s18 + $0x2a8] sm:$0xff] }
  0xb7   : > { %v827_v33 = vld [vmem:[%s3236_s6 + $0x2a8] sm:$0xff] }
  0xb8   : > { %v2336_v54 = vadd.f32 %v2335_v49, %v1824_v43  ;;  %v1327_v43 = vsub.f32 %v303_v36, %v815_v37  ;;  %v1838_v49 = vand.u32 2147483647, %v1326_v38  ;;  %v316_v37 = vld [vmem:[%s3242_s18 + $0x2b0] sm:$0xff] }
  0xb9   : > { %v828_v38 = vld [vmem:[%s3236_s6 + $0x2b0] sm:$0xff] }
  0xba   : > { %v2337_v59 = vadd.f32 %v2336_v54, %v1825_v48  ;;  %v1328_v48 = vsub.f32 %v304_v41, %v816_v42  ;;  %v1839_v54 = vand.u32 2147483647, %v1327_v43  ;;  %v317_v42 = vld [vmem:[%s3242_s18 + $0x2b8] sm:$0xff] }
  0xbb   : > { %v829_v43 = vld [vmem:[%s3236_s6 + $0x2b8] sm:$0xff] }
  0xbc   : > { %v2338_v0 = vadd.f32 %v2337_v59, %v1826_v53  ;;  %v1329_v53 = vsub.f32 %v305_v46, %v817_v47  ;;  %v1840_v59 = vand.u32 2147483647, %v1328_v48  ;;  %v318_v47 = vld [vmem:[%s3242_s18 + $0x2c0] sm:$0xff] }
  0xbd   : > { %v830_v48 = vld [vmem:[%s3236_s6 + $0x2c0] sm:$0xff] }
  0xbe   : > { %v2339_v5 = vadd.f32 %v2338_v0, %v1827_v58  ;;  %v1330_v58 = vsub.f32 %v306_v51, %v818_v52  ;;  %v1841_v0 = vand.u32 2147483647, %v1329_v53  ;;  %v319_v52 = vld [vmem:[%s3242_s18 + $0x2c8] sm:$0xff] }
  0xbf   : > { %v831_v53 = vld [vmem:[%s3236_s6 + $0x2c8] sm:$0xff] }
  0xc0   : > { %v2340_v10 = vadd.f32 %v2339_v5, %v1828_v63  ;;  %v1331_v63 = vsub.f32 %v307_v56, %v819_v57  ;;  %v1842_v5 = vand.u32 2147483647, %v1330_v58  ;;  %v320_v57 = vld [vmem:[%s3242_s18 + $0x2d0] sm:$0xff] }
  0xc1   : > { %v832_v58 = vld [vmem:[%s3236_s6 + $0x2d0] sm:$0xff] }
  0xc2   : > { %v2341_v15 = vadd.f32 %v2340_v10, %v1829_v4  ;;  %v1332_v4 = vsub.f32 %v308_v61, %v820_v62  ;;  %v1843_v10 = vand.u32 2147483647, %v1331_v63  ;;  %v321_v62 = vld [vmem:[%s3242_s18 + $0x2d8] sm:$0xff] }
  0xc3   : > { %v833_v63 = vld [vmem:[%s3236_s6 + $0x2d8] sm:$0xff] }
  0xc4   : > { %v2342_v20 = vadd.f32 %v2341_v15, %v1830_v9  ;;  %v1333_v9 = vsub.f32 %v309_v2, %v821_v3  ;;  %v1844_v15 = vand.u32 2147483647, %v1332_v4  ;;  %v322_v3 = vld [vmem:[%s3242_s18 + $0x2e0] sm:$0xff] }
  0xc5   : > { %v834_v4 = vld [vmem:[%s3236_s6 + $0x2e0] sm:$0xff] }
  0xc6   : > { %v2343_v25 = vadd.f32 %v2342_v20, %v1831_v14  ;;  %v1334_v14 = vsub.f32 %v310_v7, %v822_v8  ;;  %v1845_v20 = vand.u32 2147483647, %v1333_v9  ;;  %v323_v8 = vld [vmem:[%s3242_s18 + $0x2e8] sm:$0xff] }
  0xc7   : > { %v835_v9 = vld [vmem:[%s3236_s6 + $0x2e8] sm:$0xff] }
  0xc8   : > { %v2344_v30 = vadd.f32 %v2343_v25, %v1832_v19  ;;  %v1335_v19 = vsub.f32 %v311_v12, %v823_v13  ;;  %v1846_v25 = vand.u32 2147483647, %v1334_v14  ;;  %v324_v13 = vld [vmem:[%s3242_s18 + $0x2f0] sm:$0xff] }
  0xc9   : > { %v836_v14 = vld [vmem:[%s3236_s6 + $0x2f0] sm:$0xff] }
  0xca   : > { %v2345_v35 = vadd.f32 %v2344_v30, %v1833_v24  ;;  %v1336_v24 = vsub.f32 %v312_v17, %v824_v18  ;;  %v1847_v30 = vand.u32 2147483647, %v1335_v19  ;;  %v325_v18 = vld [vmem:[%s3242_s18 + $0x2f8] sm:$0xff] }
  0xcb   : > { %v837_v19 = vld [vmem:[%s3236_s6 + $0x2f8] sm:$0xff] }
  0xcc   : > { %v2346_v40 = vadd.f32 %v2345_v35, %v1834_v29  ;;  %v1337_v29 = vsub.f32 %v313_v22, %v825_v23  ;;  %v1848_v35 = vand.u32 2147483647, %v1336_v24  ;;  %v326_v23 = vld [vmem:[%s3242_s18 + $0x300] sm:$0xff] }
  0xcd   : > { %v838_v24 = vld [vmem:[%s3236_s6 + $0x300] sm:$0xff] }
  0xce   : > { %v2347_v45 = vadd.f32 %v2346_v40, %v1835_v34  ;;  %v1338_v34 = vsub.f32 %v314_v27, %v826_v28  ;;  %v1849_v40 = vand.u32 2147483647, %v1337_v29  ;;  %v327_v28 = vld [vmem:[%s3242_s18 + $0x308] sm:$0xff] }
  0xcf   : > { %v839_v29 = vld [vmem:[%s3236_s6 + $0x308] sm:$0xff] }
  0xd0   : > { %v2348_v50 = vadd.f32 %v2347_v45, %v1836_v39  ;;  %v1339_v39 = vsub.f32 %v315_v32, %v827_v33  ;;  %v1850_v45 = vand.u32 2147483647, %v1338_v34  ;;  %v328_v33 = vld [vmem:[%s3242_s18 + $0x310] sm:$0xff] }
  0xd1   : > { %v840_v34 = vld [vmem:[%s3236_s6 + $0x310] sm:$0xff] }
  0xd2   : > { %v2349_v55 = vadd.f32 %v2348_v50, %v1837_v44  ;;  %v1340_v44 = vsub.f32 %v316_v37, %v828_v38  ;;  %v1851_v50 = vand.u32 2147483647, %v1339_v39  ;;  %v329_v38 = vld [vmem:[%s3242_s18 + $0x318] sm:$0xff] }
  0xd3   : > { %v841_v39 = vld [vmem:[%s3236_s6 + $0x318] sm:$0xff] }
  0xd4   : > { %v2350_v60 = vadd.f32 %v2349_v55, %v1838_v49  ;;  %v1341_v49 = vsub.f32 %v317_v42, %v829_v43  ;;  %v1852_v55 = vand.u32 2147483647, %v1340_v44  ;;  %v330_v43 = vld [vmem:[%s3242_s18 + $0x320] sm:$0xff] }
  0xd5   : > { %v842_v44 = vld [vmem:[%s3236_s6 + $0x320] sm:$0xff] }
  0xd6   : > { %v2351_v1 = vadd.f32 %v2350_v60, %v1839_v54  ;;  %v1342_v54 = vsub.f32 %v318_v47, %v830_v48  ;;  %v1853_v60 = vand.u32 2147483647, %v1341_v49  ;;  %v331_v48 = vld [vmem:[%s3242_s18 + $0x328] sm:$0xff] }
  0xd7   : > { %v843_v49 = vld [vmem:[%s3236_s6 + $0x328] sm:$0xff] }
  0xd8   : > { %v2352_v6 = vadd.f32 %v2351_v1, %v1840_v59  ;;  %v1343_v59 = vsub.f32 %v319_v52, %v831_v53  ;;  %v1854_v1 = vand.u32 2147483647, %v1342_v54  ;;  %v332_v53 = vld [vmem:[%s3242_s18 + $0x330] sm:$0xff] }
  0xd9   : > { %v844_v54 = vld [vmem:[%s3236_s6 + $0x330] sm:$0xff] }
  0xda   : > { %v2353_v11 = vadd.f32 %v2352_v6, %v1841_v0  ;;  %v1344_v0 = vsub.f32 %v320_v57, %v832_v58  ;;  %v1855_v6 = vand.u32 2147483647, %v1343_v59  ;;  %v333_v58 = vld [vmem:[%s3242_s18 + $0x338] sm:$0xff] }
  0xdb   : > { %v845_v59 = vld [vmem:[%s3236_s6 + $0x338] sm:$0xff] }
  0xdc   : > { %v2354_v16 = vadd.f32 %v2353_v11, %v1842_v5  ;;  %v1345_v5 = vsub.f32 %v321_v62, %v833_v63  ;;  %v1856_v11 = vand.u32 2147483647, %v1344_v0  ;;  %v334_v63 = vld [vmem:[%s3242_s18 + $0x340] sm:$0xff] }
  0xdd   : > { %v846_v0 = vld [vmem:[%s3236_s6 + $0x340] sm:$0xff] }
  0xde   : > { %v2355_v21 = vadd.f32 %v2354_v16, %v1843_v10  ;;  %v1346_v10 = vsub.f32 %v322_v3, %v834_v4  ;;  %v1857_v16 = vand.u32 2147483647, %v1345_v5  ;;  %v335_v4 = vld [vmem:[%s3242_s18 + $0x348] sm:$0xff] }
  0xdf   : > { %v847_v5 = vld [vmem:[%s3236_s6 + $0x348] sm:$0xff] }
  0xe0   : > { %v2356_v26 = vadd.f32 %v2355_v21, %v1844_v15  ;;  %v1347_v15 = vsub.f32 %v323_v8, %v835_v9  ;;  %v1858_v21 = vand.u32 2147483647, %v1346_v10  ;;  %v336_v9 = vld [vmem:[%s3242_s18 + $0x350] sm:$0xff] }
  0xe1   : > { %v848_v10 = vld [vmem:[%s3236_s6 + $0x350] sm:$0xff] }
  0xe2   : > { %v2357_v31 = vadd.f32 %v2356_v26, %v1845_v20  ;;  %v1348_v20 = vsub.f32 %v324_v13, %v836_v14  ;;  %v1859_v26 = vand.u32 2147483647, %v1347_v15  ;;  %v337_v14 = vld [vmem:[%s3242_s18 + $0x358] sm:$0xff] }
  0xe3   : > { %v849_v15 = vld [vmem:[%s3236_s6 + $0x358] sm:$0xff] }
  0xe4   : > { %v2358_v36 = vadd.f32 %v2357_v31, %v1846_v25  ;;  %v1349_v25 = vsub.f32 %v325_v18, %v837_v19  ;;  %v1860_v31 = vand.u32 2147483647, %v1348_v20  ;;  %v338_v19 = vld [vmem:[%s3242_s18 + $0x360] sm:$0xff] }
  0xe5   : > { %v850_v20 = vld [vmem:[%s3236_s6 + $0x360] sm:$0xff] }
  0xe6   : > { %v2359_v41 = vadd.f32 %v2358_v36, %v1847_v30  ;;  %v1350_v30 = vsub.f32 %v326_v23, %v838_v24  ;;  %v1861_v36 = vand.u32 2147483647, %v1349_v25  ;;  %v339_v24 = vld [vmem:[%s3242_s18 + $0x368] sm:$0xff] }
  0xe7   : > { %v851_v25 = vld [vmem:[%s3236_s6 + $0x368] sm:$0xff] }
  0xe8   : > { %v2360_v46 = vadd.f32 %v2359_v41, %v1848_v35  ;;  %v1351_v35 = vsub.f32 %v327_v28, %v839_v29  ;;  %v1862_v41 = vand.u32 2147483647, %v1350_v30  ;;  %v340_v29 = vld [vmem:[%s3242_s18 + $0x370] sm:$0xff] }
  0xe9   : > { %v852_v30 = vld [vmem:[%s3236_s6 + $0x370] sm:$0xff] }
  0xea   : > { %v2361_v51 = vadd.f32 %v2360_v46, %v1849_v40  ;;  %v1352_v40 = vsub.f32 %v328_v33, %v840_v34  ;;  %v1863_v46 = vand.u32 2147483647, %v1351_v35  ;;  %v341_v34 = vld [vmem:[%s3242_s18 + $0x378] sm:$0xff] }
  0xeb   : > { %v853_v35 = vld [vmem:[%s3236_s6 + $0x378] sm:$0xff] }
  0xec   : > { %v2362_v56 = vadd.f32 %v2361_v51, %v1850_v45  ;;  %v1353_v45 = vsub.f32 %v329_v38, %v841_v39  ;;  %v1864_v51 = vand.u32 2147483647, %v1352_v40  ;;  %v342_v39 = vld [vmem:[%s3242_s18 + $0x380] sm:$0xff] }
  0xed   : > { %v854_v40 = vld [vmem:[%s3236_s6 + $0x380] sm:$0xff] }
  0xee   : > { %v2363_v61 = vadd.f32 %v2362_v56, %v1851_v50  ;;  %v1354_v50 = vsub.f32 %v330_v43, %v842_v44  ;;  %v1865_v56 = vand.u32 2147483647, %v1353_v45  ;;  %v343_v44 = vld [vmem:[%s3242_s18 + $0x388] sm:$0xff] }
  0xef   : > { %v855_v45 = vld [vmem:[%s3236_s6 + $0x388] sm:$0xff] }
  0xf0   : > { %v2364_v2 = vadd.f32 %v2363_v61, %v1852_v55  ;;  %v1355_v55 = vsub.f32 %v331_v48, %v843_v49  ;;  %v1866_v61 = vand.u32 2147483647, %v1354_v50  ;;  %v344_v49 = vld [vmem:[%s3242_s18 + $0x390] sm:$0xff] }
  0xf1   : > { %v856_v50 = vld [vmem:[%s3236_s6 + $0x390] sm:$0xff] }
  0xf2   : > { %v2365_v7 = vadd.f32 %v2364_v2, %v1853_v60  ;;  %v1356_v60 = vsub.f32 %v332_v53, %v844_v54  ;;  %v1867_v2 = vand.u32 2147483647, %v1355_v55  ;;  %v345_v54 = vld [vmem:[%s3242_s18 + $0x398] sm:$0xff] }
  0xf3   : > { %v857_v55 = vld [vmem:[%s3236_s6 + $0x398] sm:$0xff] }
  0xf4   : > { %v2366_v12 = vadd.f32 %v2365_v7, %v1854_v1  ;;  %v1357_v1 = vsub.f32 %v333_v58, %v845_v59  ;;  %v1868_v7 = vand.u32 2147483647, %v1356_v60  ;;  %v346_v59 = vld [vmem:[%s3242_s18 + $0x3a0] sm:$0xff] }
  0xf5   : > { %v858_v60 = vld [vmem:[%s3236_s6 + $0x3a0] sm:$0xff] }
  0xf6   : > { %v2367_v17 = vadd.f32 %v2366_v12, %v1855_v6  ;;  %v1358_v6 = vsub.f32 %v334_v63, %v846_v0  ;;  %v1869_v12 = vand.u32 2147483647, %v1357_v1  ;;  %v347_v0 = vld [vmem:[%s3242_s18 + $0x3a8] sm:$0xff] }
  0xf7   : > { %v859_v1 = vld [vmem:[%s3236_s6 + $0x3a8] sm:$0xff] }
  0xf8   : > { %v2368_v22 = vadd.f32 %v2367_v17, %v1856_v11  ;;  %v1359_v11 = vsub.f32 %v335_v4, %v847_v5  ;;  %v1870_v17 = vand.u32 2147483647, %v1358_v6  ;;  %v348_v5 = vld [vmem:[%s3242_s18 + $0x3b0] sm:$0xff] }
  0xf9   : > { %v860_v6 = vld [vmem:[%s3236_s6 + $0x3b0] sm:$0xff] }
  0xfa   : > { %v2369_v27 = vadd.f32 %v2368_v22, %v1857_v16  ;;  %v1360_v16 = vsub.f32 %v336_v9, %v848_v10  ;;  %v1871_v22 = vand.u32 2147483647, %v1359_v11  ;;  %v349_v10 = vld [vmem:[%s3242_s18 + $0x3b8] sm:$0xff] }
  0xfb   : > { %v861_v11 = vld [vmem:[%s3236_s6 + $0x3b8] sm:$0xff] }
  0xfc   : > { %v2370_v32 = vadd.f32 %v2369_v27, %v1858_v21  ;;  %v1361_v21 = vsub.f32 %v337_v14, %v849_v15  ;;  %v1872_v27 = vand.u32 2147483647, %v1360_v16  ;;  %v350_v15 = vld [vmem:[%s3242_s18 + $0x3c0] sm:$0xff] }
  0xfd   : > { %v862_v16 = vld [vmem:[%s3236_s6 + $0x3c0] sm:$0xff] }
  0xfe   : > { %v2371_v37 = vadd.f32 %v2370_v32, %v1859_v26  ;;  %v1362_v26 = vsub.f32 %v338_v19, %v850_v20  ;;  %v1873_v32 = vand.u32 2147483647, %v1361_v21  ;;  %v351_v20 = vld [vmem:[%s3242_s18 + $0x3c8] sm:$0xff] }
  0xff   : > { %v863_v21 = vld [vmem:[%s3236_s6 + $0x3c8] sm:$0xff] }
 0x100   : > { %v2372_v42 = vadd.f32 %v2371_v37, %v1860_v31  ;;  %v1363_v31 = vsub.f32 %v339_v24, %v851_v25  ;;  %v1874_v37 = vand.u32 2147483647, %v1362_v26  ;;  %v352_v25 = vld [vmem:[%s3242_s18 + $0x3d0] sm:$0xff] }
 0x101   : > { %v864_v26 = vld [vmem:[%s3236_s6 + $0x3d0] sm:$0xff] }
 0x102   : > { %v2373_v47 = vadd.f32 %v2372_v42, %v1861_v36  ;;  %v1364_v36 = vsub.f32 %v340_v29, %v852_v30  ;;  %v1875_v42 = vand.u32 2147483647, %v1363_v31  ;;  %v353_v30 = vld [vmem:[%s3242_s18 + $0x3d8] sm:$0xff] }
 0x103   : > { %v865_v31 = vld [vmem:[%s3236_s6 + $0x3d8] sm:$0xff] }
 0x104   : > { %v2374_v52 = vadd.f32 %v2373_v47, %v1862_v41  ;;  %v1365_v41 = vsub.f32 %v341_v34, %v853_v35  ;;  %v1876_v47 = vand.u32 2147483647, %v1364_v36  ;;  %v354_v35 = vld [vmem:[%s3242_s18 + $0x3e0] sm:$0xff] }
 0x105   : > { %v866_v36 = vld [vmem:[%s3236_s6 + $0x3e0] sm:$0xff] }
 0x106   : > { %v2375_v57 = vadd.f32 %v2374_v52, %v1863_v46  ;;  %v1366_v46 = vsub.f32 %v342_v39, %v854_v40  ;;  %v1877_v52 = vand.u32 2147483647, %v1365_v41  ;;  %v355_v40 = vld [vmem:[%s3242_s18 + $0x3e8] sm:$0xff] }
 0x107   : > { %v867_v41 = vld [vmem:[%s3236_s6 + $0x3e8] sm:$0xff] }
 0x108   : > { %v2376_v62 = vadd.f32 %v2375_v57, %v1864_v51  ;;  %v1367_v51 = vsub.f32 %v343_v44, %v855_v45  ;;  %v1878_v57 = vand.u32 2147483647, %v1366_v46  ;;  %v356_v45 = vld [vmem:[%s3242_s18 + $0x3f0] sm:$0xff] }
 0x109   : > { %v868_v46 = vld [vmem:[%s3236_s6 + $0x3f0] sm:$0xff] }
 0x10a   : > { %v2377_v3 = vadd.f32 %v2376_v62, %v1865_v56  ;;  %v1368_v56 = vsub.f32 %v344_v49, %v856_v50  ;;  %v1879_v62 = vand.u32 2147483647, %v1367_v51  ;;  %v357_v50 = vld [vmem:[%s3242_s18 + $0x3f8] sm:$0xff] }
 0x10b   : > { %v869_v51 = vld [vmem:[%s3236_s6 + $0x3f8] sm:$0xff] }
 0x10c   : > { %v2378_v8 = vadd.f32 %v2377_v3, %v1866_v61  ;;  %v1369_v61 = vsub.f32 %v345_v54, %v857_v55  ;;  %v1880_v3 = vand.u32 2147483647, %v1368_v56  ;;  %v358_v55 = vld [vmem:[%s3242_s18 + $0x400] sm:$0xff] }
 0x10d   : > { %v870_v56 = vld [vmem:[%s3236_s6 + $0x400] sm:$0xff] }
 0x10e   : > { %v2379_v13 = vadd.f32 %v2378_v8, %v1867_v2  ;;  %v1370_v2 = vsub.f32 %v346_v59, %v858_v60  ;;  %v1881_v8 = vand.u32 2147483647, %v1369_v61  ;;  %v359_v60 = vld [vmem:[%s3242_s18 + $0x408] sm:$0xff] }
 0x10f   : > { %v871_v61 = vld [vmem:[%s3236_s6 + $0x408] sm:$0xff] }
 0x110   : > { %v2380_v18 = vadd.f32 %v2379_v13, %v1868_v7  ;;  %v1371_v7 = vsub.f32 %v347_v0, %v859_v1  ;;  %v1882_v13 = vand.u32 2147483647, %v1370_v2  ;;  %v360_v1 = vld [vmem:[%s3242_s18 + $0x410] sm:$0xff] }
 0x111   : > { %v872_v2 = vld [vmem:[%s3236_s6 + $0x410] sm:$0xff] }
 0x112   : > { %v2381_v23 = vadd.f32 %v2380_v18, %v1869_v12  ;;  %v1372_v12 = vsub.f32 %v348_v5, %v860_v6  ;;  %v1883_v18 = vand.u32 2147483647, %v1371_v7  ;;  %v361_v6 = vld [vmem:[%s3242_s18 + $0x418] sm:$0xff] }
 0x113   : > { %v873_v7 = vld [vmem:[%s3236_s6 + $0x418] sm:$0xff] }
 0x114   : > { %v2382_v28 = vadd.f32 %v2381_v23, %v1870_v17  ;;  %v1373_v17 = vsub.f32 %v349_v10, %v861_v11  ;;  %v1884_v23 = vand.u32 2147483647, %v1372_v12  ;;  %v362_v11 = vld [vmem:[%s3242_s18 + $0x420] sm:$0xff] }
 0x115   : > { %v874_v12 = vld [vmem:[%s3236_s6 + $0x420] sm:$0xff] }
 0x116   : > { %v2383_v33 = vadd.f32 %v2382_v28, %v1871_v22  ;;  %v1374_v22 = vsub.f32 %v350_v15, %v862_v16  ;;  %v1885_v28 = vand.u32 2147483647, %v1373_v17  ;;  %v363_v16 = vld [vmem:[%s3242_s18 + $0x428] sm:$0xff] }
 0x117   : > { %v875_v17 = vld [vmem:[%s3236_s6 + $0x428] sm:$0xff] }
 0x118   : > { %v2384_v38 = vadd.f32 %v2383_v33, %v1872_v27  ;;  %v1375_v27 = vsub.f32 %v351_v20, %v863_v21  ;;  %v1886_v33 = vand.u32 2147483647, %v1374_v22  ;;  %v364_v21 = vld [vmem:[%s3242_s18 + $0x430] sm:$0xff] }
 0x119   : > { %v876_v22 = vld [vmem:[%s3236_s6 + $0x430] sm:$0xff] }
 0x11a   : > { %v2385_v43 = vadd.f32 %v2384_v38, %v1873_v32  ;;  %v1376_v32 = vsub.f32 %v352_v25, %v864_v26  ;;  %v1887_v38 = vand.u32 2147483647, %v1375_v27  ;;  %v365_v26 = vld [vmem:[%s3242_s18 + $0x438] sm:$0xff] }
 0x11b   : > { %v877_v27 = vld [vmem:[%s3236_s6 + $0x438] sm:$0xff] }
 0x11c   : > { %v2386_v48 = vadd.f32 %v2385_v43, %v1874_v37  ;;  %v1377_v37 = vsub.f32 %v353_v30, %v865_v31  ;;  %v1888_v43 = vand.u32 2147483647, %v1376_v32  ;;  %v366_v31 = vld [vmem:[%s3242_s18 + $0x440] sm:$0xff] }
 0x11d   : > { %v878_v32 = vld [vmem:[%s3236_s6 + $0x440] sm:$0xff] }
 0x11e   : > { %v2387_v53 = vadd.f32 %v2386_v48, %v1875_v42  ;;  %v1378_v42 = vsub.f32 %v354_v35, %v866_v36  ;;  %v1889_v48 = vand.u32 2147483647, %v1377_v37  ;;  %v367_v36 = vld [vmem:[%s3242_s18 + $0x448] sm:$0xff] }
 0x11f   : > { %v879_v37 = vld [vmem:[%s3236_s6 + $0x448] sm:$0xff] }
 0x120   : > { %v2388_v58 = vadd.f32 %v2387_v53, %v1876_v47  ;;  %v1379_v47 = vsub.f32 %v355_v40, %v867_v41  ;;  %v1890_v53 = vand.u32 2147483647, %v1378_v42  ;;  %v368_v41 = vld [vmem:[%s3242_s18 + $0x450] sm:$0xff] }
 0x121   : > { %v880_v42 = vld [vmem:[%s3236_s6 + $0x450] sm:$0xff] }
 0x122   : > { %v2389_v63 = vadd.f32 %v2388_v58, %v1877_v52  ;;  %v1380_v52 = vsub.f32 %v356_v45, %v868_v46  ;;  %v1891_v58 = vand.u32 2147483647, %v1379_v47  ;;  %v369_v46 = vld [vmem:[%s3242_s18 + $0x458] sm:$0xff] }
 0x123   : > { %v881_v47 = vld [vmem:[%s3236_s6 + $0x458] sm:$0xff] }
 0x124   : > { %v2390_v4 = vadd.f32 %v2389_v63, %v1878_v57  ;;  %v1381_v57 = vsub.f32 %v357_v50, %v869_v51  ;;  %v1892_v63 = vand.u32 2147483647, %v1380_v52  ;;  %v370_v51 = vld [vmem:[%s3242_s18 + $0x460] sm:$0xff] }
 0x125   : > { %v882_v52 = vld [vmem:[%s3236_s6 + $0x460] sm:$0xff] }
 0x126   : > { %v2391_v9 = vadd.f32 %v2390_v4, %v1879_v62  ;;  %v1382_v62 = vsub.f32 %v358_v55, %v870_v56  ;;  %v1893_v4 = vand.u32 2147483647, %v1381_v57  ;;  %v371_v56 = vld [vmem:[%s3242_s18 + $0x468] sm:$0xff] }
 0x127   : > { %v883_v57 = vld [vmem:[%s3236_s6 + $0x468] sm:$0xff] }
 0x128   : > { %v2392_v14 = vadd.f32 %v2391_v9, %v1880_v3  ;;  %v1383_v3 = vsub.f32 %v359_v60, %v871_v61  ;;  %v1894_v9 = vand.u32 2147483647, %v1382_v62  ;;  %v372_v61 = vld [vmem:[%s3242_s18 + $0x470] sm:$0xff] }
 0x129   : > { %v884_v62 = vld [vmem:[%s3236_s6 + $0x470] sm:$0xff] }
 0x12a   : > { %v2393_v19 = vadd.f32 %v2392_v14, %v1881_v8  ;;  %v1384_v8 = vsub.f32 %v360_v1, %v872_v2  ;;  %v1895_v14 = vand.u32 2147483647, %v1383_v3  ;;  %v373_v2 = vld [vmem:[%s3242_s18 + $0x478] sm:$0xff] }
 0x12b   : > { %v885_v3 = vld [vmem:[%s3236_s6 + $0x478] sm:$0xff] }
 0x12c   : > { %v2394_v24 = vadd.f32 %v2393_v19, %v1882_v13  ;;  %v1385_v13 = vsub.f32 %v361_v6, %v873_v7  ;;  %v1896_v19 = vand.u32 2147483647, %v1384_v8  ;;  %v374_v7 = vld [vmem:[%s3242_s18 + $0x480] sm:$0xff] }
 0x12d   : > { %v886_v8 = vld [vmem:[%s3236_s6 + $0x480] sm:$0xff] }
 0x12e   : > { %v2395_v29 = vadd.f32 %v2394_v24, %v1883_v18  ;;  %v1386_v18 = vsub.f32 %v362_v11, %v874_v12  ;;  %v1897_v24 = vand.u32 2147483647, %v1385_v13  ;;  %v375_v12 = vld [vmem:[%s3242_s18 + $0x488] sm:$0xff] }
 0x12f   : > { %v887_v13 = vld [vmem:[%s3236_s6 + $0x488] sm:$0xff] }
 0x130   : > { %v2396_v34 = vadd.f32 %v2395_v29, %v1884_v23  ;;  %v1387_v23 = vsub.f32 %v363_v16, %v875_v17  ;;  %v1898_v29 = vand.u32 2147483647, %v1386_v18  ;;  %v376_v17 = vld [vmem:[%s3242_s18 + $0x490] sm:$0xff] }
 0x131   : > { %v888_v18 = vld [vmem:[%s3236_s6 + $0x490] sm:$0xff] }
 0x132   : > { %v2397_v39 = vadd.f32 %v2396_v34, %v1885_v28  ;;  %v1388_v28 = vsub.f32 %v364_v21, %v876_v22  ;;  %v1899_v34 = vand.u32 2147483647, %v1387_v23  ;;  %v377_v22 = vld [vmem:[%s3242_s18 + $0x498] sm:$0xff] }
 0x133   : > { %v889_v23 = vld [vmem:[%s3236_s6 + $0x498] sm:$0xff] }
 0x134   : > { %v2398_v44 = vadd.f32 %v2397_v39, %v1886_v33  ;;  %v1389_v33 = vsub.f32 %v365_v26, %v877_v27  ;;  %v1900_v39 = vand.u32 2147483647, %v1388_v28  ;;  %v378_v27 = vld [vmem:[%s3242_s18 + $0x4a0] sm:$0xff] }
 0x135   : > { %v890_v28 = vld [vmem:[%s3236_s6 + $0x4a0] sm:$0xff] }
 0x136   : > { %v2399_v49 = vadd.f32 %v2398_v44, %v1887_v38  ;;  %v1390_v38 = vsub.f32 %v366_v31, %v878_v32  ;;  %v1901_v44 = vand.u32 2147483647, %v1389_v33  ;;  %v379_v32 = vld [vmem:[%s3242_s18 + $0x4a8] sm:$0xff] }
 0x137   : > { %v891_v33 = vld [vmem:[%s3236_s6 + $0x4a8] sm:$0xff] }
 0x138   : > { %v2400_v54 = vadd.f32 %v2399_v49, %v1888_v43  ;;  %v1391_v43 = vsub.f32 %v367_v36, %v879_v37  ;;  %v1902_v49 = vand.u32 2147483647, %v1390_v38  ;;  %v380_v37 = vld [vmem:[%s3242_s18 + $0x4b0] sm:$0xff] }
 0x139   : > { %v892_v38 = vld [vmem:[%s3236_s6 + $0x4b0] sm:$0xff] }
 0x13a   : > { %v2401_v59 = vadd.f32 %v2400_v54, %v1889_v48  ;;  %v1392_v48 = vsub.f32 %v368_v41, %v880_v42  ;;  %v1903_v54 = vand.u32 2147483647, %v1391_v43  ;;  %v381_v42 = vld [vmem:[%s3242_s18 + $0x4b8] sm:$0xff] }
 0x13b   : > { %v893_v43 = vld [vmem:[%s3236_s6 + $0x4b8] sm:$0xff] }
 0x13c   : > { %v2402_v0 = vadd.f32 %v2401_v59, %v1890_v53  ;;  %v1393_v53 = vsub.f32 %v369_v46, %v881_v47  ;;  %v1904_v59 = vand.u32 2147483647, %v1392_v48  ;;  %v382_v47 = vld [vmem:[%s3242_s18 + $0x4c0] sm:$0xff] }
 0x13d   : > { %v894_v48 = vld [vmem:[%s3236_s6 + $0x4c0] sm:$0xff] }
 0x13e   : > { %v2403_v5 = vadd.f32 %v2402_v0, %v1891_v58  ;;  %v1394_v58 = vsub.f32 %v370_v51, %v882_v52  ;;  %v1905_v0 = vand.u32 2147483647, %v1393_v53  ;;  %v383_v52 = vld [vmem:[%s3242_s18 + $0x4c8] sm:$0xff] }
 0x13f   : > { %v895_v53 = vld [vmem:[%s3236_s6 + $0x4c8] sm:$0xff] }
 0x140   : > { %v2404_v10 = vadd.f32 %v2403_v5, %v1892_v63  ;;  %v1395_v63 = vsub.f32 %v371_v56, %v883_v57  ;;  %v1906_v5 = vand.u32 2147483647, %v1394_v58  ;;  %v384_v57 = vld [vmem:[%s3242_s18 + $0x4d0] sm:$0xff] }
 0x141   : > { %v896_v58 = vld [vmem:[%s3236_s6 + $0x4d0] sm:$0xff] }
 0x142   : > { %v2405_v15 = vadd.f32 %v2404_v10, %v1893_v4  ;;  %v1396_v4 = vsub.f32 %v372_v61, %v884_v62  ;;  %v1907_v10 = vand.u32 2147483647, %v1395_v63  ;;  %v385_v62 = vld [vmem:[%s3242_s18 + $0x4d8] sm:$0xff] }
 0x143   : > { %v897_v63 = vld [vmem:[%s3236_s6 + $0x4d8] sm:$0xff] }
 0x144   : > { %v2406_v20 = vadd.f32 %v2405_v15, %v1894_v9  ;;  %v1397_v9 = vsub.f32 %v373_v2, %v885_v3  ;;  %v1908_v15 = vand.u32 2147483647, %v1396_v4  ;;  %v386_v3 = vld [vmem:[%s3242_s18 + $0x4e0] sm:$0xff] }
 0x145   : > { %v898_v4 = vld [vmem:[%s3236_s6 + $0x4e0] sm:$0xff] }
 0x146   : > { %v2407_v25 = vadd.f32 %v2406_v20, %v1895_v14  ;;  %v1398_v14 = vsub.f32 %v374_v7, %v886_v8  ;;  %v1909_v20 = vand.u32 2147483647, %v1397_v9  ;;  %v387_v8 = vld [vmem:[%s3242_s18 + $0x4e8] sm:$0xff] }
 0x147   : > { %v899_v9 = vld [vmem:[%s3236_s6 + $0x4e8] sm:$0xff] }
 0x148   : > { %v2408_v30 = vadd.f32 %v2407_v25, %v1896_v19  ;;  %v1399_v19 = vsub.f32 %v375_v12, %v887_v13  ;;  %v1910_v25 = vand.u32 2147483647, %v1398_v14  ;;  %v388_v13 = vld [vmem:[%s3242_s18 + $0x4f0] sm:$0xff] }
 0x149   : > { %v900_v14 = vld [vmem:[%s3236_s6 + $0x4f0] sm:$0xff] }
 0x14a   : > { %v2409_v35 = vadd.f32 %v2408_v30, %v1897_v24  ;;  %v1400_v24 = vsub.f32 %v376_v17, %v888_v18  ;;  %v1911_v30 = vand.u32 2147483647, %v1399_v19  ;;  %v389_v18 = vld [vmem:[%s3242_s18 + $0x4f8] sm:$0xff] }
 0x14b   : > { %v901_v19 = vld [vmem:[%s3236_s6 + $0x4f8] sm:$0xff] }
 0x14c   : > { %v2410_v40 = vadd.f32 %v2409_v35, %v1898_v29  ;;  %v1401_v29 = vsub.f32 %v377_v22, %v889_v23  ;;  %v1912_v35 = vand.u32 2147483647, %v1400_v24  ;;  %v390_v23 = vld [vmem:[%s3242_s18 + $0x500] sm:$0xff] }
 0x14d   : > { %v902_v24 = vld [vmem:[%s3236_s6 + $0x500] sm:$0xff] }
 0x14e   : > { %v2411_v45 = vadd.f32 %v2410_v40, %v1899_v34  ;;  %v1402_v34 = vsub.f32 %v378_v27, %v890_v28  ;;  %v1913_v40 = vand.u32 2147483647, %v1401_v29  ;;  %v391_v28 = vld [vmem:[%s3242_s18 + $0x508] sm:$0xff] }
 0x14f   : > { %v903_v29 = vld [vmem:[%s3236_s6 + $0x508] sm:$0xff] }
 0x150   : > { %v2412_v50 = vadd.f32 %v2411_v45, %v1900_v39  ;;  %v1403_v39 = vsub.f32 %v379_v32, %v891_v33  ;;  %v1914_v45 = vand.u32 2147483647, %v1402_v34  ;;  %v392_v33 = vld [vmem:[%s3242_s18 + $0x510] sm:$0xff] }
 0x151   : > { %v904_v34 = vld [vmem:[%s3236_s6 + $0x510] sm:$0xff] }
 0x152   : > { %v2413_v55 = vadd.f32 %v2412_v50, %v1901_v44  ;;  %v1404_v44 = vsub.f32 %v380_v37, %v892_v38  ;;  %v1915_v50 = vand.u32 2147483647, %v1403_v39  ;;  %v393_v38 = vld [vmem:[%s3242_s18 + $0x518] sm:$0xff] }
 0x153   : > { %v905_v39 = vld [vmem:[%s3236_s6 + $0x518] sm:$0xff] }
 0x154   : > { %v2414_v60 = vadd.f32 %v2413_v55, %v1902_v49  ;;  %v1405_v49 = vsub.f32 %v381_v42, %v893_v43  ;;  %v1916_v55 = vand.u32 2147483647, %v1404_v44  ;;  %v394_v43 = vld [vmem:[%s3242_s18 + $0x520] sm:$0xff] }
 0x155   : > { %v906_v44 = vld [vmem:[%s3236_s6 + $0x520] sm:$0xff] }
 0x156   : > { %v2415_v1 = vadd.f32 %v2414_v60, %v1903_v54  ;;  %v1406_v54 = vsub.f32 %v382_v47, %v894_v48  ;;  %v1917_v60 = vand.u32 2147483647, %v1405_v49  ;;  %v395_v48 = vld [vmem:[%s3242_s18 + $0x528] sm:$0xff] }
 0x157   : > { %v907_v49 = vld [vmem:[%s3236_s6 + $0x528] sm:$0xff] }
 0x158   : > { %v2416_v6 = vadd.f32 %v2415_v1, %v1904_v59  ;;  %v1407_v59 = vsub.f32 %v383_v52, %v895_v53  ;;  %v1918_v1 = vand.u32 2147483647, %v1406_v54  ;;  %v396_v53 = vld [vmem:[%s3242_s18 + $0x530] sm:$0xff] }
 0x159   : > { %v908_v54 = vld [vmem:[%s3236_s6 + $0x530] sm:$0xff] }
 0x15a   : > { %v2417_v11 = vadd.f32 %v2416_v6, %v1905_v0  ;;  %v1408_v0 = vsub.f32 %v384_v57, %v896_v58  ;;  %v1919_v6 = vand.u32 2147483647, %v1407_v59  ;;  %v397_v58 = vld [vmem:[%s3242_s18 + $0x538] sm:$0xff] }
 0x15b   : > { %v909_v59 = vld [vmem:[%s3236_s6 + $0x538] sm:$0xff] }
 0x15c   : > { %v2418_v16 = vadd.f32 %v2417_v11, %v1906_v5  ;;  %v1409_v5 = vsub.f32 %v385_v62, %v897_v63  ;;  %v1920_v11 = vand.u32 2147483647, %v1408_v0  ;;  %v398_v63 = vld [vmem:[%s3242_s18 + $0x540] sm:$0xff] }
 0x15d   : > { %v910_v0 = vld [vmem:[%s3236_s6 + $0x540] sm:$0xff] }
 0x15e   : > { %v2419_v21 = vadd.f32 %v2418_v16, %v1907_v10  ;;  %v1410_v10 = vsub.f32 %v386_v3, %v898_v4  ;;  %v1921_v16 = vand.u32 2147483647, %v1409_v5  ;;  %v399_v4 = vld [vmem:[%s3242_s18 + $0x548] sm:$0xff] }
 0x15f   : > { %v911_v5 = vld [vmem:[%s3236_s6 + $0x548] sm:$0xff] }
 0x160   : > { %v2420_v26 = vadd.f32 %v2419_v21, %v1908_v15  ;;  %v1411_v15 = vsub.f32 %v387_v8, %v899_v9  ;;  %v1922_v21 = vand.u32 2147483647, %v1410_v10  ;;  %v400_v9 = vld [vmem:[%s3242_s18 + $0x550] sm:$0xff] }
 0x161   : > { %v912_v10 = vld [vmem:[%s3236_s6 + $0x550] sm:$0xff] }
 0x162   : > { %v2421_v31 = vadd.f32 %v2420_v26, %v1909_v20  ;;  %v1412_v20 = vsub.f32 %v388_v13, %v900_v14  ;;  %v1923_v26 = vand.u32 2147483647, %v1411_v15  ;;  %v401_v14 = vld [vmem:[%s3242_s18 + $0x558] sm:$0xff] }
 0x163   : > { %v913_v15 = vld [vmem:[%s3236_s6 + $0x558] sm:$0xff] }
 0x164   : > { %v2422_v36 = vadd.f32 %v2421_v31, %v1910_v25  ;;  %v1413_v25 = vsub.f32 %v389_v18, %v901_v19  ;;  %v1924_v31 = vand.u32 2147483647, %v1412_v20  ;;  %v402_v19 = vld [vmem:[%s3242_s18 + $0x560] sm:$0xff] }
 0x165   : > { %v914_v20 = vld [vmem:[%s3236_s6 + $0x560] sm:$0xff] }
 0x166   : > { %v2423_v41 = vadd.f32 %v2422_v36, %v1911_v30  ;;  %v1414_v30 = vsub.f32 %v390_v23, %v902_v24  ;;  %v1925_v36 = vand.u32 2147483647, %v1413_v25  ;;  %v403_v24 = vld [vmem:[%s3242_s18 + $0x568] sm:$0xff] }
 0x167   : > { %v915_v25 = vld [vmem:[%s3236_s6 + $0x568] sm:$0xff] }
 0x168   : > { %v2424_v46 = vadd.f32 %v2423_v41, %v1912_v35  ;;  %v1415_v35 = vsub.f32 %v391_v28, %v903_v29  ;;  %v1926_v41 = vand.u32 2147483647, %v1414_v30  ;;  %v404_v29 = vld [vmem:[%s3242_s18 + $0x570] sm:$0xff] }
 0x169   : > { %v916_v30 = vld [vmem:[%s3236_s6 + $0x570] sm:$0xff] }
 0x16a   : > { %v2425_v51 = vadd.f32 %v2424_v46, %v1913_v40  ;;  %v1416_v40 = vsub.f32 %v392_v33, %v904_v34  ;;  %v1927_v46 = vand.u32 2147483647, %v1415_v35  ;;  %v405_v34 = vld [vmem:[%s3242_s18 + $0x578] sm:$0xff] }
 0x16b   : > { %v917_v35 = vld [vmem:[%s3236_s6 + $0x578] sm:$0xff] }
 0x16c   : > { %v2426_v56 = vadd.f32 %v2425_v51, %v1914_v45  ;;  %v1417_v45 = vsub.f32 %v393_v38, %v905_v39  ;;  %v1928_v51 = vand.u32 2147483647, %v1416_v40  ;;  %v406_v39 = vld [vmem:[%s3242_s18 + $0x580] sm:$0xff] }
 0x16d   : > { %v918_v40 = vld [vmem:[%s3236_s6 + $0x580] sm:$0xff] }
 0x16e   : > { %v2427_v61 = vadd.f32 %v2426_v56, %v1915_v50  ;;  %v1418_v50 = vsub.f32 %v394_v43, %v906_v44  ;;  %v1929_v56 = vand.u32 2147483647, %v1417_v45  ;;  %v407_v44 = vld [vmem:[%s3242_s18 + $0x588] sm:$0xff] }
 0x16f   : > { %v919_v45 = vld [vmem:[%s3236_s6 + $0x588] sm:$0xff] }
 0x170   : > { %v2428_v2 = vadd.f32 %v2427_v61, %v1916_v55  ;;  %v1419_v55 = vsub.f32 %v395_v48, %v907_v49  ;;  %v1930_v61 = vand.u32 2147483647, %v1418_v50  ;;  %v408_v49 = vld [vmem:[%s3242_s18 + $0x590] sm:$0xff] }
 0x171   : > { %v920_v50 = vld [vmem:[%s3236_s6 + $0x590] sm:$0xff] }
 0x172   : > { %v2429_v7 = vadd.f32 %v2428_v2, %v1917_v60  ;;  %v1420_v60 = vsub.f32 %v396_v53, %v908_v54  ;;  %v1931_v2 = vand.u32 2147483647, %v1419_v55  ;;  %v409_v54 = vld [vmem:[%s3242_s18 + $0x598] sm:$0xff] }
 0x173   : > { %v921_v55 = vld [vmem:[%s3236_s6 + $0x598] sm:$0xff] }
 0x174   : > { %v2430_v12 = vadd.f32 %v2429_v7, %v1918_v1  ;;  %v1421_v1 = vsub.f32 %v397_v58, %v909_v59  ;;  %v1932_v7 = vand.u32 2147483647, %v1420_v60  ;;  %v410_v59 = vld [vmem:[%s3242_s18 + $0x5a0] sm:$0xff] }
 0x175   : > { %v922_v60 = vld [vmem:[%s3236_s6 + $0x5a0] sm:$0xff] }
 0x176   : > { %v2431_v17 = vadd.f32 %v2430_v12, %v1919_v6  ;;  %v1422_v6 = vsub.f32 %v398_v63, %v910_v0  ;;  %v1933_v12 = vand.u32 2147483647, %v1421_v1  ;;  %v411_v0 = vld [vmem:[%s3242_s18 + $0x5a8] sm:$0xff] }
 0x177   : > { %v923_v1 = vld [vmem:[%s3236_s6 + $0x5a8] sm:$0xff] }
 0x178   : > { %v2432_v22 = vadd.f32 %v2431_v17, %v1920_v11  ;;  %v1423_v11 = vsub.f32 %v399_v4, %v911_v5  ;;  %v1934_v17 = vand.u32 2147483647, %v1422_v6  ;;  %v412_v5 = vld [vmem:[%s3242_s18 + $0x5b0] sm:$0xff] }
 0x179   : > { %v924_v6 = vld [vmem:[%s3236_s6 + $0x5b0] sm:$0xff] }
 0x17a   : > { %v2433_v27 = vadd.f32 %v2432_v22, %v1921_v16  ;;  %v1424_v16 = vsub.f32 %v400_v9, %v912_v10  ;;  %v1935_v22 = vand.u32 2147483647, %v1423_v11  ;;  %v413_v10 = vld [vmem:[%s3242_s18 + $0x5b8] sm:$0xff] }
 0x17b   : > { %v925_v11 = vld [vmem:[%s3236_s6 + $0x5b8] sm:$0xff] }
 0x17c   : > { %v2434_v32 = vadd.f32 %v2433_v27, %v1922_v21  ;;  %v1425_v21 = vsub.f32 %v401_v14, %v913_v15  ;;  %v1936_v27 = vand.u32 2147483647, %v1424_v16  ;;  %v414_v15 = vld [vmem:[%s3242_s18 + $0x5c0] sm:$0xff] }
 0x17d   : > { %v926_v16 = vld [vmem:[%s3236_s6 + $0x5c0] sm:$0xff] }
 0x17e   : > { %v2435_v37 = vadd.f32 %v2434_v32, %v1923_v26  ;;  %v1426_v26 = vsub.f32 %v402_v19, %v914_v20  ;;  %v1937_v32 = vand.u32 2147483647, %v1425_v21  ;;  %v415_v20 = vld [vmem:[%s3242_s18 + $0x5c8] sm:$0xff] }
 0x17f   : > { %v927_v21 = vld [vmem:[%s3236_s6 + $0x5c8] sm:$0xff] }
 0x180   : > { %v2436_v42 = vadd.f32 %v2435_v37, %v1924_v31  ;;  %v1427_v31 = vsub.f32 %v403_v24, %v915_v25  ;;  %v1938_v37 = vand.u32 2147483647, %v1426_v26  ;;  %v416_v25 = vld [vmem:[%s3242_s18 + $0x5d0] sm:$0xff] }
 0x181   : > { %v928_v26 = vld [vmem:[%s3236_s6 + $0x5d0] sm:$0xff] }
 0x182   : > { %v2437_v47 = vadd.f32 %v2436_v42, %v1925_v36  ;;  %v1428_v36 = vsub.f32 %v404_v29, %v916_v30  ;;  %v1939_v42 = vand.u32 2147483647, %v1427_v31  ;;  %v417_v30 = vld [vmem:[%s3242_s18 + $0x5d8] sm:$0xff] }
 0x183   : > { %v929_v31 = vld [vmem:[%s3236_s6 + $0x5d8] sm:$0xff] }
 0x184   : > { %v2438_v52 = vadd.f32 %v2437_v47, %v1926_v41  ;;  %v1429_v41 = vsub.f32 %v405_v34, %v917_v35  ;;  %v1940_v47 = vand.u32 2147483647, %v1428_v36  ;;  %v418_v35 = vld [vmem:[%s3242_s18 + $0x5e0] sm:$0xff] }
 0x185   : > { %v930_v36 = vld [vmem:[%s3236_s6 + $0x5e0] sm:$0xff] }
 0x186   : > { %v2439_v57 = vadd.f32 %v2438_v52, %v1927_v46  ;;  %v1430_v46 = vsub.f32 %v406_v39, %v918_v40  ;;  %v1941_v52 = vand.u32 2147483647, %v1429_v41  ;;  %v419_v40 = vld [vmem:[%s3242_s18 + $0x5e8] sm:$0xff] }
 0x187   : > { %v931_v41 = vld [vmem:[%s3236_s6 + $0x5e8] sm:$0xff] }
 0x188   : > { %v2440_v62 = vadd.f32 %v2439_v57, %v1928_v51  ;;  %v1431_v51 = vsub.f32 %v407_v44, %v919_v45  ;;  %v1942_v57 = vand.u32 2147483647, %v1430_v46  ;;  %v420_v45 = vld [vmem:[%s3242_s18 + $0x5f0] sm:$0xff] }
 0x189   : > { %v932_v46 = vld [vmem:[%s3236_s6 + $0x5f0] sm:$0xff] }
 0x18a   : > { %v2441_v3 = vadd.f32 %v2440_v62, %v1929_v56  ;;  %v1432_v56 = vsub.f32 %v408_v49, %v920_v50  ;;  %v1943_v62 = vand.u32 2147483647, %v1431_v51  ;;  %v421_v50 = vld [vmem:[%s3242_s18 + $0x5f8] sm:$0xff] }
 0x18b   : > { %v933_v51 = vld [vmem:[%s3236_s6 + $0x5f8] sm:$0xff] }
 0x18c   : > { %v2442_v8 = vadd.f32 %v2441_v3, %v1930_v61  ;;  %v1433_v61 = vsub.f32 %v409_v54, %v921_v55  ;;  %v1944_v3 = vand.u32 2147483647, %v1432_v56  ;;  %v422_v55 = vld [vmem:[%s3242_s18 + $0x600] sm:$0xff] }
 0x18d   : > { %v934_v56 = vld [vmem:[%s3236_s6 + $0x600] sm:$0xff] }
 0x18e   : > { %v2443_v13 = vadd.f32 %v2442_v8, %v1931_v2  ;;  %v1434_v2 = vsub.f32 %v410_v59, %v922_v60  ;;  %v1945_v8 = vand.u32 2147483647, %v1433_v61  ;;  %v423_v60 = vld [vmem:[%s3242_s18 + $0x608] sm:$0xff] }
 0x18f   : > { %v935_v61 = vld [vmem:[%s3236_s6 + $0x608] sm:$0xff] }
 0x190   : > { %v2444_v18 = vadd.f32 %v2443_v13, %v1932_v7  ;;  %v1435_v7 = vsub.f32 %v411_v0, %v923_v1  ;;  %v1946_v13 = vand.u32 2147483647, %v1434_v2  ;;  %v424_v1 = vld [vmem:[%s3242_s18 + $0x610] sm:$0xff] }
 0x191   : > { %v936_v2 = vld [vmem:[%s3236_s6 + $0x610] sm:$0xff] }
 0x192   : > { %v2445_v23 = vadd.f32 %v2444_v18, %v1933_v12  ;;  %v1436_v12 = vsub.f32 %v412_v5, %v924_v6  ;;  %v1947_v18 = vand.u32 2147483647, %v1435_v7  ;;  %v425_v6 = vld [vmem:[%s3242_s18 + $0x618] sm:$0xff] }
 0x193   : > { %v937_v7 = vld [vmem:[%s3236_s6 + $0x618] sm:$0xff] }
 0x194   : > { %v2446_v28 = vadd.f32 %v2445_v23, %v1934_v17  ;;  %v1437_v17 = vsub.f32 %v413_v10, %v925_v11  ;;  %v1948_v23 = vand.u32 2147483647, %v1436_v12  ;;  %v426_v11 = vld [vmem:[%s3242_s18 + $0x620] sm:$0xff] }
 0x195   : > { %v938_v12 = vld [vmem:[%s3236_s6 + $0x620] sm:$0xff] }
 0x196   : > { %v2447_v33 = vadd.f32 %v2446_v28, %v1935_v22  ;;  %v1438_v22 = vsub.f32 %v414_v15, %v926_v16  ;;  %v1949_v28 = vand.u32 2147483647, %v1437_v17  ;;  %v427_v16 = vld [vmem:[%s3242_s18 + $0x628] sm:$0xff] }
 0x197   : > { %v939_v17 = vld [vmem:[%s3236_s6 + $0x628] sm:$0xff] }
 0x198   : > { %v2448_v38 = vadd.f32 %v2447_v33, %v1936_v27  ;;  %v1439_v27 = vsub.f32 %v415_v20, %v927_v21  ;;  %v1950_v33 = vand.u32 2147483647, %v1438_v22  ;;  %v428_v21 = vld [vmem:[%s3242_s18 + $0x630] sm:$0xff] }
 0x199   : > { %v940_v22 = vld [vmem:[%s3236_s6 + $0x630] sm:$0xff] }
 0x19a   : > { %v2449_v43 = vadd.f32 %v2448_v38, %v1937_v32  ;;  %v1440_v32 = vsub.f32 %v416_v25, %v928_v26  ;;  %v1951_v38 = vand.u32 2147483647, %v1439_v27  ;;  %v429_v26 = vld [vmem:[%s3242_s18 + $0x638] sm:$0xff] }
 0x19b   : > { %v941_v27 = vld [vmem:[%s3236_s6 + $0x638] sm:$0xff] }
 0x19c   : > { %v2450_v48 = vadd.f32 %v2449_v43, %v1938_v37  ;;  %v1441_v37 = vsub.f32 %v417_v30, %v929_v31  ;;  %v1952_v43 = vand.u32 2147483647, %v1440_v32  ;;  %v430_v31 = vld [vmem:[%s3242_s18 + $0x640] sm:$0xff] }
 0x19d   : > { %v942_v32 = vld [vmem:[%s3236_s6 + $0x640] sm:$0xff] }
 0x19e   : > { %v2451_v53 = vadd.f32 %v2450_v48, %v1939_v42  ;;  %v1442_v42 = vsub.f32 %v418_v35, %v930_v36  ;;  %v1953_v48 = vand.u32 2147483647, %v1441_v37  ;;  %v431_v36 = vld [vmem:[%s3242_s18 + $0x648] sm:$0xff] }
 0x19f   : > { %v943_v37 = vld [vmem:[%s3236_s6 + $0x648] sm:$0xff] }
 0x1a0   : > { %v2452_v58 = vadd.f32 %v2451_v53, %v1940_v47  ;;  %v1443_v47 = vsub.f32 %v419_v40, %v931_v41  ;;  %v1954_v53 = vand.u32 2147483647, %v1442_v42  ;;  %v432_v41 = vld [vmem:[%s3242_s18 + $0x650] sm:$0xff] }
 0x1a1   : > { %v944_v42 = vld [vmem:[%s3236_s6 + $0x650] sm:$0xff] }
 0x1a2   : > { %v2453_v63 = vadd.f32 %v2452_v58, %v1941_v52  ;;  %v1444_v52 = vsub.f32 %v420_v45, %v932_v46  ;;  %v1955_v58 = vand.u32 2147483647, %v1443_v47  ;;  %v433_v46 = vld [vmem:[%s3242_s18 + $0x658] sm:$0xff] }
 0x1a3   : > { %v945_v47 = vld [vmem:[%s3236_s6 + $0x658] sm:$0xff] }
 0x1a4   : > { %v2454_v4 = vadd.f32 %v2453_v63, %v1942_v57  ;;  %v1445_v57 = vsub.f32 %v421_v50, %v933_v51  ;;  %v1956_v63 = vand.u32 2147483647, %v1444_v52  ;;  %v434_v51 = vld [vmem:[%s3242_s18 + $0x660] sm:$0xff] }
 0x1a5   : > { %v946_v52 = vld [vmem:[%s3236_s6 + $0x660] sm:$0xff] }
 0x1a6   : > { %v2455_v9 = vadd.f32 %v2454_v4, %v1943_v62  ;;  %v1446_v62 = vsub.f32 %v422_v55, %v934_v56  ;;  %v1957_v4 = vand.u32 2147483647, %v1445_v57  ;;  %v435_v56 = vld [vmem:[%s3242_s18 + $0x668] sm:$0xff] }
 0x1a7   : > { %v947_v57 = vld [vmem:[%s3236_s6 + $0x668] sm:$0xff] }
 0x1a8   : > { %v2456_v14 = vadd.f32 %v2455_v9, %v1944_v3  ;;  %v1447_v3 = vsub.f32 %v423_v60, %v935_v61  ;;  %v1958_v9 = vand.u32 2147483647, %v1446_v62  ;;  %v436_v61 = vld [vmem:[%s3242_s18 + $0x670] sm:$0xff] }
 0x1a9   : > { %v948_v62 = vld [vmem:[%s3236_s6 + $0x670] sm:$0xff] }
 0x1aa   : > { %v2457_v19 = vadd.f32 %v2456_v14, %v1945_v8  ;;  %v1448_v8 = vsub.f32 %v424_v1, %v936_v2  ;;  %v1959_v14 = vand.u32 2147483647, %v1447_v3  ;;  %v437_v2 = vld [vmem:[%s3242_s18 + $0x678] sm:$0xff] }
 0x1ab   : > { %v949_v3 = vld [vmem:[%s3236_s6 + $0x678] sm:$0xff] }
 0x1ac   : > { %v2458_v24 = vadd.f32 %v2457_v19, %v1946_v13  ;;  %v1449_v13 = vsub.f32 %v425_v6, %v937_v7  ;;  %v1960_v19 = vand.u32 2147483647, %v1448_v8  ;;  %v438_v7 = vld [vmem:[%s3242_s18 + $0x680] sm:$0xff] }
 0x1ad   : > { %v950_v8 = vld [vmem:[%s3236_s6 + $0x680] sm:$0xff] }
 0x1ae   : > { %v2459_v29 = vadd.f32 %v2458_v24, %v1947_v18  ;;  %v1450_v18 = vsub.f32 %v426_v11, %v938_v12  ;;  %v1961_v24 = vand.u32 2147483647, %v1449_v13  ;;  %v439_v12 = vld [vmem:[%s3242_s18 + $0x688] sm:$0xff] }
 0x1af   : > { %v951_v13 = vld [vmem:[%s3236_s6 + $0x688] sm:$0xff] }
 0x1b0   : > { %v2460_v34 = vadd.f32 %v2459_v29, %v1948_v23  ;;  %v1451_v23 = vsub.f32 %v427_v16, %v939_v17  ;;  %v1962_v29 = vand.u32 2147483647, %v1450_v18  ;;  %v440_v17 = vld [vmem:[%s3242_s18 + $0x690] sm:$0xff] }
 0x1b1   : > { %v952_v18 = vld [vmem:[%s3236_s6 + $0x690] sm:$0xff] }
 0x1b2   : > { %v2461_v39 = vadd.f32 %v2460_v34, %v1949_v28  ;;  %v1452_v28 = vsub.f32 %v428_v21, %v940_v22  ;;  %v1963_v34 = vand.u32 2147483647, %v1451_v23  ;;  %v441_v22 = vld [vmem:[%s3242_s18 + $0x698] sm:$0xff] }
 0x1b3   : > { %v953_v23 = vld [vmem:[%s3236_s6 + $0x698] sm:$0xff] }
 0x1b4   : > { %v2462_v44 = vadd.f32 %v2461_v39, %v1950_v33  ;;  %v1453_v33 = vsub.f32 %v429_v26, %v941_v27  ;;  %v1964_v39 = vand.u32 2147483647, %v1452_v28  ;;  %v442_v27 = vld [vmem:[%s3242_s18 + $0x6a0] sm:$0xff] }
 0x1b5   : > { %v954_v28 = vld [vmem:[%s3236_s6 + $0x6a0] sm:$0xff] }
 0x1b6   : > { %v2463_v49 = vadd.f32 %v2462_v44, %v1951_v38  ;;  %v1454_v38 = vsub.f32 %v430_v31, %v942_v32  ;;  %v1965_v44 = vand.u32 2147483647, %v1453_v33  ;;  %v443_v32 = vld [vmem:[%s3242_s18 + $0x6a8] sm:$0xff] }
 0x1b7   : > { %v955_v33 = vld [vmem:[%s3236_s6 + $0x6a8] sm:$0xff] }
 0x1b8   : > { %v2464_v54 = vadd.f32 %v2463_v49, %v1952_v43  ;;  %v1455_v43 = vsub.f32 %v431_v36, %v943_v37  ;;  %v1966_v49 = vand.u32 2147483647, %v1454_v38  ;;  %v444_v37 = vld [vmem:[%s3242_s18 + $0x6b0] sm:$0xff] }
 0x1b9   : > { %v956_v38 = vld [vmem:[%s3236_s6 + $0x6b0] sm:$0xff] }
 0x1ba   : > { %v2465_v59 = vadd.f32 %v2464_v54, %v1953_v48  ;;  %v1456_v48 = vsub.f32 %v432_v41, %v944_v42  ;;  %v1967_v54 = vand.u32 2147483647, %v1455_v43  ;;  %v445_v42 = vld [vmem:[%s3242_s18 + $0x6b8] sm:$0xff] }
 0x1bb   : > { %v957_v43 = vld [vmem:[%s3236_s6 + $0x6b8] sm:$0xff] }
 0x1bc   : > { %v2466_v0 = vadd.f32 %v2465_v59, %v1954_v53  ;;  %v1457_v53 = vsub.f32 %v433_v46, %v945_v47  ;;  %v1968_v59 = vand.u32 2147483647, %v1456_v48  ;;  %v446_v47 = vld [vmem:[%s3242_s18 + $0x6c0] sm:$0xff] }
 0x1bd   : > { %v958_v48 = vld [vmem:[%s3236_s6 + $0x6c0] sm:$0xff] }
 0x1be   : > { %v2467_v5 = vadd.f32 %v2466_v0, %v1955_v58  ;;  %v1458_v58 = vsub.f32 %v434_v51, %v946_v52  ;;  %v1969_v0 = vand.u32 2147483647, %v1457_v53  ;;  %v447_v52 = vld [vmem:[%s3242_s18 + $0x6c8] sm:$0xff] }
 0x1bf   : > { %v959_v53 = vld [vmem:[%s3236_s6 + $0x6c8] sm:$0xff] }
 0x1c0   : > { %v2468_v10 = vadd.f32 %v2467_v5, %v1956_v63  ;;  %v1459_v63 = vsub.f32 %v435_v56, %v947_v57  ;;  %v1970_v5 = vand.u32 2147483647, %v1458_v58  ;;  %v448_v57 = vld [vmem:[%s3242_s18 + $0x6d0] sm:$0xff] }
 0x1c1   : > { %v960_v58 = vld [vmem:[%s3236_s6 + $0x6d0] sm:$0xff] }
 0x1c2   : > { %v2469_v15 = vadd.f32 %v2468_v10, %v1957_v4  ;;  %v1460_v4 = vsub.f32 %v436_v61, %v948_v62  ;;  %v1971_v10 = vand.u32 2147483647, %v1459_v63  ;;  %v449_v62 = vld [vmem:[%s3242_s18 + $0x6d8] sm:$0xff] }
 0x1c3   : > { %v961_v63 = vld [vmem:[%s3236_s6 + $0x6d8] sm:$0xff] }
 0x1c4   : > { %v2470_v20 = vadd.f32 %v2469_v15, %v1958_v9  ;;  %v1461_v9 = vsub.f32 %v437_v2, %v949_v3  ;;  %v1972_v15 = vand.u32 2147483647, %v1460_v4  ;;  %v450_v3 = vld [vmem:[%s3242_s18 + $0x6e0] sm:$0xff] }
 0x1c5   : > { %v962_v4 = vld [vmem:[%s3236_s6 + $0x6e0] sm:$0xff] }
 0x1c6   : > { %v2471_v25 = vadd.f32 %v2470_v20, %v1959_v14  ;;  %v1462_v14 = vsub.f32 %v438_v7, %v950_v8  ;;  %v1973_v20 = vand.u32 2147483647, %v1461_v9  ;;  %v451_v8 = vld [vmem:[%s3242_s18 + $0x6e8] sm:$0xff] }
 0x1c7   : > { %v963_v9 = vld [vmem:[%s3236_s6 + $0x6e8] sm:$0xff] }
 0x1c8   : > { %v2472_v30 = vadd.f32 %v2471_v25, %v1960_v19  ;;  %v1463_v19 = vsub.f32 %v439_v12, %v951_v13  ;;  %v1974_v25 = vand.u32 2147483647, %v1462_v14  ;;  %v452_v13 = vld [vmem:[%s3242_s18 + $0x6f0] sm:$0xff] }
 0x1c9   : > { %v964_v14 = vld [vmem:[%s3236_s6 + $0x6f0] sm:$0xff] }
 0x1ca   : > { %v2473_v35 = vadd.f32 %v2472_v30, %v1961_v24  ;;  %v1464_v24 = vsub.f32 %v440_v17, %v952_v18  ;;  %v1975_v30 = vand.u32 2147483647, %v1463_v19  ;;  %v453_v18 = vld [vmem:[%s3242_s18 + $0x6f8] sm:$0xff] }
 0x1cb   : > { %v965_v19 = vld [vmem:[%s3236_s6 + $0x6f8] sm:$0xff] }
 0x1cc   : > { %v2474_v40 = vadd.f32 %v2473_v35, %v1962_v29  ;;  %v1465_v29 = vsub.f32 %v441_v22, %v953_v23  ;;  %v1976_v35 = vand.u32 2147483647, %v1464_v24  ;;  %v454_v23 = vld [vmem:[%s3242_s18 + $0x700] sm:$0xff] }
 0x1cd   : > { %v966_v24 = vld [vmem:[%s3236_s6 + $0x700] sm:$0xff] }
 0x1ce   : > { %v2475_v45 = vadd.f32 %v2474_v40, %v1963_v34  ;;  %v1466_v34 = vsub.f32 %v442_v27, %v954_v28  ;;  %v1977_v40 = vand.u32 2147483647, %v1465_v29  ;;  %v455_v28 = vld [vmem:[%s3242_s18 + $0x708] sm:$0xff] }
 0x1cf   : > { %v967_v29 = vld [vmem:[%s3236_s6 + $0x708] sm:$0xff] }
 0x1d0   : > { %v2476_v50 = vadd.f32 %v2475_v45, %v1964_v39  ;;  %v1467_v39 = vsub.f32 %v443_v32, %v955_v33  ;;  %v1978_v45 = vand.u32 2147483647, %v1466_v34  ;;  %v456_v33 = vld [vmem:[%s3242_s18 + $0x710] sm:$0xff] }
 0x1d1   : > { %v968_v34 = vld [vmem:[%s3236_s6 + $0x710] sm:$0xff] }
 0x1d2   : > { %v2477_v55 = vadd.f32 %v2476_v50, %v1965_v44  ;;  %v1468_v44 = vsub.f32 %v444_v37, %v956_v38  ;;  %v1979_v50 = vand.u32 2147483647, %v1467_v39  ;;  %v457_v38 = vld [vmem:[%s3242_s18 + $0x718] sm:$0xff] }
 0x1d3   : > { %v969_v39 = vld [vmem:[%s3236_s6 + $0x718] sm:$0xff] }
 0x1d4   : > { %v2478_v60 = vadd.f32 %v2477_v55, %v1966_v49  ;;  %v1469_v49 = vsub.f32 %v445_v42, %v957_v43  ;;  %v1980_v55 = vand.u32 2147483647, %v1468_v44  ;;  %v458_v43 = vld [vmem:[%s3242_s18 + $0x720] sm:$0xff] }
 0x1d5   : > { %v970_v44 = vld [vmem:[%s3236_s6 + $0x720] sm:$0xff] }
 0x1d6   : > { %v2479_v1 = vadd.f32 %v2478_v60, %v1967_v54  ;;  %v1470_v54 = vsub.f32 %v446_v47, %v958_v48  ;;  %v1981_v60 = vand.u32 2147483647, %v1469_v49  ;;  %v459_v48 = vld [vmem:[%s3242_s18 + $0x728] sm:$0xff] }
 0x1d7   : > { %v971_v49 = vld [vmem:[%s3236_s6 + $0x728] sm:$0xff] }
 0x1d8   : > { %v2480_v6 = vadd.f32 %v2479_v1, %v1968_v59  ;;  %v1471_v59 = vsub.f32 %v447_v52, %v959_v53  ;;  %v1982_v1 = vand.u32 2147483647, %v1470_v54  ;;  %v460_v53 = vld [vmem:[%s3242_s18 + $0x730] sm:$0xff] }
 0x1d9   : > { %v972_v54 = vld [vmem:[%s3236_s6 + $0x730] sm:$0xff] }
 0x1da   : > { %v2481_v11 = vadd.f32 %v2480_v6, %v1969_v0  ;;  %v1472_v0 = vsub.f32 %v448_v57, %v960_v58  ;;  %v1983_v6 = vand.u32 2147483647, %v1471_v59  ;;  %v461_v58 = vld [vmem:[%s3242_s18 + $0x738] sm:$0xff] }
 0x1db   : > { %v973_v59 = vld [vmem:[%s3236_s6 + $0x738] sm:$0xff] }
 0x1dc   : > { %v2482_v16 = vadd.f32 %v2481_v11, %v1970_v5  ;;  %v1473_v5 = vsub.f32 %v449_v62, %v961_v63  ;;  %v1984_v11 = vand.u32 2147483647, %v1472_v0  ;;  %v462_v63 = vld [vmem:[%s3242_s18 + $0x740] sm:$0xff] }
 0x1dd   : > { %v974_v0 = vld [vmem:[%s3236_s6 + $0x740] sm:$0xff] }
 0x1de   : > { %v2483_v21 = vadd.f32 %v2482_v16, %v1971_v10  ;;  %v1474_v10 = vsub.f32 %v450_v3, %v962_v4  ;;  %v1985_v16 = vand.u32 2147483647, %v1473_v5  ;;  %v463_v4 = vld [vmem:[%s3242_s18 + $0x748] sm:$0xff] }
 0x1df   : > { %v975_v5 = vld [vmem:[%s3236_s6 + $0x748] sm:$0xff] }
 0x1e0   : > { %v2484_v26 = vadd.f32 %v2483_v21, %v1972_v15  ;;  %v1475_v15 = vsub.f32 %v451_v8, %v963_v9  ;;  %v1986_v21 = vand.u32 2147483647, %v1474_v10  ;;  %v464_v9 = vld [vmem:[%s3242_s18 + $0x750] sm:$0xff] }
 0x1e1   : > { %v976_v10 = vld [vmem:[%s3236_s6 + $0x750] sm:$0xff] }
 0x1e2   : > { %v2485_v31 = vadd.f32 %v2484_v26, %v1973_v20  ;;  %v1476_v20 = vsub.f32 %v452_v13, %v964_v14  ;;  %v1987_v26 = vand.u32 2147483647, %v1475_v15  ;;  %v465_v14 = vld [vmem:[%s3242_s18 + $0x758] sm:$0xff] }
 0x1e3   : > { %v977_v15 = vld [vmem:[%s3236_s6 + $0x758] sm:$0xff] }
 0x1e4   : > { %v2486_v36 = vadd.f32 %v2485_v31, %v1974_v25  ;;  %v1477_v25 = vsub.f32 %v453_v18, %v965_v19  ;;  %v1988_v31 = vand.u32 2147483647, %v1476_v20  ;;  %v466_v19 = vld [vmem:[%s3242_s18 + $0x760] sm:$0xff] }
 0x1e5   : > { %v978_v20 = vld [vmem:[%s3236_s6 + $0x760] sm:$0xff] }
 0x1e6   : > { %v2487_v41 = vadd.f32 %v2486_v36, %v1975_v30  ;;  %v1478_v30 = vsub.f32 %v454_v23, %v966_v24  ;;  %v1989_v36 = vand.u32 2147483647, %v1477_v25  ;;  %v467_v24 = vld [vmem:[%s3242_s18 + $0x768] sm:$0xff] }
 0x1e7   : > { %v979_v25 = vld [vmem:[%s3236_s6 + $0x768] sm:$0xff] }
 0x1e8   : > { %v2488_v46 = vadd.f32 %v2487_v41, %v1976_v35  ;;  %v1479_v35 = vsub.f32 %v455_v28, %v967_v29  ;;  %v1990_v41 = vand.u32 2147483647, %v1478_v30  ;;  %v468_v29 = vld [vmem:[%s3242_s18 + $0x770] sm:$0xff] }
 0x1e9   : > { %v980_v30 = vld [vmem:[%s3236_s6 + $0x770] sm:$0xff] }
 0x1ea   : > { %v2489_v51 = vadd.f32 %v2488_v46, %v1977_v40  ;;  %v1480_v40 = vsub.f32 %v456_v33, %v968_v34  ;;  %v1991_v46 = vand.u32 2147483647, %v1479_v35  ;;  %v469_v34 = vld [vmem:[%s3242_s18 + $0x778] sm:$0xff] }
 0x1eb   : > { %v981_v35 = vld [vmem:[%s3236_s6 + $0x778] sm:$0xff] }
 0x1ec   : > { %v2490_v56 = vadd.f32 %v2489_v51, %v1978_v45  ;;  %v1481_v45 = vsub.f32 %v457_v38, %v969_v39  ;;  %v1992_v51 = vand.u32 2147483647, %v1480_v40  ;;  %v470_v39 = vld [vmem:[%s3242_s18 + $0x780] sm:$0xff] }
 0x1ed   : > { %v982_v40 = vld [vmem:[%s3236_s6 + $0x780] sm:$0xff] }
 0x1ee   : > { %v2491_v61 = vadd.f32 %v2490_v56, %v1979_v50  ;;  %v1482_v50 = vsub.f32 %v458_v43, %v970_v44  ;;  %v1993_v56 = vand.u32 2147483647, %v1481_v45  ;;  %v471_v44 = vld [vmem:[%s3242_s18 + $0x788] sm:$0xff] }
 0x1ef   : > { %v983_v45 = vld [vmem:[%s3236_s6 + $0x788] sm:$0xff] }
 0x1f0   : > { %v2492_v2 = vadd.f32 %v2491_v61, %v1980_v55  ;;  %v1483_v55 = vsub.f32 %v459_v48, %v971_v49  ;;  %v1994_v61 = vand.u32 2147483647, %v1482_v50  ;;  %v472_v49 = vld [vmem:[%s3242_s18 + $0x790] sm:$0xff] }
 0x1f1   : > { %v984_v50 = vld [vmem:[%s3236_s6 + $0x790] sm:$0xff] }
 0x1f2   : > { %v2493_v7 = vadd.f32 %v2492_v2, %v1981_v60  ;;  %v1484_v60 = vsub.f32 %v460_v53, %v972_v54  ;;  %v1995_v2 = vand.u32 2147483647, %v1483_v55  ;;  %v473_v54 = vld [vmem:[%s3242_s18 + $0x798] sm:$0xff] }
 0x1f3   : > { %v985_v55 = vld [vmem:[%s3236_s6 + $0x798] sm:$0xff] }
 0x1f4   : > { %v2494_v12 = vadd.f32 %v2493_v7, %v1982_v1  ;;  %v1485_v1 = vsub.f32 %v461_v58, %v973_v59  ;;  %v1996_v7 = vand.u32 2147483647, %v1484_v60  ;;  %v474_v59 = vld [vmem:[%s3242_s18 + $0x7a0] sm:$0xff] }
 0x1f5   : > { %v986_v60 = vld [vmem:[%s3236_s6 + $0x7a0] sm:$0xff] }
 0x1f6   : > { %v2495_v17 = vadd.f32 %v2494_v12, %v1983_v6  ;;  %v1486_v6 = vsub.f32 %v462_v63, %v974_v0  ;;  %v1997_v12 = vand.u32 2147483647, %v1485_v1  ;;  %v475_v0 = vld [vmem:[%s3242_s18 + $0x7a8] sm:$0xff] }
 0x1f7   : > { %v987_v1 = vld [vmem:[%s3236_s6 + $0x7a8] sm:$0xff] }
 0x1f8   : > { %v2496_v22 = vadd.f32 %v2495_v17, %v1984_v11  ;;  %v1487_v11 = vsub.f32 %v463_v4, %v975_v5  ;;  %v1998_v17 = vand.u32 2147483647, %v1486_v6  ;;  %v476_v5 = vld [vmem:[%s3242_s18 + $0x7b0] sm:$0xff] }
 0x1f9   : > { %v988_v6 = vld [vmem:[%s3236_s6 + $0x7b0] sm:$0xff] }
 0x1fa   : > { %v2497_v27 = vadd.f32 %v2496_v22, %v1985_v16  ;;  %v1488_v16 = vsub.f32 %v464_v9, %v976_v10  ;;  %v1999_v22 = vand.u32 2147483647, %v1487_v11  ;;  %v477_v10 = vld [vmem:[%s3242_s18 + $0x7b8] sm:$0xff] }
 0x1fb   : > { %v989_v11 = vld [vmem:[%s3236_s6 + $0x7b8] sm:$0xff] }
 0x1fc   : > { %v2498_v32 = vadd.f32 %v2497_v27, %v1986_v21  ;;  %v1489_v21 = vsub.f32 %v465_v14, %v977_v15  ;;  %v2000_v27 = vand.u32 2147483647, %v1488_v16  ;;  %v478_v15 = vld [vmem:[%s3242_s18 + $0x7c0] sm:$0xff] }
 0x1fd   : > { %v990_v16 = vld [vmem:[%s3236_s6 + $0x7c0] sm:$0xff] }
 0x1fe   : > { %v2499_v37 = vadd.f32 %v2498_v32, %v1987_v26  ;;  %v1490_v26 = vsub.f32 %v466_v19, %v978_v20  ;;  %v2001_v32 = vand.u32 2147483647, %v1489_v21  ;;  %v479_v20 = vld [vmem:[%s3242_s18 + $0x7c8] sm:$0xff] }
 0x1ff   : > { %v991_v21 = vld [vmem:[%s3236_s6 + $0x7c8] sm:$0xff] }
 0x200   : > { %v2500_v42 = vadd.f32 %v2499_v37, %v1988_v31  ;;  %v1491_v31 = vsub.f32 %v467_v24, %v979_v25  ;;  %v2002_v37 = vand.u32 2147483647, %v1490_v26  ;;  %v480_v25 = vld [vmem:[%s3242_s18 + $0x7d0] sm:$0xff] }
 0x201   : > { %v992_v26 = vld [vmem:[%s3236_s6 + $0x7d0] sm:$0xff] }
 0x202   : > { %v2501_v47 = vadd.f32 %v2500_v42, %v1989_v36  ;;  %v1492_v36 = vsub.f32 %v468_v29, %v980_v30  ;;  %v2003_v42 = vand.u32 2147483647, %v1491_v31  ;;  %v481_v30 = vld [vmem:[%s3242_s18 + $0x7d8] sm:$0xff] }
 0x203   : > { %v993_v31 = vld [vmem:[%s3236_s6 + $0x7d8] sm:$0xff] }
 0x204   : > { %v2502_v52 = vadd.f32 %v2501_v47, %v1990_v41  ;;  %v1493_v41 = vsub.f32 %v469_v34, %v981_v35  ;;  %v2004_v47 = vand.u32 2147483647, %v1492_v36  ;;  %v482_v35 = vld [vmem:[%s3242_s18 + $0x7e0] sm:$0xff] }
 0x205   : > { %v994_v36 = vld [vmem:[%s3236_s6 + $0x7e0] sm:$0xff] }
 0x206   : > { %v2503_v57 = vadd.f32 %v2502_v52, %v1991_v46  ;;  %v1494_v46 = vsub.f32 %v470_v39, %v982_v40  ;;  %v2005_v52 = vand.u32 2147483647, %v1493_v41  ;;  %v483_v40 = vld [vmem:[%s3242_s18 + $0x7e8] sm:$0xff] }
 0x207   : > { %v995_v41 = vld [vmem:[%s3236_s6 + $0x7e8] sm:$0xff] }
 0x208   : > { %v2504_v62 = vadd.f32 %v2503_v57, %v1992_v51  ;;  %v1495_v51 = vsub.f32 %v471_v44, %v983_v45  ;;  %v2006_v57 = vand.u32 2147483647, %v1494_v46  ;;  %v484_v45 = vld [vmem:[%s3242_s18 + $0x7f0] sm:$0xff] }
 0x209   : > { %v996_v46 = vld [vmem:[%s3236_s6 + $0x7f0] sm:$0xff] }
 0x20a   : > { %v2505_v3 = vadd.f32 %v2504_v62, %v1993_v56  ;;  %v1496_v56 = vsub.f32 %v472_v49, %v984_v50  ;;  %v2007_v62 = vand.u32 2147483647, %v1495_v51  ;;  %v485_v50 = vld [vmem:[%s3242_s18 + $0x7f8] sm:$0xff] }
 0x20b   : > { %v997_v51 = vld [vmem:[%s3236_s6 + $0x7f8] sm:$0xff] }
 0x20c   : > { %v2506_v8 = vadd.f32 %v2505_v3, %v1994_v61  ;;  %v1497_v61 = vsub.f32 %v473_v54, %v985_v55  ;;  %v2008_v3 = vand.u32 2147483647, %v1496_v56  ;;  %v486_v55 = vld [vmem:[%s3242_s18 + $0x800] sm:$0xff] }
 0x20d   : > { %v998_v56 = vld [vmem:[%s3236_s6 + $0x800] sm:$0xff] }
 0x20e   : > { %v2507_v13 = vadd.f32 %v2506_v8, %v1995_v2  ;;  %v1498_v2 = vsub.f32 %v474_v59, %v986_v60  ;;  %v2009_v8 = vand.u32 2147483647, %v1497_v61  ;;  %v487_v60 = vld [vmem:[%s3242_s18 + $0x808] sm:$0xff] }
 0x20f   : > { %v999_v61 = vld [vmem:[%s3236_s6 + $0x808] sm:$0xff] }
 0x210   : > { %v2508_v18 = vadd.f32 %v2507_v13, %v1996_v7  ;;  %v1499_v7 = vsub.f32 %v475_v0, %v987_v1  ;;  %v2010_v13 = vand.u32 2147483647, %v1498_v2  ;;  %v488_v1 = vld [vmem:[%s3242_s18 + $0x810] sm:$0xff] }
 0x211   : > { %v1000_v2 = vld [vmem:[%s3236_s6 + $0x810] sm:$0xff] }
 0x212   : > { %v2509_v23 = vadd.f32 %v2508_v18, %v1997_v12  ;;  %v1500_v12 = vsub.f32 %v476_v5, %v988_v6  ;;  %v2011_v18 = vand.u32 2147483647, %v1499_v7  ;;  %v489_v6 = vld [vmem:[%s3242_s18 + $0x818] sm:$0xff] }
 0x213   : > { %v1001_v7 = vld [vmem:[%s3236_s6 + $0x818] sm:$0xff] }
 0x214   : > { %v2510_v28 = vadd.f32 %v2509_v23, %v1998_v17  ;;  %v1501_v17 = vsub.f32 %v477_v10, %v989_v11  ;;  %v2012_v23 = vand.u32 2147483647, %v1500_v12  ;;  %v490_v11 = vld [vmem:[%s3242_s18 + $0x820] sm:$0xff] }
 0x215   : > { %v1002_v12 = vld [vmem:[%s3236_s6 + $0x820] sm:$0xff] }
 0x216   : > { %v2511_v33 = vadd.f32 %v2510_v28, %v1999_v22  ;;  %v1502_v22 = vsub.f32 %v478_v15, %v990_v16  ;;  %v2013_v28 = vand.u32 2147483647, %v1501_v17  ;;  %v491_v16 = vld [vmem:[%s3242_s18 + $0x828] sm:$0xff] }
 0x217   : > { %v1003_v17 = vld [vmem:[%s3236_s6 + $0x828] sm:$0xff] }
 0x218   : > { %v2512_v38 = vadd.f32 %v2511_v33, %v2000_v27  ;;  %v1503_v27 = vsub.f32 %v479_v20, %v991_v21  ;;  %v2014_v33 = vand.u32 2147483647, %v1502_v22  ;;  %v492_v21 = vld [vmem:[%s3242_s18 + $0x830] sm:$0xff] }
 0x219   : > { %v1004_v22 = vld [vmem:[%s3236_s6 + $0x830] sm:$0xff] }
 0x21a   : > { %v2513_v43 = vadd.f32 %v2512_v38, %v2001_v32  ;;  %v1504_v32 = vsub.f32 %v480_v25, %v992_v26  ;;  %v2015_v38 = vand.u32 2147483647, %v1503_v27  ;;  %v493_v26 = vld [vmem:[%s3242_s18 + $0x838] sm:$0xff] }
 0x21b   : > { %v1005_v27 = vld [vmem:[%s3236_s6 + $0x838] sm:$0xff] }
 0x21c   : > { %v2514_v48 = vadd.f32 %v2513_v43, %v2002_v37  ;;  %v1505_v37 = vsub.f32 %v481_v30, %v993_v31  ;;  %v2016_v43 = vand.u32 2147483647, %v1504_v32  ;;  %v494_v31 = vld [vmem:[%s3242_s18 + $0x840] sm:$0xff] }
 0x21d   : > { %v1006_v32 = vld [vmem:[%s3236_s6 + $0x840] sm:$0xff] }
 0x21e   : > { %v2515_v53 = vadd.f32 %v2514_v48, %v2003_v42  ;;  %v1506_v42 = vsub.f32 %v482_v35, %v994_v36  ;;  %v2017_v48 = vand.u32 2147483647, %v1505_v37  ;;  %v495_v36 = vld [vmem:[%s3242_s18 + $0x848] sm:$0xff] }
 0x21f   : > { %v1007_v37 = vld [vmem:[%s3236_s6 + $0x848] sm:$0xff] }
 0x220   : > { %v2516_v58 = vadd.f32 %v2515_v53, %v2004_v47  ;;  %v1507_v47 = vsub.f32 %v483_v40, %v995_v41  ;;  %v2018_v53 = vand.u32 2147483647, %v1506_v42  ;;  %v496_v41 = vld [vmem:[%s3242_s18 + $0x850] sm:$0xff] }
 0x221   : > { %v1008_v42 = vld [vmem:[%s3236_s6 + $0x850] sm:$0xff] }
 0x222   : > { %v2517_v63 = vadd.f32 %v2516_v58, %v2005_v52  ;;  %v1508_v52 = vsub.f32 %v484_v45, %v996_v46  ;;  %v2019_v58 = vand.u32 2147483647, %v1507_v47  ;;  %v497_v46 = vld [vmem:[%s3242_s18 + $0x858] sm:$0xff] }
 0x223   : > { %v1009_v47 = vld [vmem:[%s3236_s6 + $0x858] sm:$0xff] }
 0x224   : > { %v2518_v4 = vadd.f32 %v2517_v63, %v2006_v57  ;;  %v1509_v57 = vsub.f32 %v485_v50, %v997_v51  ;;  %v2020_v63 = vand.u32 2147483647, %v1508_v52  ;;  %v498_v51 = vld [vmem:[%s3242_s18 + $0x860] sm:$0xff] }
 0x225   : > { %v1010_v52 = vld [vmem:[%s3236_s6 + $0x860] sm:$0xff] }
 0x226   : > { %v2519_v9 = vadd.f32 %v2518_v4, %v2007_v62  ;;  %v1510_v62 = vsub.f32 %v486_v55, %v998_v56  ;;  %v2021_v4 = vand.u32 2147483647, %v1509_v57  ;;  %v499_v56 = vld [vmem:[%s3242_s18 + $0x868] sm:$0xff] }
 0x227   : > { %v1011_v57 = vld [vmem:[%s3236_s6 + $0x868] sm:$0xff] }
 0x228   : > { %v2520_v14 = vadd.f32 %v2519_v9, %v2008_v3  ;;  %v1511_v3 = vsub.f32 %v487_v60, %v999_v61  ;;  %v2022_v9 = vand.u32 2147483647, %v1510_v62  ;;  %v500_v61 = vld [vmem:[%s3242_s18 + $0x870] sm:$0xff] }
 0x229   : > { %v1012_v62 = vld [vmem:[%s3236_s6 + $0x870] sm:$0xff] }
 0x22a   : > { %v2521_v19 = vadd.f32 %v2520_v14, %v2009_v8  ;;  %v1512_v8 = vsub.f32 %v488_v1, %v1000_v2  ;;  %v2023_v14 = vand.u32 2147483647, %v1511_v3  ;;  %v501_v2 = vld [vmem:[%s3242_s18 + $0x878] sm:$0xff] }
 0x22b   : > { %v1013_v3 = vld [vmem:[%s3236_s6 + $0x878] sm:$0xff] }
 0x22c   : > { %v2522_v24 = vadd.f32 %v2521_v19, %v2010_v13  ;;  %v1513_v13 = vsub.f32 %v489_v6, %v1001_v7  ;;  %v2024_v19 = vand.u32 2147483647, %v1512_v8  ;;  %v502_v7 = vld [vmem:[%s3242_s18 + $0x880] sm:$0xff] }
 0x22d   : > { %v1014_v8 = vld [vmem:[%s3236_s6 + $0x880] sm:$0xff] }
 0x22e   : > { %v2523_v29 = vadd.f32 %v2522_v24, %v2011_v18  ;;  %v1514_v18 = vsub.f32 %v490_v11, %v1002_v12  ;;  %v2025_v24 = vand.u32 2147483647, %v1513_v13  ;;  %v503_v12 = vld [vmem:[%s3242_s18 + $0x888] sm:$0xff] }
 0x22f   : > { %v1015_v13 = vld [vmem:[%s3236_s6 + $0x888] sm:$0xff] }
 0x230   : > { %v2524_v34 = vadd.f32 %v2523_v29, %v2012_v23  ;;  %v1515_v23 = vsub.f32 %v491_v16, %v1003_v17  ;;  %v2026_v29 = vand.u32 2147483647, %v1514_v18  ;;  %v504_v17 = vld [vmem:[%s3242_s18 + $0x890] sm:$0xff] }
 0x231   : > { %v1016_v18 = vld [vmem:[%s3236_s6 + $0x890] sm:$0xff] }
 0x232   : > { %v2525_v39 = vadd.f32 %v2524_v34, %v2013_v28  ;;  %v1516_v28 = vsub.f32 %v492_v21, %v1004_v22  ;;  %v2027_v34 = vand.u32 2147483647, %v1515_v23  ;;  %v505_v22 = vld [vmem:[%s3242_s18 + $0x898] sm:$0xff] }
 0x233   : > { %v1017_v23 = vld [vmem:[%s3236_s6 + $0x898] sm:$0xff] }
 0x234   : > { %v2526_v44 = vadd.f32 %v2525_v39, %v2014_v33  ;;  %v1517_v33 = vsub.f32 %v493_v26, %v1005_v27  ;;  %v2028_v39 = vand.u32 2147483647, %v1516_v28  ;;  %v506_v27 = vld [vmem:[%s3242_s18 + $0x8a0] sm:$0xff] }
 0x235   : > { %v1018_v28 = vld [vmem:[%s3236_s6 + $0x8a0] sm:$0xff] }
 0x236   : > { %v2527_v49 = vadd.f32 %v2526_v44, %v2015_v38  ;;  %v1518_v38 = vsub.f32 %v494_v31, %v1006_v32  ;;  %v2029_v44 = vand.u32 2147483647, %v1517_v33  ;;  %v507_v32 = vld [vmem:[%s3242_s18 + $0x8a8] sm:$0xff] }
 0x237   : > { %v1019_v33 = vld [vmem:[%s3236_s6 + $0x8a8] sm:$0xff] }
 0x238   : > { %v2528_v54 = vadd.f32 %v2527_v49, %v2016_v43  ;;  %v1519_v43 = vsub.f32 %v495_v36, %v1007_v37  ;;  %v2030_v49 = vand.u32 2147483647, %v1518_v38  ;;  %v508_v37 = vld [vmem:[%s3242_s18 + $0x8b0] sm:$0xff] }
 0x239   : > { %v1020_v38 = vld [vmem:[%s3236_s6 + $0x8b0] sm:$0xff] }
 0x23a   : > { %v2529_v59 = vadd.f32 %v2528_v54, %v2017_v48  ;;  %v1520_v48 = vsub.f32 %v496_v41, %v1008_v42  ;;  %v2031_v54 = vand.u32 2147483647, %v1519_v43  ;;  %v509_v42 = vld [vmem:[%s3242_s18 + $0x8b8] sm:$0xff] }
 0x23b   : > { %v1021_v43 = vld [vmem:[%s3236_s6 + $0x8b8] sm:$0xff] }
 0x23c   : > { %v2530_v0 = vadd.f32 %v2529_v59, %v2018_v53  ;;  %v1521_v53 = vsub.f32 %v497_v46, %v1009_v47  ;;  %v2032_v59 = vand.u32 2147483647, %v1520_v48  ;;  %v510_v47 = vld [vmem:[%s3242_s18 + $0x8c0] sm:$0xff] }
 0x23d   : > { %v1022_v48 = vld [vmem:[%s3236_s6 + $0x8c0] sm:$0xff] }
 0x23e   : > { %v2531_v5 = vadd.f32 %v2530_v0, %v2019_v58  ;;  %v1522_v58 = vsub.f32 %v498_v51, %v1010_v52  ;;  %v2033_v0 = vand.u32 2147483647, %v1521_v53  ;;  %v511_v52 = vld [vmem:[%s3242_s18 + $0x8c8] sm:$0xff] }
 0x23f   : > { %v1023_v53 = vld [vmem:[%s3236_s6 + $0x8c8] sm:$0xff] }
 0x240   : > { %v2532_v10 = vadd.f32 %v2531_v5, %v2020_v63  ;;  %v1523_v63 = vsub.f32 %v499_v56, %v1011_v57  ;;  %v2034_v5 = vand.u32 2147483647, %v1522_v58  ;;  %v512_v57 = vld [vmem:[%s3242_s18 + $0x8d0] sm:$0xff] }
 0x241   : > { %v1024_v58 = vld [vmem:[%s3236_s6 + $0x8d0] sm:$0xff] }
 0x242   : > { %v2533_v15 = vadd.f32 %v2532_v10, %v2021_v4  ;;  %v1524_v4 = vsub.f32 %v500_v61, %v1012_v62  ;;  %v2035_v10 = vand.u32 2147483647, %v1523_v63  ;;  %v513_v62 = vld [vmem:[%s3242_s18 + $0x8d8] sm:$0xff] }
 0x243   : > { %v1025_v63 = vld [vmem:[%s3236_s6 + $0x8d8] sm:$0xff] }
 0x244   : > { %v2534_v20 = vadd.f32 %v2533_v15, %v2022_v9  ;;  %v1525_v9 = vsub.f32 %v501_v2, %v1013_v3  ;;  %v2036_v15 = vand.u32 2147483647, %v1524_v4  ;;  %v514_v3 = vld [vmem:[%s3242_s18 + $0x8e0] sm:$0xff] }
 0x245   : > { %v1026_v4 = vld [vmem:[%s3236_s6 + $0x8e0] sm:$0xff] }
 0x246   : > { %v2535_v25 = vadd.f32 %v2534_v20, %v2023_v14  ;;  %v1526_v14 = vsub.f32 %v502_v7, %v1014_v8  ;;  %v2037_v20 = vand.u32 2147483647, %v1525_v9  ;;  %v515_v8 = vld [vmem:[%s3242_s18 + $0x8e8] sm:$0xff] }
 0x247   : > { %v1027_v9 = vld [vmem:[%s3236_s6 + $0x8e8] sm:$0xff] }
 0x248   : > { %v2536_v30 = vadd.f32 %v2535_v25, %v2024_v19  ;;  %v1527_v19 = vsub.f32 %v503_v12, %v1015_v13  ;;  %v2038_v25 = vand.u32 2147483647, %v1526_v14  ;;  %v516_v13 = vld [vmem:[%s3242_s18 + $0x8f0] sm:$0xff] }
 0x249   : > { %v1028_v14 = vld [vmem:[%s3236_s6 + $0x8f0] sm:$0xff] }
 0x24a   : > { %v2537_v35 = vadd.f32 %v2536_v30, %v2025_v24  ;;  %v1528_v24 = vsub.f32 %v504_v17, %v1016_v18  ;;  %v2039_v30 = vand.u32 2147483647, %v1527_v19  ;;  %v517_v18 = vld [vmem:[%s3242_s18 + $0x8f8] sm:$0xff] }
 0x24b   : > { %v1029_v19 = vld [vmem:[%s3236_s6 + $0x8f8] sm:$0xff] }
 0x24c   : > { %v2538_v40 = vadd.f32 %v2537_v35, %v2026_v29  ;;  %v1529_v29 = vsub.f32 %v505_v22, %v1017_v23  ;;  %v2040_v35 = vand.u32 2147483647, %v1528_v24  ;;  %v518_v23 = vld [vmem:[%s3242_s18 + $0x900] sm:$0xff] }
 0x24d   : > { %v1030_v24 = vld [vmem:[%s3236_s6 + $0x900] sm:$0xff] }
 0x24e   : > { %v2539_v45 = vadd.f32 %v2538_v40, %v2027_v34  ;;  %v1530_v34 = vsub.f32 %v506_v27, %v1018_v28  ;;  %v2041_v40 = vand.u32 2147483647, %v1529_v29  ;;  %v519_v28 = vld [vmem:[%s3242_s18 + $0x908] sm:$0xff] }
 0x24f   : > { %v1031_v29 = vld [vmem:[%s3236_s6 + $0x908] sm:$0xff] }
 0x250   : > { %v2540_v50 = vadd.f32 %v2539_v45, %v2028_v39  ;;  %v1531_v39 = vsub.f32 %v507_v32, %v1019_v33  ;;  %v2042_v45 = vand.u32 2147483647, %v1530_v34  ;;  %v520_v33 = vld [vmem:[%s3242_s18 + $0x910] sm:$0xff] }
 0x251   : > { %v1032_v34 = vld [vmem:[%s3236_s6 + $0x910] sm:$0xff] }
 0x252   : > { %v2541_v55 = vadd.f32 %v2540_v50, %v2029_v44  ;;  %v1532_v44 = vsub.f32 %v508_v37, %v1020_v38  ;;  %v2043_v50 = vand.u32 2147483647, %v1531_v39  ;;  %v521_v38 = vld [vmem:[%s3242_s18 + $0x918] sm:$0xff] }
 0x253   : > { %v1033_v39 = vld [vmem:[%s3236_s6 + $0x918] sm:$0xff] }
 0x254   : > { %v2542_v60 = vadd.f32 %v2541_v55, %v2030_v49  ;;  %v1533_v49 = vsub.f32 %v509_v42, %v1021_v43  ;;  %v2044_v55 = vand.u32 2147483647, %v1532_v44  ;;  %v522_v43 = vld [vmem:[%s3242_s18 + $0x920] sm:$0xff] }
 0x255   : > { %v1034_v44 = vld [vmem:[%s3236_s6 + $0x920] sm:$0xff] }
 0x256   : > { %v2543_v1 = vadd.f32 %v2542_v60, %v2031_v54  ;;  %v1534_v54 = vsub.f32 %v510_v47, %v1022_v48  ;;  %v2045_v60 = vand.u32 2147483647, %v1533_v49  ;;  %v523_v48 = vld [vmem:[%s3242_s18 + $0x928] sm:$0xff] }
 0x257   : > { %v1035_v49 = vld [vmem:[%s3236_s6 + $0x928] sm:$0xff] }
 0x258   : > { %v2544_v6 = vadd.f32 %v2543_v1, %v2032_v59  ;;  %v1535_v59 = vsub.f32 %v511_v52, %v1023_v53  ;;  %v2046_v1 = vand.u32 2147483647, %v1534_v54  ;;  %v524_v53 = vld [vmem:[%s3242_s18 + $0x930] sm:$0xff] }
 0x259   : > { %v1036_v54 = vld [vmem:[%s3236_s6 + $0x930] sm:$0xff] }
 0x25a   : > { %v2545_v11 = vadd.f32 %v2544_v6, %v2033_v0  ;;  %v1536_v0 = vsub.f32 %v512_v57, %v1024_v58  ;;  %v2047_v6 = vand.u32 2147483647, %v1535_v59  ;;  %v525_v58 = vld [vmem:[%s3242_s18 + $0x938] sm:$0xff] }
 0x25b   : > { %v1037_v59 = vld [vmem:[%s3236_s6 + $0x938] sm:$0xff] }
 0x25c   : > { %v2546_v16 = vadd.f32 %v2545_v11, %v2034_v5  ;;  %v1537_v5 = vsub.f32 %v513_v62, %v1025_v63  ;;  %v2048_v11 = vand.u32 2147483647, %v1536_v0  ;;  %v526_v63 = vld [vmem:[%s3242_s18 + $0x940] sm:$0xff] }
 0x25d   : > { %v1038_v0 = vld [vmem:[%s3236_s6 + $0x940] sm:$0xff] }
 0x25e   : > { %v2547_v21 = vadd.f32 %v2546_v16, %v2035_v10  ;;  %v1538_v10 = vsub.f32 %v514_v3, %v1026_v4  ;;  %v2049_v16 = vand.u32 2147483647, %v1537_v5  ;;  %v527_v4 = vld [vmem:[%s3242_s18 + $0x948] sm:$0xff] }
 0x25f   : > { %v1039_v5 = vld [vmem:[%s3236_s6 + $0x948] sm:$0xff] }
 0x260   : > { %v2548_v26 = vadd.f32 %v2547_v21, %v2036_v15  ;;  %v1539_v15 = vsub.f32 %v515_v8, %v1027_v9  ;;  %v2050_v21 = vand.u32 2147483647, %v1538_v10  ;;  %v528_v9 = vld [vmem:[%s3242_s18 + $0x950] sm:$0xff] }
 0x261   : > { %v1040_v10 = vld [vmem:[%s3236_s6 + $0x950] sm:$0xff] }
 0x262   : > { %v2549_v31 = vadd.f32 %v2548_v26, %v2037_v20  ;;  %v1540_v20 = vsub.f32 %v516_v13, %v1028_v14  ;;  %v2051_v26 = vand.u32 2147483647, %v1539_v15  ;;  %v529_v14 = vld [vmem:[%s3242_s18 + $0x958] sm:$0xff] }
 0x263   : > { %v1041_v15 = vld [vmem:[%s3236_s6 + $0x958] sm:$0xff] }
 0x264   : > { %v2550_v36 = vadd.f32 %v2549_v31, %v2038_v25  ;;  %v1541_v25 = vsub.f32 %v517_v18, %v1029_v19  ;;  %v2052_v31 = vand.u32 2147483647, %v1540_v20  ;;  %v530_v19 = vld [vmem:[%s3242_s18 + $0x960] sm:$0xff] }
 0x265   : > { %v1042_v20 = vld [vmem:[%s3236_s6 + $0x960] sm:$0xff] }
 0x266   : > { %v2551_v41 = vadd.f32 %v2550_v36, %v2039_v30  ;;  %v1542_v30 = vsub.f32 %v518_v23, %v1030_v24  ;;  %v2053_v36 = vand.u32 2147483647, %v1541_v25  ;;  %v531_v24 = vld [vmem:[%s3242_s18 + $0x968] sm:$0xff] }
 0x267   : > { %v1043_v25 = vld [vmem:[%s3236_s6 + $0x968] sm:$0xff] }
 0x268   : > { %v2552_v46 = vadd.f32 %v2551_v41, %v2040_v35  ;;  %v1543_v35 = vsub.f32 %v519_v28, %v1031_v29  ;;  %v2054_v41 = vand.u32 2147483647, %v1542_v30  ;;  %v532_v29 = vld [vmem:[%s3242_s18 + $0x970] sm:$0xff] }
 0x269   : > { %v1044_v30 = vld [vmem:[%s3236_s6 + $0x970] sm:$0xff] }
 0x26a   : > { %v2553_v51 = vadd.f32 %v2552_v46, %v2041_v40  ;;  %v1544_v40 = vsub.f32 %v520_v33, %v1032_v34  ;;  %v2055_v46 = vand.u32 2147483647, %v1543_v35  ;;  %v533_v34 = vld [vmem:[%s3242_s18 + $0x978] sm:$0xff] }
 0x26b   : > { %v1045_v35 = vld [vmem:[%s3236_s6 + $0x978] sm:$0xff] }
 0x26c   : > { %v2554_v56 = vadd.f32 %v2553_v51, %v2042_v45  ;;  %v1545_v45 = vsub.f32 %v521_v38, %v1033_v39  ;;  %v2056_v51 = vand.u32 2147483647, %v1544_v40  ;;  %v534_v39 = vld [vmem:[%s3242_s18 + $0x980] sm:$0xff] }
 0x26d   : > { %v1046_v40 = vld [vmem:[%s3236_s6 + $0x980] sm:$0xff] }
 0x26e   : > { %v2555_v61 = vadd.f32 %v2554_v56, %v2043_v50  ;;  %v1546_v50 = vsub.f32 %v522_v43, %v1034_v44  ;;  %v2057_v56 = vand.u32 2147483647, %v1545_v45  ;;  %v535_v44 = vld [vmem:[%s3242_s18 + $0x988] sm:$0xff] }
 0x26f   : > { %v1047_v45 = vld [vmem:[%s3236_s6 + $0x988] sm:$0xff] }
 0x270   : > { %v2556_v2 = vadd.f32 %v2555_v61, %v2044_v55  ;;  %v1547_v55 = vsub.f32 %v523_v48, %v1035_v49  ;;  %v2058_v61 = vand.u32 2147483647, %v1546_v50  ;;  %v536_v49 = vld [vmem:[%s3242_s18 + $0x990] sm:$0xff] }
 0x271   : > { %v1048_v50 = vld [vmem:[%s3236_s6 + $0x990] sm:$0xff] }
 0x272   : > { %v2557_v7 = vadd.f32 %v2556_v2, %v2045_v60  ;;  %v1548_v60 = vsub.f32 %v524_v53, %v1036_v54  ;;  %v2059_v2 = vand.u32 2147483647, %v1547_v55  ;;  %v537_v54 = vld [vmem:[%s3242_s18 + $0x998] sm:$0xff] }
 0x273   : > { %v1049_v55 = vld [vmem:[%s3236_s6 + $0x998] sm:$0xff] }
 0x274   : > { %v2558_v12 = vadd.f32 %v2557_v7, %v2046_v1  ;;  %v1549_v1 = vsub.f32 %v525_v58, %v1037_v59  ;;  %v2060_v7 = vand.u32 2147483647, %v1548_v60  ;;  %v538_v59 = vld [vmem:[%s3242_s18 + $0x9a0] sm:$0xff] }
 0x275   : > { %v1050_v60 = vld [vmem:[%s3236_s6 + $0x9a0] sm:$0xff] }
 0x276   : > { %v2559_v17 = vadd.f32 %v2558_v12, %v2047_v6  ;;  %v1550_v6 = vsub.f32 %v526_v63, %v1038_v0  ;;  %v2061_v12 = vand.u32 2147483647, %v1549_v1  ;;  %v539_v0 = vld [vmem:[%s3242_s18 + $0x9a8] sm:$0xff] }
 0x277   : > { %v1051_v1 = vld [vmem:[%s3236_s6 + $0x9a8] sm:$0xff] }
 0x278   : > { %v2560_v22 = vadd.f32 %v2559_v17, %v2048_v11  ;;  %v1551_v11 = vsub.f32 %v527_v4, %v1039_v5  ;;  %v2062_v17 = vand.u32 2147483647, %v1550_v6  ;;  %v540_v5 = vld [vmem:[%s3242_s18 + $0x9b0] sm:$0xff] }
 0x279   : > { %v1052_v6 = vld [vmem:[%s3236_s6 + $0x9b0] sm:$0xff] }
 0x27a   : > { %v2561_v27 = vadd.f32 %v2560_v22, %v2049_v16  ;;  %v1552_v16 = vsub.f32 %v528_v9, %v1040_v10  ;;  %v2063_v22 = vand.u32 2147483647, %v1551_v11  ;;  %v541_v10 = vld [vmem:[%s3242_s18 + $0x9b8] sm:$0xff] }
 0x27b   : > { %v1053_v11 = vld [vmem:[%s3236_s6 + $0x9b8] sm:$0xff] }
 0x27c   : > { %v2562_v32 = vadd.f32 %v2561_v27, %v2050_v21  ;;  %v1553_v21 = vsub.f32 %v529_v14, %v1041_v15  ;;  %v2064_v27 = vand.u32 2147483647, %v1552_v16  ;;  %v542_v15 = vld [vmem:[%s3242_s18 + $0x9c0] sm:$0xff] }
 0x27d   : > { %v1054_v16 = vld [vmem:[%s3236_s6 + $0x9c0] sm:$0xff] }
 0x27e   : > { %v2563_v37 = vadd.f32 %v2562_v32, %v2051_v26  ;;  %v1554_v26 = vsub.f32 %v530_v19, %v1042_v20  ;;  %v2065_v32 = vand.u32 2147483647, %v1553_v21  ;;  %v543_v20 = vld [vmem:[%s3242_s18 + $0x9c8] sm:$0xff] }
 0x27f   : > { %v1055_v21 = vld [vmem:[%s3236_s6 + $0x9c8] sm:$0xff] }
 0x280   : > { %v2564_v42 = vadd.f32 %v2563_v37, %v2052_v31  ;;  %v1555_v31 = vsub.f32 %v531_v24, %v1043_v25  ;;  %v2066_v37 = vand.u32 2147483647, %v1554_v26  ;;  %v544_v25 = vld [vmem:[%s3242_s18 + $0x9d0] sm:$0xff] }
 0x281   : > { %v1056_v26 = vld [vmem:[%s3236_s6 + $0x9d0] sm:$0xff] }
 0x282   : > { %v2565_v47 = vadd.f32 %v2564_v42, %v2053_v36  ;;  %v1556_v36 = vsub.f32 %v532_v29, %v1044_v30  ;;  %v2067_v42 = vand.u32 2147483647, %v1555_v31  ;;  %v545_v30 = vld [vmem:[%s3242_s18 + $0x9d8] sm:$0xff] }
 0x283   : > { %v1057_v31 = vld [vmem:[%s3236_s6 + $0x9d8] sm:$0xff] }
 0x284   : > { %v2566_v52 = vadd.f32 %v2565_v47, %v2054_v41  ;;  %v1557_v41 = vsub.f32 %v533_v34, %v1045_v35  ;;  %v2068_v47 = vand.u32 2147483647, %v1556_v36  ;;  %v546_v35 = vld [vmem:[%s3242_s18 + $0x9e0] sm:$0xff] }
 0x285   : > { %v1058_v36 = vld [vmem:[%s3236_s6 + $0x9e0] sm:$0xff] }
 0x286   : > { %v2567_v57 = vadd.f32 %v2566_v52, %v2055_v46  ;;  %v1558_v46 = vsub.f32 %v534_v39, %v1046_v40  ;;  %v2069_v52 = vand.u32 2147483647, %v1557_v41  ;;  %v547_v40 = vld [vmem:[%s3242_s18 + $0x9e8] sm:$0xff] }
 0x287   : > { %v1059_v41 = vld [vmem:[%s3236_s6 + $0x9e8] sm:$0xff] }
 0x288   : > { %v2568_v62 = vadd.f32 %v2567_v57, %v2056_v51  ;;  %v1559_v51 = vsub.f32 %v535_v44, %v1047_v45  ;;  %v2070_v57 = vand.u32 2147483647, %v1558_v46  ;;  %v548_v45 = vld [vmem:[%s3242_s18 + $0x9f0] sm:$0xff] }
 0x289   : > { %v1060_v46 = vld [vmem:[%s3236_s6 + $0x9f0] sm:$0xff] }
 0x28a   : > { %v2569_v3 = vadd.f32 %v2568_v62, %v2057_v56  ;;  %v1560_v56 = vsub.f32 %v536_v49, %v1048_v50  ;;  %v2071_v62 = vand.u32 2147483647, %v1559_v51  ;;  %v549_v50 = vld [vmem:[%s3242_s18 + $0x9f8] sm:$0xff] }
 0x28b   : > { %v1061_v51 = vld [vmem:[%s3236_s6 + $0x9f8] sm:$0xff] }
 0x28c   : > { %v2570_v8 = vadd.f32 %v2569_v3, %v2058_v61  ;;  %v1561_v61 = vsub.f32 %v537_v54, %v1049_v55  ;;  %v2072_v3 = vand.u32 2147483647, %v1560_v56  ;;  %v550_v55 = vld [vmem:[%s3242_s18 + $0xa00] sm:$0xff] }
 0x28d   : > { %v1062_v56 = vld [vmem:[%s3236_s6 + $0xa00] sm:$0xff] }
 0x28e   : > { %v2571_v13 = vadd.f32 %v2570_v8, %v2059_v2  ;;  %v1562_v2 = vsub.f32 %v538_v59, %v1050_v60  ;;  %v2073_v8 = vand.u32 2147483647, %v1561_v61  ;;  %v551_v60 = vld [vmem:[%s3242_s18 + $0xa08] sm:$0xff] }
 0x28f   : > { %v1063_v61 = vld [vmem:[%s3236_s6 + $0xa08] sm:$0xff] }
 0x290   : > { %v2572_v18 = vadd.f32 %v2571_v13, %v2060_v7  ;;  %v1563_v7 = vsub.f32 %v539_v0, %v1051_v1  ;;  %v2074_v13 = vand.u32 2147483647, %v1562_v2  ;;  %v552_v1 = vld [vmem:[%s3242_s18 + $0xa10] sm:$0xff] }
 0x291   : > { %v1064_v2 = vld [vmem:[%s3236_s6 + $0xa10] sm:$0xff] }
 0x292   : > { %v2573_v23 = vadd.f32 %v2572_v18, %v2061_v12  ;;  %v1564_v12 = vsub.f32 %v540_v5, %v1052_v6  ;;  %v2075_v18 = vand.u32 2147483647, %v1563_v7  ;;  %v553_v6 = vld [vmem:[%s3242_s18 + $0xa18] sm:$0xff] }
 0x293   : > { %v1065_v7 = vld [vmem:[%s3236_s6 + $0xa18] sm:$0xff] }
 0x294   : > { %v2574_v28 = vadd.f32 %v2573_v23, %v2062_v17  ;;  %v1565_v17 = vsub.f32 %v541_v10, %v1053_v11  ;;  %v2076_v23 = vand.u32 2147483647, %v1564_v12  ;;  %v554_v11 = vld [vmem:[%s3242_s18 + $0xa20] sm:$0xff] }
 0x295   : > { %v1066_v12 = vld [vmem:[%s3236_s6 + $0xa20] sm:$0xff] }
 0x296   : > { %v2575_v33 = vadd.f32 %v2574_v28, %v2063_v22  ;;  %v1566_v22 = vsub.f32 %v542_v15, %v1054_v16  ;;  %v2077_v28 = vand.u32 2147483647, %v1565_v17  ;;  %v555_v16 = vld [vmem:[%s3242_s18 + $0xa28] sm:$0xff] }
 0x297   : > { %v1067_v17 = vld [vmem:[%s3236_s6 + $0xa28] sm:$0xff] }
 0x298   : > { %v2576_v38 = vadd.f32 %v2575_v33, %v2064_v27  ;;  %v1567_v27 = vsub.f32 %v543_v20, %v1055_v21  ;;  %v2078_v33 = vand.u32 2147483647, %v1566_v22  ;;  %v556_v21 = vld [vmem:[%s3242_s18 + $0xa30] sm:$0xff] }
 0x299   : > { %v1068_v22 = vld [vmem:[%s3236_s6 + $0xa30] sm:$0xff] }
 0x29a   : > { %v2577_v43 = vadd.f32 %v2576_v38, %v2065_v32  ;;  %v1568_v32 = vsub.f32 %v544_v25, %v1056_v26  ;;  %v2079_v38 = vand.u32 2147483647, %v1567_v27  ;;  %v557_v26 = vld [vmem:[%s3242_s18 + $0xa38] sm:$0xff] }
 0x29b   : > { %v1069_v27 = vld [vmem:[%s3236_s6 + $0xa38] sm:$0xff] }
 0x29c   : > { %v2578_v48 = vadd.f32 %v2577_v43, %v2066_v37  ;;  %v1569_v37 = vsub.f32 %v545_v30, %v1057_v31  ;;  %v2080_v43 = vand.u32 2147483647, %v1568_v32  ;;  %v558_v31 = vld [vmem:[%s3242_s18 + $0xa40] sm:$0xff] }
 0x29d   : > { %v1070_v32 = vld [vmem:[%s3236_s6 + $0xa40] sm:$0xff] }
 0x29e   : > { %v2579_v53 = vadd.f32 %v2578_v48, %v2067_v42  ;;  %v1570_v42 = vsub.f32 %v546_v35, %v1058_v36  ;;  %v2081_v48 = vand.u32 2147483647, %v1569_v37  ;;  %v559_v36 = vld [vmem:[%s3242_s18 + $0xa48] sm:$0xff] }
 0x29f   : > { %v1071_v37 = vld [vmem:[%s3236_s6 + $0xa48] sm:$0xff] }
 0x2a0   : > { %v2580_v58 = vadd.f32 %v2579_v53, %v2068_v47  ;;  %v1571_v47 = vsub.f32 %v547_v40, %v1059_v41  ;;  %v2082_v53 = vand.u32 2147483647, %v1570_v42  ;;  %v560_v41 = vld [vmem:[%s3242_s18 + $0xa50] sm:$0xff] }
 0x2a1   : > { %v1072_v42 = vld [vmem:[%s3236_s6 + $0xa50] sm:$0xff] }
 0x2a2   : > { %v2581_v63 = vadd.f32 %v2580_v58, %v2069_v52  ;;  %v1572_v52 = vsub.f32 %v548_v45, %v1060_v46  ;;  %v2083_v58 = vand.u32 2147483647, %v1571_v47  ;;  %v561_v46 = vld [vmem:[%s3242_s18 + $0xa58] sm:$0xff] }
 0x2a3   : > { %v1073_v47 = vld [vmem:[%s3236_s6 + $0xa58] sm:$0xff] }
 0x2a4   : > { %v2582_v4 = vadd.f32 %v2581_v63, %v2070_v57  ;;  %v1573_v57 = vsub.f32 %v549_v50, %v1061_v51  ;;  %v2084_v63 = vand.u32 2147483647, %v1572_v52  ;;  %v562_v51 = vld [vmem:[%s3242_s18 + $0xa60] sm:$0xff] }
 0x2a5   : > { %v1074_v52 = vld [vmem:[%s3236_s6 + $0xa60] sm:$0xff] }
 0x2a6   : > { %v2583_v9 = vadd.f32 %v2582_v4, %v2071_v62  ;;  %v1574_v62 = vsub.f32 %v550_v55, %v1062_v56  ;;  %v2085_v4 = vand.u32 2147483647, %v1573_v57  ;;  %v563_v56 = vld [vmem:[%s3242_s18 + $0xa68] sm:$0xff] }
 0x2a7   : > { %v1075_v57 = vld [vmem:[%s3236_s6 + $0xa68] sm:$0xff] }
 0x2a8   : > { %v2584_v14 = vadd.f32 %v2583_v9, %v2072_v3  ;;  %v1575_v3 = vsub.f32 %v551_v60, %v1063_v61  ;;  %v2086_v9 = vand.u32 2147483647, %v1574_v62  ;;  %v564_v61 = vld [vmem:[%s3242_s18 + $0xa70] sm:$0xff] }
 0x2a9   : > { %v1076_v62 = vld [vmem:[%s3236_s6 + $0xa70] sm:$0xff] }
 0x2aa   : > { %v2585_v19 = vadd.f32 %v2584_v14, %v2073_v8  ;;  %v1576_v8 = vsub.f32 %v552_v1, %v1064_v2  ;;  %v2087_v14 = vand.u32 2147483647, %v1575_v3  ;;  %v565_v2 = vld [vmem:[%s3242_s18 + $0xa78] sm:$0xff] }
 0x2ab   : > { %v1077_v3 = vld [vmem:[%s3236_s6 + $0xa78] sm:$0xff] }
 0x2ac   : > { %v2586_v24 = vadd.f32 %v2585_v19, %v2074_v13  ;;  %v1577_v13 = vsub.f32 %v553_v6, %v1065_v7  ;;  %v2088_v19 = vand.u32 2147483647, %v1576_v8  ;;  %v566_v7 = vld [vmem:[%s3242_s18 + $0xa80] sm:$0xff] }
 0x2ad   : > { %v1078_v8 = vld [vmem:[%s3236_s6 + $0xa80] sm:$0xff] }
 0x2ae   : > { %v2587_v29 = vadd.f32 %v2586_v24, %v2075_v18  ;;  %v1578_v18 = vsub.f32 %v554_v11, %v1066_v12  ;;  %v2089_v24 = vand.u32 2147483647, %v1577_v13  ;;  %v567_v12 = vld [vmem:[%s3242_s18 + $0xa88] sm:$0xff] }
 0x2af   : > { %v1079_v13 = vld [vmem:[%s3236_s6 + $0xa88] sm:$0xff] }
 0x2b0   : > { %v2588_v34 = vadd.f32 %v2587_v29, %v2076_v23  ;;  %v1579_v23 = vsub.f32 %v555_v16, %v1067_v17  ;;  %v2090_v29 = vand.u32 2147483647, %v1578_v18  ;;  %v568_v17 = vld [vmem:[%s3242_s18 + $0xa90] sm:$0xff] }
 0x2b1   : > { %v1080_v18 = vld [vmem:[%s3236_s6 + $0xa90] sm:$0xff] }
 0x2b2   : > { %v2589_v39 = vadd.f32 %v2588_v34, %v2077_v28  ;;  %v1580_v28 = vsub.f32 %v556_v21, %v1068_v22  ;;  %v2091_v34 = vand.u32 2147483647, %v1579_v23  ;;  %v569_v22 = vld [vmem:[%s3242_s18 + $0xa98] sm:$0xff] }
 0x2b3   : > { %v1081_v23 = vld [vmem:[%s3236_s6 + $0xa98] sm:$0xff] }
 0x2b4   : > { %v2590_v44 = vadd.f32 %v2589_v39, %v2078_v33  ;;  %v1581_v33 = vsub.f32 %v557_v26, %v1069_v27  ;;  %v2092_v39 = vand.u32 2147483647, %v1580_v28  ;;  %v570_v27 = vld [vmem:[%s3242_s18 + $0xaa0] sm:$0xff] }
 0x2b5   : > { %v1082_v28 = vld [vmem:[%s3236_s6 + $0xaa0] sm:$0xff] }
 0x2b6   : > { %v2591_v49 = vadd.f32 %v2590_v44, %v2079_v38  ;;  %v1582_v38 = vsub.f32 %v558_v31, %v1070_v32  ;;  %v2093_v44 = vand.u32 2147483647, %v1581_v33  ;;  %v571_v32 = vld [vmem:[%s3242_s18 + $0xaa8] sm:$0xff] }
 0x2b7   : > { %v1083_v33 = vld [vmem:[%s3236_s6 + $0xaa8] sm:$0xff] }
 0x2b8   : > { %v2592_v54 = vadd.f32 %v2591_v49, %v2080_v43  ;;  %v1583_v43 = vsub.f32 %v559_v36, %v1071_v37  ;;  %v2094_v49 = vand.u32 2147483647, %v1582_v38  ;;  %v572_v37 = vld [vmem:[%s3242_s18 + $0xab0] sm:$0xff] }
 0x2b9   : > { %v1084_v38 = vld [vmem:[%s3236_s6 + $0xab0] sm:$0xff] }
 0x2ba   : > { %v2593_v59 = vadd.f32 %v2592_v54, %v2081_v48  ;;  %v1584_v48 = vsub.f32 %v560_v41, %v1072_v42  ;;  %v2095_v54 = vand.u32 2147483647, %v1583_v43  ;;  %v573_v42 = vld [vmem:[%s3242_s18 + $0xab8] sm:$0xff] }
 0x2bb   : > { %v1085_v43 = vld [vmem:[%s3236_s6 + $0xab8] sm:$0xff] }
 0x2bc   : > { %v2594_v0 = vadd.f32 %v2593_v59, %v2082_v53  ;;  %v1585_v53 = vsub.f32 %v561_v46, %v1073_v47  ;;  %v2096_v59 = vand.u32 2147483647, %v1584_v48  ;;  %v574_v47 = vld [vmem:[%s3242_s18 + $0xac0] sm:$0xff] }
 0x2bd   : > { %v1086_v48 = vld [vmem:[%s3236_s6 + $0xac0] sm:$0xff] }
 0x2be   : > { %v2595_v5 = vadd.f32 %v2594_v0, %v2083_v58  ;;  %v1586_v58 = vsub.f32 %v562_v51, %v1074_v52  ;;  %v2097_v0 = vand.u32 2147483647, %v1585_v53  ;;  %v575_v52 = vld [vmem:[%s3242_s18 + $0xac8] sm:$0xff] }
 0x2bf   : > { %v1087_v53 = vld [vmem:[%s3236_s6 + $0xac8] sm:$0xff] }
 0x2c0   : > { %v2596_v10 = vadd.f32 %v2595_v5, %v2084_v63  ;;  %v1587_v63 = vsub.f32 %v563_v56, %v1075_v57  ;;  %v2098_v5 = vand.u32 2147483647, %v1586_v58  ;;  %v576_v57 = vld [vmem:[%s3242_s18 + $0xad0] sm:$0xff] }
 0x2c1   : > { %v1088_v58 = vld [vmem:[%s3236_s6 + $0xad0] sm:$0xff] }
 0x2c2   : > { %v2597_v15 = vadd.f32 %v2596_v10, %v2085_v4  ;;  %v1588_v4 = vsub.f32 %v564_v61, %v1076_v62  ;;  %v2099_v10 = vand.u32 2147483647, %v1587_v63  ;;  %v577_v62 = vld [vmem:[%s3242_s18 + $0xad8] sm:$0xff] }
 0x2c3   : > { %v1089_v63 = vld [vmem:[%s3236_s6 + $0xad8] sm:$0xff] }
 0x2c4   : > { %v2598_v20 = vadd.f32 %v2597_v15, %v2086_v9  ;;  %v1589_v9 = vsub.f32 %v565_v2, %v1077_v3  ;;  %v2100_v15 = vand.u32 2147483647, %v1588_v4  ;;  %v578_v3 = vld [vmem:[%s3242_s18 + $0xae0] sm:$0xff] }
 0x2c5   : > { %v1090_v4 = vld [vmem:[%s3236_s6 + $0xae0] sm:$0xff] }
 0x2c6   : > { %v2599_v25 = vadd.f32 %v2598_v20, %v2087_v14  ;;  %v1590_v14 = vsub.f32 %v566_v7, %v1078_v8  ;;  %v2101_v20 = vand.u32 2147483647, %v1589_v9  ;;  %v579_v8 = vld [vmem:[%s3242_s18 + $0xae8] sm:$0xff] }
 0x2c7   : > { %v1091_v9 = vld [vmem:[%s3236_s6 + $0xae8] sm:$0xff] }
 0x2c8   : > { %v2600_v30 = vadd.f32 %v2599_v25, %v2088_v19  ;;  %v1591_v19 = vsub.f32 %v567_v12, %v1079_v13  ;;  %v2102_v25 = vand.u32 2147483647, %v1590_v14  ;;  %v580_v13 = vld [vmem:[%s3242_s18 + $0xaf0] sm:$0xff] }
 0x2c9   : > { %v1092_v14 = vld [vmem:[%s3236_s6 + $0xaf0] sm:$0xff] }
 0x2ca   : > { %v2601_v35 = vadd.f32 %v2600_v30, %v2089_v24  ;;  %v1592_v24 = vsub.f32 %v568_v17, %v1080_v18  ;;  %v2103_v30 = vand.u32 2147483647, %v1591_v19  ;;  %v581_v18 = vld [vmem:[%s3242_s18 + $0xaf8] sm:$0xff] }
 0x2cb   : > { %v1093_v19 = vld [vmem:[%s3236_s6 + $0xaf8] sm:$0xff] }
 0x2cc   : > { %v2602_v40 = vadd.f32 %v2601_v35, %v2090_v29  ;;  %v1593_v29 = vsub.f32 %v569_v22, %v1081_v23  ;;  %v2104_v35 = vand.u32 2147483647, %v1592_v24  ;;  %v582_v23 = vld [vmem:[%s3242_s18 + $0xb00] sm:$0xff] }
 0x2cd   : > { %v1094_v24 = vld [vmem:[%s3236_s6 + $0xb00] sm:$0xff] }
 0x2ce   : > { %v2603_v45 = vadd.f32 %v2602_v40, %v2091_v34  ;;  %v1594_v34 = vsub.f32 %v570_v27, %v1082_v28  ;;  %v2105_v40 = vand.u32 2147483647, %v1593_v29  ;;  %v583_v28 = vld [vmem:[%s3242_s18 + $0xb08] sm:$0xff] }
 0x2cf   : > { %v1095_v29 = vld [vmem:[%s3236_s6 + $0xb08] sm:$0xff] }
 0x2d0   : > { %v2604_v50 = vadd.f32 %v2603_v45, %v2092_v39  ;;  %v1595_v39 = vsub.f32 %v571_v32, %v1083_v33  ;;  %v2106_v45 = vand.u32 2147483647, %v1594_v34  ;;  %v584_v33 = vld [vmem:[%s3242_s18 + $0xb10] sm:$0xff] }
 0x2d1   : > { %v1096_v34 = vld [vmem:[%s3236_s6 + $0xb10] sm:$0xff] }
 0x2d2   : > { %v2605_v55 = vadd.f32 %v2604_v50, %v2093_v44  ;;  %v1596_v44 = vsub.f32 %v572_v37, %v1084_v38  ;;  %v2107_v50 = vand.u32 2147483647, %v1595_v39  ;;  %v585_v38 = vld [vmem:[%s3242_s18 + $0xb18] sm:$0xff] }
 0x2d3   : > { %v1097_v39 = vld [vmem:[%s3236_s6 + $0xb18] sm:$0xff] }
 0x2d4   : > { %v2606_v60 = vadd.f32 %v2605_v55, %v2094_v49  ;;  %v1597_v49 = vsub.f32 %v573_v42, %v1085_v43  ;;  %v2108_v55 = vand.u32 2147483647, %v1596_v44  ;;  %v586_v43 = vld [vmem:[%s3242_s18 + $0xb20] sm:$0xff] }
 0x2d5   : > { %v1098_v44 = vld [vmem:[%s3236_s6 + $0xb20] sm:$0xff] }
 0x2d6   : > { %v2607_v1 = vadd.f32 %v2606_v60, %v2095_v54  ;;  %v1598_v54 = vsub.f32 %v574_v47, %v1086_v48  ;;  %v2109_v60 = vand.u32 2147483647, %v1597_v49  ;;  %v587_v48 = vld [vmem:[%s3242_s18 + $0xb28] sm:$0xff] }
 0x2d7   : > { %v1099_v49 = vld [vmem:[%s3236_s6 + $0xb28] sm:$0xff] }
 0x2d8   : > { %v2608_v6 = vadd.f32 %v2607_v1, %v2096_v59  ;;  %v1599_v59 = vsub.f32 %v575_v52, %v1087_v53  ;;  %v2110_v1 = vand.u32 2147483647, %v1598_v54  ;;  %v588_v53 = vld [vmem:[%s3242_s18 + $0xb30] sm:$0xff] }
 0x2d9   : > { %v1100_v54 = vld [vmem:[%s3236_s6 + $0xb30] sm:$0xff] }
 0x2da   : > { %v2609_v11 = vadd.f32 %v2608_v6, %v2097_v0  ;;  %v1600_v0 = vsub.f32 %v576_v57, %v1088_v58  ;;  %v2111_v6 = vand.u32 2147483647, %v1599_v59  ;;  %v589_v58 = vld [vmem:[%s3242_s18 + $0xb38] sm:$0xff] }
 0x2db   : > { %v1101_v59 = vld [vmem:[%s3236_s6 + $0xb38] sm:$0xff] }
 0x2dc   : > { %v2610_v16 = vadd.f32 %v2609_v11, %v2098_v5  ;;  %v1601_v5 = vsub.f32 %v577_v62, %v1089_v63  ;;  %v2112_v11 = vand.u32 2147483647, %v1600_v0  ;;  %v590_v63 = vld [vmem:[%s3242_s18 + $0xb40] sm:$0xff] }
 0x2dd   : > { %v1102_v0 = vld [vmem:[%s3236_s6 + $0xb40] sm:$0xff] }
 0x2de   : > { %v2611_v21 = vadd.f32 %v2610_v16, %v2099_v10  ;;  %v1602_v10 = vsub.f32 %v578_v3, %v1090_v4  ;;  %v2113_v16 = vand.u32 2147483647, %v1601_v5  ;;  %v591_v4 = vld [vmem:[%s3242_s18 + $0xb48] sm:$0xff] }
 0x2df   : > { %v1103_v5 = vld [vmem:[%s3236_s6 + $0xb48] sm:$0xff] }
 0x2e0   : > { %v2612_v26 = vadd.f32 %v2611_v21, %v2100_v15  ;;  %v1603_v15 = vsub.f32 %v579_v8, %v1091_v9  ;;  %v2114_v21 = vand.u32 2147483647, %v1602_v10  ;;  %v592_v9 = vld [vmem:[%s3242_s18 + $0xb50] sm:$0xff] }
 0x2e1   : > { %v1104_v10 = vld [vmem:[%s3236_s6 + $0xb50] sm:$0xff] }
 0x2e2   : > { %v2613_v31 = vadd.f32 %v2612_v26, %v2101_v20  ;;  %v1604_v20 = vsub.f32 %v580_v13, %v1092_v14  ;;  %v2115_v26 = vand.u32 2147483647, %v1603_v15  ;;  %v593_v14 = vld [vmem:[%s3242_s18 + $0xb58] sm:$0xff] }
 0x2e3   : > { %v1105_v15 = vld [vmem:[%s3236_s6 + $0xb58] sm:$0xff] }
 0x2e4   : > { %v2614_v36 = vadd.f32 %v2613_v31, %v2102_v25  ;;  %v1605_v25 = vsub.f32 %v581_v18, %v1093_v19  ;;  %v2116_v31 = vand.u32 2147483647, %v1604_v20  ;;  %v594_v19 = vld [vmem:[%s3242_s18 + $0xb60] sm:$0xff] }
 0x2e5   : > { %v1106_v20 = vld [vmem:[%s3236_s6 + $0xb60] sm:$0xff] }
 0x2e6   : > { %v2615_v41 = vadd.f32 %v2614_v36, %v2103_v30  ;;  %v1606_v30 = vsub.f32 %v582_v23, %v1094_v24  ;;  %v2117_v36 = vand.u32 2147483647, %v1605_v25  ;;  %v595_v24 = vld [vmem:[%s3242_s18 + $0xb68] sm:$0xff] }
 0x2e7   : > { %v1107_v25 = vld [vmem:[%s3236_s6 + $0xb68] sm:$0xff] }
 0x2e8   : > { %v2616_v46 = vadd.f32 %v2615_v41, %v2104_v35  ;;  %v1607_v35 = vsub.f32 %v583_v28, %v1095_v29  ;;  %v2118_v41 = vand.u32 2147483647, %v1606_v30  ;;  %v596_v29 = vld [vmem:[%s3242_s18 + $0xb70] sm:$0xff] }
 0x2e9   : > { %v1108_v30 = vld [vmem:[%s3236_s6 + $0xb70] sm:$0xff] }
 0x2ea   : > { %v2617_v51 = vadd.f32 %v2616_v46, %v2105_v40  ;;  %v1608_v40 = vsub.f32 %v584_v33, %v1096_v34  ;;  %v2119_v46 = vand.u32 2147483647, %v1607_v35  ;;  %v597_v34 = vld [vmem:[%s3242_s18 + $0xb78] sm:$0xff] }
 0x2eb   : > { %v1109_v35 = vld [vmem:[%s3236_s6 + $0xb78] sm:$0xff] }
 0x2ec   : > { %v2618_v56 = vadd.f32 %v2617_v51, %v2106_v45  ;;  %v1609_v45 = vsub.f32 %v585_v38, %v1097_v39  ;;  %v2120_v51 = vand.u32 2147483647, %v1608_v40  ;;  %v598_v39 = vld [vmem:[%s3242_s18 + $0xb80] sm:$0xff] }
 0x2ed   : > { %v1110_v40 = vld [vmem:[%s3236_s6 + $0xb80] sm:$0xff] }
 0x2ee   : > { %v2619_v61 = vadd.f32 %v2618_v56, %v2107_v50  ;;  %v1610_v50 = vsub.f32 %v586_v43, %v1098_v44  ;;  %v2121_v56 = vand.u32 2147483647, %v1609_v45  ;;  %v599_v44 = vld [vmem:[%s3242_s18 + $0xb88] sm:$0xff] }
 0x2ef   : > { %v1111_v45 = vld [vmem:[%s3236_s6 + $0xb88] sm:$0xff] }
 0x2f0   : > { %v2620_v2 = vadd.f32 %v2619_v61, %v2108_v55  ;;  %v1611_v55 = vsub.f32 %v587_v48, %v1099_v49  ;;  %v2122_v61 = vand.u32 2147483647, %v1610_v50  ;;  %v600_v49 = vld [vmem:[%s3242_s18 + $0xb90] sm:$0xff] }
 0x2f1   : > { %v1112_v50 = vld [vmem:[%s3236_s6 + $0xb90] sm:$0xff] }
 0x2f2   : > { %v2621_v7 = vadd.f32 %v2620_v2, %v2109_v60  ;;  %v1612_v60 = vsub.f32 %v588_v53, %v1100_v54  ;;  %v2123_v2 = vand.u32 2147483647, %v1611_v55  ;;  %v601_v54 = vld [vmem:[%s3242_s18 + $0xb98] sm:$0xff] }
 0x2f3   : > { %v1113_v55 = vld [vmem:[%s3236_s6 + $0xb98] sm:$0xff] }
 0x2f4   : > { %v2622_v12 = vadd.f32 %v2621_v7, %v2110_v1  ;;  %v1613_v1 = vsub.f32 %v589_v58, %v1101_v59  ;;  %v2124_v7 = vand.u32 2147483647, %v1612_v60  ;;  %v602_v59 = vld [vmem:[%s3242_s18 + $0xba0] sm:$0xff] }
 0x2f5   : > { %v1114_v60 = vld [vmem:[%s3236_s6 + $0xba0] sm:$0xff] }
 0x2f6   : > { %v2623_v17 = vadd.f32 %v2622_v12, %v2111_v6  ;;  %v1614_v6 = vsub.f32 %v590_v63, %v1102_v0  ;;  %v2125_v12 = vand.u32 2147483647, %v1613_v1  ;;  %v603_v0 = vld [vmem:[%s3242_s18 + $0xba8] sm:$0xff] }
 0x2f7   : > { %v1115_v1 = vld [vmem:[%s3236_s6 + $0xba8] sm:$0xff] }
 0x2f8   : > { %v2624_v22 = vadd.f32 %v2623_v17, %v2112_v11  ;;  %v1615_v11 = vsub.f32 %v591_v4, %v1103_v5  ;;  %v2126_v17 = vand.u32 2147483647, %v1614_v6  ;;  %v604_v5 = vld [vmem:[%s3242_s18 + $0xbb0] sm:$0xff] }
 0x2f9   : > { %v1116_v6 = vld [vmem:[%s3236_s6 + $0xbb0] sm:$0xff] }
 0x2fa   : > { %v2625_v27 = vadd.f32 %v2624_v22, %v2113_v16  ;;  %v1616_v16 = vsub.f32 %v592_v9, %v1104_v10  ;;  %v2127_v22 = vand.u32 2147483647, %v1615_v11  ;;  %v605_v10 = vld [vmem:[%s3242_s18 + $0xbb8] sm:$0xff] }
 0x2fb   : > { %v1117_v11 = vld [vmem:[%s3236_s6 + $0xbb8] sm:$0xff] }
 0x2fc   : > { %v2626_v32 = vadd.f32 %v2625_v27, %v2114_v21  ;;  %v1617_v21 = vsub.f32 %v593_v14, %v1105_v15  ;;  %v2128_v27 = vand.u32 2147483647, %v1616_v16  ;;  %v606_v15 = vld [vmem:[%s3242_s18 + $0xbc0] sm:$0xff] }
 0x2fd   : > { %v1118_v16 = vld [vmem:[%s3236_s6 + $0xbc0] sm:$0xff] }
 0x2fe   : > { %v2627_v37 = vadd.f32 %v2626_v32, %v2115_v26  ;;  %v1618_v26 = vsub.f32 %v594_v19, %v1106_v20  ;;  %v2129_v32 = vand.u32 2147483647, %v1617_v21  ;;  %v607_v20 = vld [vmem:[%s3242_s18 + $0xbc8] sm:$0xff] }
 0x2ff   : > { %v1119_v21 = vld [vmem:[%s3236_s6 + $0xbc8] sm:$0xff] }
 0x300   : > { %v2628_v42 = vadd.f32 %v2627_v37, %v2116_v31  ;;  %v1619_v31 = vsub.f32 %v595_v24, %v1107_v25  ;;  %v2130_v37 = vand.u32 2147483647, %v1618_v26  ;;  %v608_v25 = vld [vmem:[%s3242_s18 + $0xbd0] sm:$0xff] }
 0x301   : > { %v1120_v26 = vld [vmem:[%s3236_s6 + $0xbd0] sm:$0xff] }
 0x302   : > { %v2629_v47 = vadd.f32 %v2628_v42, %v2117_v36  ;;  %v1620_v36 = vsub.f32 %v596_v29, %v1108_v30  ;;  %v2131_v42 = vand.u32 2147483647, %v1619_v31  ;;  %v609_v30 = vld [vmem:[%s3242_s18 + $0xbd8] sm:$0xff] }
 0x303   : > { %v1121_v31 = vld [vmem:[%s3236_s6 + $0xbd8] sm:$0xff] }
 0x304   : > { %v2630_v52 = vadd.f32 %v2629_v47, %v2118_v41  ;;  %v1621_v41 = vsub.f32 %v597_v34, %v1109_v35  ;;  %v2132_v47 = vand.u32 2147483647, %v1620_v36  ;;  %v610_v35 = vld [vmem:[%s3242_s18 + $0xbe0] sm:$0xff] }
 0x305   : > { %v1122_v36 = vld [vmem:[%s3236_s6 + $0xbe0] sm:$0xff] }
 0x306   : > { %v2631_v57 = vadd.f32 %v2630_v52, %v2119_v46  ;;  %v1622_v46 = vsub.f32 %v598_v39, %v1110_v40  ;;  %v2133_v52 = vand.u32 2147483647, %v1621_v41  ;;  %v611_v40 = vld [vmem:[%s3242_s18 + $0xbe8] sm:$0xff] }
 0x307   : > { %v1123_v41 = vld [vmem:[%s3236_s6 + $0xbe8] sm:$0xff] }
 0x308   : > { %v2632_v62 = vadd.f32 %v2631_v57, %v2120_v51  ;;  %v1623_v51 = vsub.f32 %v599_v44, %v1111_v45  ;;  %v2134_v57 = vand.u32 2147483647, %v1622_v46  ;;  %v612_v45 = vld [vmem:[%s3242_s18 + $0xbf0] sm:$0xff] }
 0x309   : > { %v1124_v46 = vld [vmem:[%s3236_s6 + $0xbf0] sm:$0xff] }
 0x30a   : > { %v2633_v3 = vadd.f32 %v2632_v62, %v2121_v56  ;;  %v1624_v56 = vsub.f32 %v600_v49, %v1112_v50  ;;  %v2135_v62 = vand.u32 2147483647, %v1623_v51  ;;  %v613_v50 = vld [vmem:[%s3242_s18 + $0xbf8] sm:$0xff] }
 0x30b   : > { %v1125_v51 = vld [vmem:[%s3236_s6 + $0xbf8] sm:$0xff] }
 0x30c   : > { %v2634_v8 = vadd.f32 %v2633_v3, %v2122_v61  ;;  %v1625_v61 = vsub.f32 %v601_v54, %v1113_v55  ;;  %v2136_v3 = vand.u32 2147483647, %v1624_v56  ;;  %v614_v55 = vld [vmem:[%s3242_s18 + $0xc00] sm:$0xff] }
 0x30d   : > { %v1126_v56 = vld [vmem:[%s3236_s6 + $0xc00] sm:$0xff] }
 0x30e   : > { %v2635_v13 = vadd.f32 %v2634_v8, %v2123_v2  ;;  %v1626_v2 = vsub.f32 %v602_v59, %v1114_v60  ;;  %v2137_v8 = vand.u32 2147483647, %v1625_v61  ;;  %v615_v60 = vld [vmem:[%s3242_s18 + $0xc08] sm:$0xff] }
 0x30f   : > { %v1127_v61 = vld [vmem:[%s3236_s6 + $0xc08] sm:$0xff] }
 0x310   : > { %v2636_v18 = vadd.f32 %v2635_v13, %v2124_v7  ;;  %v1627_v7 = vsub.f32 %v603_v0, %v1115_v1  ;;  %v2138_v13 = vand.u32 2147483647, %v1626_v2  ;;  %v616_v1 = vld [vmem:[%s3242_s18 + $0xc10] sm:$0xff] }
 0x311   : > { %v1128_v2 = vld [vmem:[%s3236_s6 + $0xc10] sm:$0xff] }
 0x312   : > { %v2637_v23 = vadd.f32 %v2636_v18, %v2125_v12  ;;  %v1628_v12 = vsub.f32 %v604_v5, %v1116_v6  ;;  %v2139_v18 = vand.u32 2147483647, %v1627_v7  ;;  %v617_v6 = vld [vmem:[%s3242_s18 + $0xc18] sm:$0xff] }
 0x313   : > { %v1129_v7 = vld [vmem:[%s3236_s6 + $0xc18] sm:$0xff] }
 0x314   : > { %v2638_v28 = vadd.f32 %v2637_v23, %v2126_v17  ;;  %v1629_v17 = vsub.f32 %v605_v10, %v1117_v11  ;;  %v2140_v23 = vand.u32 2147483647, %v1628_v12  ;;  %v618_v11 = vld [vmem:[%s3242_s18 + $0xc20] sm:$0xff] }
 0x315   : > { %v1130_v12 = vld [vmem:[%s3236_s6 + $0xc20] sm:$0xff] }
 0x316   : > { %v2639_v33 = vadd.f32 %v2638_v28, %v2127_v22  ;;  %v1630_v22 = vsub.f32 %v606_v15, %v1118_v16  ;;  %v2141_v28 = vand.u32 2147483647, %v1629_v17  ;;  %v619_v16 = vld [vmem:[%s3242_s18 + $0xc28] sm:$0xff] }
 0x317   : > { %v1131_v17 = vld [vmem:[%s3236_s6 + $0xc28] sm:$0xff] }
 0x318   : > { %v2640_v38 = vadd.f32 %v2639_v33, %v2128_v27  ;;  %v1631_v27 = vsub.f32 %v607_v20, %v1119_v21  ;;  %v2142_v33 = vand.u32 2147483647, %v1630_v22  ;;  %v620_v21 = vld [vmem:[%s3242_s18 + $0xc30] sm:$0xff] }
 0x319   : > { %v1132_v22 = vld [vmem:[%s3236_s6 + $0xc30] sm:$0xff] }
 0x31a   : > { %v2641_v43 = vadd.f32 %v2640_v38, %v2129_v32  ;;  %v1632_v32 = vsub.f32 %v608_v25, %v1120_v26  ;;  %v2143_v38 = vand.u32 2147483647, %v1631_v27  ;;  %v621_v26 = vld [vmem:[%s3242_s18 + $0xc38] sm:$0xff] }
 0x31b   : > { %v1133_v27 = vld [vmem:[%s3236_s6 + $0xc38] sm:$0xff] }
 0x31c   : > { %v2642_v48 = vadd.f32 %v2641_v43, %v2130_v37  ;;  %v1633_v37 = vsub.f32 %v609_v30, %v1121_v31  ;;  %v2144_v43 = vand.u32 2147483647, %v1632_v32  ;;  %v622_v31 = vld [vmem:[%s3242_s18 + $0xc40] sm:$0xff] }
 0x31d   : > { %v1134_v32 = vld [vmem:[%s3236_s6 + $0xc40] sm:$0xff] }
 0x31e   : > { %v2643_v53 = vadd.f32 %v2642_v48, %v2131_v42  ;;  %v1634_v42 = vsub.f32 %v610_v35, %v1122_v36  ;;  %v2145_v48 = vand.u32 2147483647, %v1633_v37  ;;  %v623_v36 = vld [vmem:[%s3242_s18 + $0xc48] sm:$0xff] }
 0x31f   : > { %v1135_v37 = vld [vmem:[%s3236_s6 + $0xc48] sm:$0xff] }
 0x320   : > { %v2644_v58 = vadd.f32 %v2643_v53, %v2132_v47  ;;  %v1635_v47 = vsub.f32 %v611_v40, %v1123_v41  ;;  %v2146_v53 = vand.u32 2147483647, %v1634_v42  ;;  %v624_v41 = vld [vmem:[%s3242_s18 + $0xc50] sm:$0xff] }
 0x321   : > { %v1136_v42 = vld [vmem:[%s3236_s6 + $0xc50] sm:$0xff] }
 0x322   : > { %v2645_v63 = vadd.f32 %v2644_v58, %v2133_v52  ;;  %v1636_v52 = vsub.f32 %v612_v45, %v1124_v46  ;;  %v2147_v58 = vand.u32 2147483647, %v1635_v47  ;;  %v625_v46 = vld [vmem:[%s3242_s18 + $0xc58] sm:$0xff] }
 0x323   : > { %v1137_v47 = vld [vmem:[%s3236_s6 + $0xc58] sm:$0xff] }
 0x324   : > { %v2646_v4 = vadd.f32 %v2645_v63, %v2134_v57  ;;  %v1637_v57 = vsub.f32 %v613_v50, %v1125_v51  ;;  %v2148_v63 = vand.u32 2147483647, %v1636_v52  ;;  %v626_v51 = vld [vmem:[%s3242_s18 + $0xc60] sm:$0xff] }
 0x325   : > { %v1138_v52 = vld [vmem:[%s3236_s6 + $0xc60] sm:$0xff] }
 0x326   : > { %v2647_v9 = vadd.f32 %v2646_v4, %v2135_v62  ;;  %v1638_v62 = vsub.f32 %v614_v55, %v1126_v56  ;;  %v2149_v4 = vand.u32 2147483647, %v1637_v57  ;;  %v627_v56 = vld [vmem:[%s3242_s18 + $0xc68] sm:$0xff] }
 0x327   : > { %v1139_v57 = vld [vmem:[%s3236_s6 + $0xc68] sm:$0xff] }
 0x328   : > { %v2648_v14 = vadd.f32 %v2647_v9, %v2136_v3  ;;  %v1639_v3 = vsub.f32 %v615_v60, %v1127_v61  ;;  %v2150_v9 = vand.u32 2147483647, %v1638_v62  ;;  %v628_v61 = vld [vmem:[%s3242_s18 + $0xc70] sm:$0xff] }
 0x329   : > { %v1140_v62 = vld [vmem:[%s3236_s6 + $0xc70] sm:$0xff] }
 0x32a   : > { %v2649_v19 = vadd.f32 %v2648_v14, %v2137_v8  ;;  %v1640_v8 = vsub.f32 %v616_v1, %v1128_v2  ;;  %v2151_v14 = vand.u32 2147483647, %v1639_v3  ;;  %v629_v2 = vld [vmem:[%s3242_s18 + $0xc78] sm:$0xff] }
 0x32b   : > { %v1141_v3 = vld [vmem:[%s3236_s6 + $0xc78] sm:$0xff] }
 0x32c   : > { %v2650_v24 = vadd.f32 %v2649_v19, %v2138_v13  ;;  %v1641_v13 = vsub.f32 %v617_v6, %v1129_v7  ;;  %v2152_v19 = vand.u32 2147483647, %v1640_v8  ;;  %v630_v7 = vld [vmem:[%s3242_s18 + $0xc80] sm:$0xff] }
 0x32d   : > { %v1142_v8 = vld [vmem:[%s3236_s6 + $0xc80] sm:$0xff] }
 0x32e   : > { %v2651_v29 = vadd.f32 %v2650_v24, %v2139_v18  ;;  %v1642_v18 = vsub.f32 %v618_v11, %v1130_v12  ;;  %v2153_v24 = vand.u32 2147483647, %v1641_v13  ;;  %v631_v12 = vld [vmem:[%s3242_s18 + $0xc88] sm:$0xff] }
 0x32f   : > { %v1143_v13 = vld [vmem:[%s3236_s6 + $0xc88] sm:$0xff] }
 0x330   : > { %v2652_v34 = vadd.f32 %v2651_v29, %v2140_v23  ;;  %v1643_v23 = vsub.f32 %v619_v16, %v1131_v17  ;;  %v2154_v29 = vand.u32 2147483647, %v1642_v18  ;;  %v632_v17 = vld [vmem:[%s3242_s18 + $0xc90] sm:$0xff] }
 0x331   : > { %v1144_v18 = vld [vmem:[%s3236_s6 + $0xc90] sm:$0xff] }
 0x332   : > { %v2653_v39 = vadd.f32 %v2652_v34, %v2141_v28  ;;  %v1644_v28 = vsub.f32 %v620_v21, %v1132_v22  ;;  %v2155_v34 = vand.u32 2147483647, %v1643_v23  ;;  %v633_v22 = vld [vmem:[%s3242_s18 + $0xc98] sm:$0xff] }
 0x333   : > { %v1145_v23 = vld [vmem:[%s3236_s6 + $0xc98] sm:$0xff] }
 0x334   : > { %v2654_v44 = vadd.f32 %v2653_v39, %v2142_v33  ;;  %v1645_v33 = vsub.f32 %v621_v26, %v1133_v27  ;;  %v2156_v39 = vand.u32 2147483647, %v1644_v28  ;;  %v634_v27 = vld [vmem:[%s3242_s18 + $0xca0] sm:$0xff] }
 0x335   : > { %v1146_v28 = vld [vmem:[%s3236_s6 + $0xca0] sm:$0xff] }
 0x336   : > { %v2655_v49 = vadd.f32 %v2654_v44, %v2143_v38  ;;  %v1646_v38 = vsub.f32 %v622_v31, %v1134_v32  ;;  %v2157_v44 = vand.u32 2147483647, %v1645_v33  ;;  %v635_v32 = vld [vmem:[%s3242_s18 + $0xca8] sm:$0xff] }
 0x337   : > { %v1147_v33 = vld [vmem:[%s3236_s6 + $0xca8] sm:$0xff] }
 0x338   : > { %v2656_v54 = vadd.f32 %v2655_v49, %v2144_v43  ;;  %v1647_v43 = vsub.f32 %v623_v36, %v1135_v37  ;;  %v2158_v49 = vand.u32 2147483647, %v1646_v38  ;;  %v636_v37 = vld [vmem:[%s3242_s18 + $0xcb0] sm:$0xff] }
 0x339   : > { %v1148_v38 = vld [vmem:[%s3236_s6 + $0xcb0] sm:$0xff] }
 0x33a   : > { %v2657_v59 = vadd.f32 %v2656_v54, %v2145_v48  ;;  %v1648_v48 = vsub.f32 %v624_v41, %v1136_v42  ;;  %v2159_v54 = vand.u32 2147483647, %v1647_v43  ;;  %v637_v42 = vld [vmem:[%s3242_s18 + $0xcb8] sm:$0xff] }
 0x33b   : > { %v1149_v43 = vld [vmem:[%s3236_s6 + $0xcb8] sm:$0xff] }
 0x33c   : > { %v2658_v0 = vadd.f32 %v2657_v59, %v2146_v53  ;;  %v1649_v53 = vsub.f32 %v625_v46, %v1137_v47  ;;  %v2160_v59 = vand.u32 2147483647, %v1648_v48  ;;  %v638_v47 = vld [vmem:[%s3242_s18 + $0xcc0] sm:$0xff] }
 0x33d   : > { %v1150_v48 = vld [vmem:[%s3236_s6 + $0xcc0] sm:$0xff] }
 0x33e   : > { %v2659_v5 = vadd.f32 %v2658_v0, %v2147_v58  ;;  %v1650_v58 = vsub.f32 %v626_v51, %v1138_v52  ;;  %v2161_v0 = vand.u32 2147483647, %v1649_v53  ;;  %v639_v52 = vld [vmem:[%s3242_s18 + $0xcc8] sm:$0xff] }
 0x33f   : > { %v1151_v53 = vld [vmem:[%s3236_s6 + $0xcc8] sm:$0xff] }
 0x340   : > { %v2660_v10 = vadd.f32 %v2659_v5, %v2148_v63  ;;  %v1651_v63 = vsub.f32 %v627_v56, %v1139_v57  ;;  %v2162_v5 = vand.u32 2147483647, %v1650_v58  ;;  %v640_v57 = vld [vmem:[%s3242_s18 + $0xcd0] sm:$0xff] }
 0x341   : > { %v1152_v58 = vld [vmem:[%s3236_s6 + $0xcd0] sm:$0xff] }
 0x342   : > { %v2661_v15 = vadd.f32 %v2660_v10, %v2149_v4  ;;  %v1652_v4 = vsub.f32 %v628_v61, %v1140_v62  ;;  %v2163_v10 = vand.u32 2147483647, %v1651_v63  ;;  %v641_v62 = vld [vmem:[%s3242_s18 + $0xcd8] sm:$0xff] }
 0x343   : > { %v1153_v63 = vld [vmem:[%s3236_s6 + $0xcd8] sm:$0xff] }
 0x344   : > { %v2662_v20 = vadd.f32 %v2661_v15, %v2150_v9  ;;  %v1653_v9 = vsub.f32 %v629_v2, %v1141_v3  ;;  %v2164_v15 = vand.u32 2147483647, %v1652_v4  ;;  %v642_v3 = vld [vmem:[%s3242_s18 + $0xce0] sm:$0xff] }
 0x345   : > { %v1154_v4 = vld [vmem:[%s3236_s6 + $0xce0] sm:$0xff] }
 0x346   : > { %v2663_v25 = vadd.f32 %v2662_v20, %v2151_v14  ;;  %v1654_v14 = vsub.f32 %v630_v7, %v1142_v8  ;;  %v2165_v20 = vand.u32 2147483647, %v1653_v9  ;;  %v643_v8 = vld [vmem:[%s3242_s18 + $0xce8] sm:$0xff] }
 0x347   : > { %v1155_v9 = vld [vmem:[%s3236_s6 + $0xce8] sm:$0xff] }
 0x348   : > { %v2664_v30 = vadd.f32 %v2663_v25, %v2152_v19  ;;  %v1655_v19 = vsub.f32 %v631_v12, %v1143_v13  ;;  %v2166_v25 = vand.u32 2147483647, %v1654_v14  ;;  %v644_v13 = vld [vmem:[%s3242_s18 + $0xcf0] sm:$0xff] }
 0x349   : > { %v1156_v14 = vld [vmem:[%s3236_s6 + $0xcf0] sm:$0xff] }
 0x34a   : > { %v2665_v35 = vadd.f32 %v2664_v30, %v2153_v24  ;;  %v1656_v24 = vsub.f32 %v632_v17, %v1144_v18  ;;  %v2167_v30 = vand.u32 2147483647, %v1655_v19  ;;  %v645_v18 = vld [vmem:[%s3242_s18 + $0xcf8] sm:$0xff] }
 0x34b   : > { %v1157_v19 = vld [vmem:[%s3236_s6 + $0xcf8] sm:$0xff] }
 0x34c   : > { %v2666_v40 = vadd.f32 %v2665_v35, %v2154_v29  ;;  %v1657_v29 = vsub.f32 %v633_v22, %v1145_v23  ;;  %v2168_v35 = vand.u32 2147483647, %v1656_v24  ;;  %v646_v23 = vld [vmem:[%s3242_s18 + $0xd00] sm:$0xff] }
 0x34d   : > { %v1158_v24 = vld [vmem:[%s3236_s6 + $0xd00] sm:$0xff] }
 0x34e   : > { %v2667_v45 = vadd.f32 %v2666_v40, %v2155_v34  ;;  %v1658_v34 = vsub.f32 %v634_v27, %v1146_v28  ;;  %v2169_v40 = vand.u32 2147483647, %v1657_v29  ;;  %v647_v28 = vld [vmem:[%s3242_s18 + $0xd08] sm:$0xff] }
 0x34f   : > { %v1159_v29 = vld [vmem:[%s3236_s6 + $0xd08] sm:$0xff] }
 0x350   : > { %v2668_v50 = vadd.f32 %v2667_v45, %v2156_v39  ;;  %v1659_v39 = vsub.f32 %v635_v32, %v1147_v33  ;;  %v2170_v45 = vand.u32 2147483647, %v1658_v34  ;;  %v648_v33 = vld [vmem:[%s3242_s18 + $0xd10] sm:$0xff] }
 0x351   : > { %v1160_v34 = vld [vmem:[%s3236_s6 + $0xd10] sm:$0xff] }
 0x352   : > { %v2669_v55 = vadd.f32 %v2668_v50, %v2157_v44  ;;  %v1660_v44 = vsub.f32 %v636_v37, %v1148_v38  ;;  %v2171_v50 = vand.u32 2147483647, %v1659_v39  ;;  %v649_v38 = vld [vmem:[%s3242_s18 + $0xd18] sm:$0xff] }
 0x353   : > { %v1161_v39 = vld [vmem:[%s3236_s6 + $0xd18] sm:$0xff] }
 0x354   : > { %v2670_v60 = vadd.f32 %v2669_v55, %v2158_v49  ;;  %v1661_v49 = vsub.f32 %v637_v42, %v1149_v43  ;;  %v2172_v55 = vand.u32 2147483647, %v1660_v44  ;;  %v650_v43 = vld [vmem:[%s3242_s18 + $0xd20] sm:$0xff] }
 0x355   : > { %v1162_v44 = vld [vmem:[%s3236_s6 + $0xd20] sm:$0xff] }
 0x356   : > { %v2671_v1 = vadd.f32 %v2670_v60, %v2159_v54  ;;  %v1662_v54 = vsub.f32 %v638_v47, %v1150_v48  ;;  %v2173_v60 = vand.u32 2147483647, %v1661_v49  ;;  %v651_v48 = vld [vmem:[%s3242_s18 + $0xd28] sm:$0xff] }
 0x357   : > { %v1163_v49 = vld [vmem:[%s3236_s6 + $0xd28] sm:$0xff] }
 0x358   : > { %v2672_v6 = vadd.f32 %v2671_v1, %v2160_v59  ;;  %v1663_v59 = vsub.f32 %v639_v52, %v1151_v53  ;;  %v2174_v1 = vand.u32 2147483647, %v1662_v54  ;;  %v652_v53 = vld [vmem:[%s3242_s18 + $0xd30] sm:$0xff] }
 0x359   : > { %v1164_v54 = vld [vmem:[%s3236_s6 + $0xd30] sm:$0xff] }
 0x35a   : > { %v2673_v11 = vadd.f32 %v2672_v6, %v2161_v0  ;;  %v1664_v0 = vsub.f32 %v640_v57, %v1152_v58  ;;  %v2175_v6 = vand.u32 2147483647, %v1663_v59  ;;  %v653_v58 = vld [vmem:[%s3242_s18 + $0xd38] sm:$0xff] }
 0x35b   : > { %v1165_v59 = vld [vmem:[%s3236_s6 + $0xd38] sm:$0xff] }
 0x35c   : > { %v2674_v16 = vadd.f32 %v2673_v11, %v2162_v5  ;;  %v1665_v5 = vsub.f32 %v641_v62, %v1153_v63  ;;  %v2176_v11 = vand.u32 2147483647, %v1664_v0  ;;  %v654_v63 = vld [vmem:[%s3242_s18 + $0xd40] sm:$0xff] }
 0x35d   : > { %v1166_v0 = vld [vmem:[%s3236_s6 + $0xd40] sm:$0xff] }
 0x35e   : > { %v2675_v21 = vadd.f32 %v2674_v16, %v2163_v10  ;;  %v1666_v10 = vsub.f32 %v642_v3, %v1154_v4  ;;  %v2177_v16 = vand.u32 2147483647, %v1665_v5  ;;  %v655_v4 = vld [vmem:[%s3242_s18 + $0xd48] sm:$0xff] }
 0x35f   : > { %v1167_v5 = vld [vmem:[%s3236_s6 + $0xd48] sm:$0xff] }
 0x360   : > { %v2676_v26 = vadd.f32 %v2675_v21, %v2164_v15  ;;  %v1667_v15 = vsub.f32 %v643_v8, %v1155_v9  ;;  %v2178_v21 = vand.u32 2147483647, %v1666_v10  ;;  %v656_v9 = vld [vmem:[%s3242_s18 + $0xd50] sm:$0xff] }
 0x361   : > { %v1168_v10 = vld [vmem:[%s3236_s6 + $0xd50] sm:$0xff] }
 0x362   : > { %v2677_v31 = vadd.f32 %v2676_v26, %v2165_v20  ;;  %v1668_v20 = vsub.f32 %v644_v13, %v1156_v14  ;;  %v2179_v26 = vand.u32 2147483647, %v1667_v15  ;;  %v657_v14 = vld [vmem:[%s3242_s18 + $0xd58] sm:$0xff] }
 0x363   : > { %v1169_v15 = vld [vmem:[%s3236_s6 + $0xd58] sm:$0xff] }
 0x364   : > { %v2678_v36 = vadd.f32 %v2677_v31, %v2166_v25  ;;  %v1669_v25 = vsub.f32 %v645_v18, %v1157_v19  ;;  %v2180_v31 = vand.u32 2147483647, %v1668_v20  ;;  %v658_v19 = vld [vmem:[%s3242_s18 + $0xd60] sm:$0xff] }
 0x365   : > { %v1170_v20 = vld [vmem:[%s3236_s6 + $0xd60] sm:$0xff] }
 0x366   : > { %v2679_v41 = vadd.f32 %v2678_v36, %v2167_v30  ;;  %v1670_v30 = vsub.f32 %v646_v23, %v1158_v24  ;;  %v2181_v36 = vand.u32 2147483647, %v1669_v25  ;;  %v659_v24 = vld [vmem:[%s3242_s18 + $0xd68] sm:$0xff] }
 0x367   : > { %v1171_v25 = vld [vmem:[%s3236_s6 + $0xd68] sm:$0xff] }
 0x368   : > { %v2680_v46 = vadd.f32 %v2679_v41, %v2168_v35  ;;  %v1671_v35 = vsub.f32 %v647_v28, %v1159_v29  ;;  %v2182_v41 = vand.u32 2147483647, %v1670_v30  ;;  %v660_v29 = vld [vmem:[%s3242_s18 + $0xd70] sm:$0xff] }
 0x369   : > { %v1172_v30 = vld [vmem:[%s3236_s6 + $0xd70] sm:$0xff] }
 0x36a   : > { %v2681_v51 = vadd.f32 %v2680_v46, %v2169_v40  ;;  %v1672_v40 = vsub.f32 %v648_v33, %v1160_v34  ;;  %v2183_v46 = vand.u32 2147483647, %v1671_v35  ;;  %v661_v34 = vld [vmem:[%s3242_s18 + $0xd78] sm:$0xff] }
 0x36b   : > { %v1173_v35 = vld [vmem:[%s3236_s6 + $0xd78] sm:$0xff] }
 0x36c   : > { %v2682_v56 = vadd.f32 %v2681_v51, %v2170_v45  ;;  %v1673_v45 = vsub.f32 %v649_v38, %v1161_v39  ;;  %v2184_v51 = vand.u32 2147483647, %v1672_v40  ;;  %v662_v39 = vld [vmem:[%s3242_s18 + $0xd80] sm:$0xff] }
 0x36d   : > { %v1174_v40 = vld [vmem:[%s3236_s6 + $0xd80] sm:$0xff] }
 0x36e   : > { %v2683_v61 = vadd.f32 %v2682_v56, %v2171_v50  ;;  %v1674_v50 = vsub.f32 %v650_v43, %v1162_v44  ;;  %v2185_v56 = vand.u32 2147483647, %v1673_v45  ;;  %v663_v44 = vld [vmem:[%s3242_s18 + $0xd88] sm:$0xff] }
 0x36f   : > { %v1175_v45 = vld [vmem:[%s3236_s6 + $0xd88] sm:$0xff] }
 0x370   : > { %v2684_v2 = vadd.f32 %v2683_v61, %v2172_v55  ;;  %v1675_v55 = vsub.f32 %v651_v48, %v1163_v49  ;;  %v2186_v61 = vand.u32 2147483647, %v1674_v50  ;;  %v664_v49 = vld [vmem:[%s3242_s18 + $0xd90] sm:$0xff] }
 0x371   : > { %v1176_v50 = vld [vmem:[%s3236_s6 + $0xd90] sm:$0xff] }
 0x372   : > { %v2685_v7 = vadd.f32 %v2684_v2, %v2173_v60  ;;  %v1676_v60 = vsub.f32 %v652_v53, %v1164_v54  ;;  %v2187_v2 = vand.u32 2147483647, %v1675_v55  ;;  %v665_v54 = vld [vmem:[%s3242_s18 + $0xd98] sm:$0xff] }
 0x373   : > { %v1177_v55 = vld [vmem:[%s3236_s6 + $0xd98] sm:$0xff] }
 0x374   : > { %v2686_v12 = vadd.f32 %v2685_v7, %v2174_v1  ;;  %v1677_v1 = vsub.f32 %v653_v58, %v1165_v59  ;;  %v2188_v7 = vand.u32 2147483647, %v1676_v60  ;;  %v666_v59 = vld [vmem:[%s3242_s18 + $0xda0] sm:$0xff] }
 0x375   : > { %v1178_v60 = vld [vmem:[%s3236_s6 + $0xda0] sm:$0xff] }
 0x376   : > { %v2687_v17 = vadd.f32 %v2686_v12, %v2175_v6  ;;  %v1678_v6 = vsub.f32 %v654_v63, %v1166_v0  ;;  %v2189_v12 = vand.u32 2147483647, %v1677_v1  ;;  %v667_v0 = vld [vmem:[%s3242_s18 + $0xda8] sm:$0xff] }
 0x377   : > { %v1179_v1 = vld [vmem:[%s3236_s6 + $0xda8] sm:$0xff] }
 0x378   : > { %v2688_v22 = vadd.f32 %v2687_v17, %v2176_v11  ;;  %v1679_v11 = vsub.f32 %v655_v4, %v1167_v5  ;;  %v2190_v17 = vand.u32 2147483647, %v1678_v6  ;;  %v668_v5 = vld [vmem:[%s3242_s18 + $0xdb0] sm:$0xff] }
 0x379   : > { %v1180_v6 = vld [vmem:[%s3236_s6 + $0xdb0] sm:$0xff] }
 0x37a   : > { %v2689_v27 = vadd.f32 %v2688_v22, %v2177_v16  ;;  %v1680_v16 = vsub.f32 %v656_v9, %v1168_v10  ;;  %v2191_v22 = vand.u32 2147483647, %v1679_v11  ;;  %v669_v10 = vld [vmem:[%s3242_s18 + $0xdb8] sm:$0xff] }
 0x37b   : > { %v1181_v11 = vld [vmem:[%s3236_s6 + $0xdb8] sm:$0xff] }
 0x37c   : > { %v2690_v32 = vadd.f32 %v2689_v27, %v2178_v21  ;;  %v1681_v21 = vsub.f32 %v657_v14, %v1169_v15  ;;  %v2192_v27 = vand.u32 2147483647, %v1680_v16  ;;  %v670_v15 = vld [vmem:[%s3242_s18 + $0xdc0] sm:$0xff] }
 0x37d   : > { %v1182_v16 = vld [vmem:[%s3236_s6 + $0xdc0] sm:$0xff] }
 0x37e   : > { %v2691_v37 = vadd.f32 %v2690_v32, %v2179_v26  ;;  %v1682_v26 = vsub.f32 %v658_v19, %v1170_v20  ;;  %v2193_v32 = vand.u32 2147483647, %v1681_v21  ;;  %v671_v20 = vld [vmem:[%s3242_s18 + $0xdc8] sm:$0xff] }
 0x37f   : > { %v1183_v21 = vld [vmem:[%s3236_s6 + $0xdc8] sm:$0xff] }
 0x380   : > { %v2692_v42 = vadd.f32 %v2691_v37, %v2180_v31  ;;  %v1683_v31 = vsub.f32 %v659_v24, %v1171_v25  ;;  %v2194_v37 = vand.u32 2147483647, %v1682_v26  ;;  %v672_v25 = vld [vmem:[%s3242_s18 + $0xdd0] sm:$0xff] }
 0x381   : > { %v1184_v26 = vld [vmem:[%s3236_s6 + $0xdd0] sm:$0xff] }
 0x382   : > { %v2693_v47 = vadd.f32 %v2692_v42, %v2181_v36  ;;  %v1684_v36 = vsub.f32 %v660_v29, %v1172_v30  ;;  %v2195_v42 = vand.u32 2147483647, %v1683_v31  ;;  %v673_v30 = vld [vmem:[%s3242_s18 + $0xdd8] sm:$0xff] }
 0x383   : > { %v1185_v31 = vld [vmem:[%s3236_s6 + $0xdd8] sm:$0xff] }
 0x384   : > { %v2694_v52 = vadd.f32 %v2693_v47, %v2182_v41  ;;  %v1685_v41 = vsub.f32 %v661_v34, %v1173_v35  ;;  %v2196_v47 = vand.u32 2147483647, %v1684_v36  ;;  %v674_v35 = vld [vmem:[%s3242_s18 + $0xde0] sm:$0xff] }
 0x385   : > { %v1186_v36 = vld [vmem:[%s3236_s6 + $0xde0] sm:$0xff] }
 0x386   : > { %v2695_v57 = vadd.f32 %v2694_v52, %v2183_v46  ;;  %v1686_v46 = vsub.f32 %v662_v39, %v1174_v40  ;;  %v2197_v52 = vand.u32 2147483647, %v1685_v41  ;;  %v675_v40 = vld [vmem:[%s3242_s18 + $0xde8] sm:$0xff] }
 0x387   : > { %v1187_v41 = vld [vmem:[%s3236_s6 + $0xde8] sm:$0xff] }
 0x388   : > { %v2696_v62 = vadd.f32 %v2695_v57, %v2184_v51  ;;  %v1687_v51 = vsub.f32 %v663_v44, %v1175_v45  ;;  %v2198_v57 = vand.u32 2147483647, %v1686_v46  ;;  %v676_v45 = vld [vmem:[%s3242_s18 + $0xdf0] sm:$0xff] }
 0x389   : > { %v1188_v46 = vld [vmem:[%s3236_s6 + $0xdf0] sm:$0xff] }
 0x38a   : > { %v2697_v3 = vadd.f32 %v2696_v62, %v2185_v56  ;;  %v1688_v56 = vsub.f32 %v664_v49, %v1176_v50  ;;  %v2199_v62 = vand.u32 2147483647, %v1687_v51  ;;  %v677_v50 = vld [vmem:[%s3242_s18 + $0xdf8] sm:$0xff] }
 0x38b   : > { %v1189_v51 = vld [vmem:[%s3236_s6 + $0xdf8] sm:$0xff] }
 0x38c   : > { %v2698_v8 = vadd.f32 %v2697_v3, %v2186_v61  ;;  %v1689_v61 = vsub.f32 %v665_v54, %v1177_v55  ;;  %v2200_v3 = vand.u32 2147483647, %v1688_v56  ;;  %v678_v55 = vld [vmem:[%s3242_s18 + $0xe00] sm:$0xff] }
 0x38d   : > { %v1190_v56 = vld [vmem:[%s3236_s6 + $0xe00] sm:$0xff] }
 0x38e   : > { %v2699_v13 = vadd.f32 %v2698_v8, %v2187_v2  ;;  %v1690_v2 = vsub.f32 %v666_v59, %v1178_v60  ;;  %v2201_v8 = vand.u32 2147483647, %v1689_v61  ;;  %v679_v60 = vld [vmem:[%s3242_s18 + $0xe08] sm:$0xff] }
 0x38f   : > { %v1191_v61 = vld [vmem:[%s3236_s6 + $0xe08] sm:$0xff] }
 0x390   : > { %v2700_v18 = vadd.f32 %v2699_v13, %v2188_v7  ;;  %v1691_v7 = vsub.f32 %v667_v0, %v1179_v1  ;;  %v2202_v13 = vand.u32 2147483647, %v1690_v2  ;;  %v680_v1 = vld [vmem:[%s3242_s18 + $0xe10] sm:$0xff] }
 0x391   : > { %v1192_v2 = vld [vmem:[%s3236_s6 + $0xe10] sm:$0xff] }
 0x392   : > { %v2701_v23 = vadd.f32 %v2700_v18, %v2189_v12  ;;  %v1692_v12 = vsub.f32 %v668_v5, %v1180_v6  ;;  %v2203_v18 = vand.u32 2147483647, %v1691_v7  ;;  %v681_v6 = vld [vmem:[%s3242_s18 + $0xe18] sm:$0xff] }
 0x393   : > { %v1193_v7 = vld [vmem:[%s3236_s6 + $0xe18] sm:$0xff] }
 0x394   : > { %v2702_v28 = vadd.f32 %v2701_v23, %v2190_v17  ;;  %v1693_v17 = vsub.f32 %v669_v10, %v1181_v11  ;;  %v2204_v23 = vand.u32 2147483647, %v1692_v12  ;;  %v682_v11 = vld [vmem:[%s3242_s18 + $0xe20] sm:$0xff] }
 0x395   : > { %v1194_v12 = vld [vmem:[%s3236_s6 + $0xe20] sm:$0xff] }
 0x396   : > { %v2703_v33 = vadd.f32 %v2702_v28, %v2191_v22  ;;  %v1694_v22 = vsub.f32 %v670_v15, %v1182_v16  ;;  %v2205_v28 = vand.u32 2147483647, %v1693_v17  ;;  %v683_v16 = vld [vmem:[%s3242_s18 + $0xe28] sm:$0xff] }
 0x397   : > { %v1195_v17 = vld [vmem:[%s3236_s6 + $0xe28] sm:$0xff] }
 0x398   : > { %v2704_v38 = vadd.f32 %v2703_v33, %v2192_v27  ;;  %v1695_v27 = vsub.f32 %v671_v20, %v1183_v21  ;;  %v2206_v33 = vand.u32 2147483647, %v1694_v22  ;;  %v684_v21 = vld [vmem:[%s3242_s18 + $0xe30] sm:$0xff] }
 0x399   : > { %v1196_v22 = vld [vmem:[%s3236_s6 + $0xe30] sm:$0xff] }
 0x39a   : > { %v2705_v43 = vadd.f32 %v2704_v38, %v2193_v32  ;;  %v1696_v32 = vsub.f32 %v672_v25, %v1184_v26  ;;  %v2207_v38 = vand.u32 2147483647, %v1695_v27  ;;  %v685_v26 = vld [vmem:[%s3242_s18 + $0xe38] sm:$0xff] }
 0x39b   : > { %v1197_v27 = vld [vmem:[%s3236_s6 + $0xe38] sm:$0xff] }
 0x39c   : > { %v2706_v48 = vadd.f32 %v2705_v43, %v2194_v37  ;;  %v1697_v37 = vsub.f32 %v673_v30, %v1185_v31  ;;  %v2208_v43 = vand.u32 2147483647, %v1696_v32  ;;  %v686_v31 = vld [vmem:[%s3242_s18 + $0xe40] sm:$0xff] }
 0x39d   : > { %v1198_v32 = vld [vmem:[%s3236_s6 + $0xe40] sm:$0xff] }
 0x39e   : > { %v2707_v53 = vadd.f32 %v2706_v48, %v2195_v42  ;;  %v1698_v42 = vsub.f32 %v674_v35, %v1186_v36  ;;  %v2209_v48 = vand.u32 2147483647, %v1697_v37  ;;  %v687_v36 = vld [vmem:[%s3242_s18 + $0xe48] sm:$0xff] }
 0x39f   : > { %v1199_v37 = vld [vmem:[%s3236_s6 + $0xe48] sm:$0xff] }
 0x3a0   : > { %v2708_v58 = vadd.f32 %v2707_v53, %v2196_v47  ;;  %v1699_v47 = vsub.f32 %v675_v40, %v1187_v41  ;;  %v2210_v53 = vand.u32 2147483647, %v1698_v42  ;;  %v688_v41 = vld [vmem:[%s3242_s18 + $0xe50] sm:$0xff] }
 0x3a1   : > { %v1200_v42 = vld [vmem:[%s3236_s6 + $0xe50] sm:$0xff] }
 0x3a2   : > { %v2709_v63 = vadd.f32 %v2708_v58, %v2197_v52  ;;  %v1700_v52 = vsub.f32 %v676_v45, %v1188_v46  ;;  %v2211_v58 = vand.u32 2147483647, %v1699_v47  ;;  %v689_v46 = vld [vmem:[%s3242_s18 + $0xe58] sm:$0xff] }
 0x3a3   : > { %v1201_v47 = vld [vmem:[%s3236_s6 + $0xe58] sm:$0xff] }
 0x3a4   : > { %v2710_v4 = vadd.f32 %v2709_v63, %v2198_v57  ;;  %v1701_v57 = vsub.f32 %v677_v50, %v1189_v51  ;;  %v2212_v63 = vand.u32 2147483647, %v1700_v52  ;;  %v690_v51 = vld [vmem:[%s3242_s18 + $0xe60] sm:$0xff] }
 0x3a5   : > { %v1202_v52 = vld [vmem:[%s3236_s6 + $0xe60] sm:$0xff] }
 0x3a6   : > { %v2711_v9 = vadd.f32 %v2710_v4, %v2199_v62  ;;  %v1702_v62 = vsub.f32 %v678_v55, %v1190_v56  ;;  %v2213_v4 = vand.u32 2147483647, %v1701_v57  ;;  %v691_v56 = vld [vmem:[%s3242_s18 + $0xe68] sm:$0xff] }
 0x3a7   : > { %v1203_v57 = vld [vmem:[%s3236_s6 + $0xe68] sm:$0xff] }
 0x3a8   : > { %v2712_v14 = vadd.f32 %v2711_v9, %v2200_v3  ;;  %v1703_v3 = vsub.f32 %v679_v60, %v1191_v61  ;;  %v2214_v9 = vand.u32 2147483647, %v1702_v62  ;;  %v692_v61 = vld [vmem:[%s3242_s18 + $0xe70] sm:$0xff] }
 0x3a9   : > { %v1204_v62 = vld [vmem:[%s3236_s6 + $0xe70] sm:$0xff] }
 0x3aa   : > { %v2713_v19 = vadd.f32 %v2712_v14, %v2201_v8  ;;  %v1704_v8 = vsub.f32 %v680_v1, %v1192_v2  ;;  %v2215_v14 = vand.u32 2147483647, %v1703_v3  ;;  %v693_v2 = vld [vmem:[%s3242_s18 + $0xe78] sm:$0xff] }
 0x3ab   : > { %v1205_v3 = vld [vmem:[%s3236_s6 + $0xe78] sm:$0xff] }
 0x3ac   : > { %v2714_v24 = vadd.f32 %v2713_v19, %v2202_v13  ;;  %v1705_v13 = vsub.f32 %v681_v6, %v1193_v7  ;;  %v2216_v19 = vand.u32 2147483647, %v1704_v8  ;;  %v694_v7 = vld [vmem:[%s3242_s18 + $0xe80] sm:$0xff] }
 0x3ad   : > { %v1206_v8 = vld [vmem:[%s3236_s6 + $0xe80] sm:$0xff] }
 0x3ae   : > { %v2715_v29 = vadd.f32 %v2714_v24, %v2203_v18  ;;  %v1706_v18 = vsub.f32 %v682_v11, %v1194_v12  ;;  %v2217_v24 = vand.u32 2147483647, %v1705_v13  ;;  %v695_v12 = vld [vmem:[%s3242_s18 + $0xe88] sm:$0xff] }
 0x3af   : > { %v1207_v13 = vld [vmem:[%s3236_s6 + $0xe88] sm:$0xff] }
 0x3b0   : > { %v2716_v34 = vadd.f32 %v2715_v29, %v2204_v23  ;;  %v1707_v23 = vsub.f32 %v683_v16, %v1195_v17  ;;  %v2218_v29 = vand.u32 2147483647, %v1706_v18  ;;  %v696_v17 = vld [vmem:[%s3242_s18 + $0xe90] sm:$0xff] }
 0x3b1   : > { %v1208_v18 = vld [vmem:[%s3236_s6 + $0xe90] sm:$0xff] }
 0x3b2   : > { %v2717_v39 = vadd.f32 %v2716_v34, %v2205_v28  ;;  %v1708_v28 = vsub.f32 %v684_v21, %v1196_v22  ;;  %v2219_v34 = vand.u32 2147483647, %v1707_v23  ;;  %v697_v22 = vld [vmem:[%s3242_s18 + $0xe98] sm:$0xff] }
 0x3b3   : > { %v1209_v23 = vld [vmem:[%s3236_s6 + $0xe98] sm:$0xff] }
 0x3b4   : > { %v2718_v44 = vadd.f32 %v2717_v39, %v2206_v33  ;;  %v1709_v33 = vsub.f32 %v685_v26, %v1197_v27  ;;  %v2220_v39 = vand.u32 2147483647, %v1708_v28  ;;  %v698_v27 = vld [vmem:[%s3242_s18 + $0xea0] sm:$0xff] }
 0x3b5   : > { %v1210_v28 = vld [vmem:[%s3236_s6 + $0xea0] sm:$0xff] }
 0x3b6   : > { %v2719_v49 = vadd.f32 %v2718_v44, %v2207_v38  ;;  %v1710_v38 = vsub.f32 %v686_v31, %v1198_v32  ;;  %v2221_v44 = vand.u32 2147483647, %v1709_v33  ;;  %v699_v32 = vld [vmem:[%s3242_s18 + $0xea8] sm:$0xff] }
 0x3b7   : > { %v1211_v33 = vld [vmem:[%s3236_s6 + $0xea8] sm:$0xff] }
 0x3b8   : > { %v2720_v54 = vadd.f32 %v2719_v49, %v2208_v43  ;;  %v1711_v43 = vsub.f32 %v687_v36, %v1199_v37  ;;  %v2222_v49 = vand.u32 2147483647, %v1710_v38  ;;  %v700_v37 = vld [vmem:[%s3242_s18 + $0xeb0] sm:$0xff] }
 0x3b9   : > { %v1212_v38 = vld [vmem:[%s3236_s6 + $0xeb0] sm:$0xff] }
 0x3ba   : > { %v2721_v59 = vadd.f32 %v2720_v54, %v2209_v48  ;;  %v1712_v48 = vsub.f32 %v688_v41, %v1200_v42  ;;  %v2223_v54 = vand.u32 2147483647, %v1711_v43  ;;  %v701_v42 = vld [vmem:[%s3242_s18 + $0xeb8] sm:$0xff] }
 0x3bb   : > { %v1213_v43 = vld [vmem:[%s3236_s6 + $0xeb8] sm:$0xff] }
 0x3bc   : > { %v2722_v0 = vadd.f32 %v2721_v59, %v2210_v53  ;;  %v1713_v53 = vsub.f32 %v689_v46, %v1201_v47  ;;  %v2224_v59 = vand.u32 2147483647, %v1712_v48  ;;  %v702_v47 = vld [vmem:[%s3242_s18 + $0xec0] sm:$0xff] }
 0x3bd   : > { %v1214_v48 = vld [vmem:[%s3236_s6 + $0xec0] sm:$0xff] }
 0x3be   : > { %v2723_v5 = vadd.f32 %v2722_v0, %v2211_v58  ;;  %v1714_v58 = vsub.f32 %v690_v51, %v1202_v52  ;;  %v2225_v0 = vand.u32 2147483647, %v1713_v53  ;;  %v703_v52 = vld [vmem:[%s3242_s18 + $0xec8] sm:$0xff] }
 0x3bf   : > { %v1215_v53 = vld [vmem:[%s3236_s6 + $0xec8] sm:$0xff] }
 0x3c0   : > { %v2724_v10 = vadd.f32 %v2723_v5, %v2212_v63  ;;  %v1715_v63 = vsub.f32 %v691_v56, %v1203_v57  ;;  %v2226_v5 = vand.u32 2147483647, %v1714_v58  ;;  %v704_v57 = vld [vmem:[%s3242_s18 + $0xed0] sm:$0xff] }
 0x3c1   : > { %v1216_v58 = vld [vmem:[%s3236_s6 + $0xed0] sm:$0xff] }
 0x3c2   : > { %v2725_v15 = vadd.f32 %v2724_v10, %v2213_v4  ;;  %v1716_v4 = vsub.f32 %v692_v61, %v1204_v62  ;;  %v2227_v10 = vand.u32 2147483647, %v1715_v63  ;;  %v705_v62 = vld [vmem:[%s3242_s18 + $0xed8] sm:$0xff] }
 0x3c3   : > { %v1217_v63 = vld [vmem:[%s3236_s6 + $0xed8] sm:$0xff] }
 0x3c4   : > { %v2726_v20 = vadd.f32 %v2725_v15, %v2214_v9  ;;  %v1717_v9 = vsub.f32 %v693_v2, %v1205_v3  ;;  %v2228_v15 = vand.u32 2147483647, %v1716_v4  ;;  %v706_v3 = vld [vmem:[%s3242_s18 + $0xee0] sm:$0xff] }
 0x3c5   : > { %v1218_v4 = vld [vmem:[%s3236_s6 + $0xee0] sm:$0xff] }
 0x3c6   : > { %v2727_v25 = vadd.f32 %v2726_v20, %v2215_v14  ;;  %v1718_v14 = vsub.f32 %v694_v7, %v1206_v8  ;;  %v2229_v20 = vand.u32 2147483647, %v1717_v9  ;;  %v707_v8 = vld [vmem:[%s3242_s18 + $0xee8] sm:$0xff] }
 0x3c7   : > { %v1219_v9 = vld [vmem:[%s3236_s6 + $0xee8] sm:$0xff] }
 0x3c8   : > { %v2728_v30 = vadd.f32 %v2727_v25, %v2216_v19  ;;  %v1719_v19 = vsub.f32 %v695_v12, %v1207_v13  ;;  %v2230_v25 = vand.u32 2147483647, %v1718_v14  ;;  %v708_v13 = vld [vmem:[%s3242_s18 + $0xef0] sm:$0xff] }
 0x3c9   : > { %v1220_v14 = vld [vmem:[%s3236_s6 + $0xef0] sm:$0xff] }
 0x3ca   : > { %v2729_v35 = vadd.f32 %v2728_v30, %v2217_v24  ;;  %v1720_v24 = vsub.f32 %v696_v17, %v1208_v18  ;;  %v2231_v30 = vand.u32 2147483647, %v1719_v19  ;;  %v709_v18 = vld [vmem:[%s3242_s18 + $0xef8] sm:$0xff] }
 0x3cb   : > { %v1221_v19 = vld [vmem:[%s3236_s6 + $0xef8] sm:$0xff] }
 0x3cc   : > { %v2730_v40 = vadd.f32 %v2729_v35, %v2218_v29  ;;  %v1721_v29 = vsub.f32 %v697_v22, %v1209_v23  ;;  %v2232_v35 = vand.u32 2147483647, %v1720_v24  ;;  %v710_v23 = vld [vmem:[%s3242_s18 + $0xf00] sm:$0xff] }
 0x3cd   : > { %v1222_v24 = vld [vmem:[%s3236_s6 + $0xf00] sm:$0xff] }
 0x3ce   : > { %v2731_v45 = vadd.f32 %v2730_v40, %v2219_v34  ;;  %v1722_v34 = vsub.f32 %v698_v27, %v1210_v28  ;;  %v2233_v40 = vand.u32 2147483647, %v1721_v29  ;;  %v711_v28 = vld [vmem:[%s3242_s18 + $0xf08] sm:$0xff] }
 0x3cf   : > { %v1223_v29 = vld [vmem:[%s3236_s6 + $0xf08] sm:$0xff] }
 0x3d0   : > { %v2732_v50 = vadd.f32 %v2731_v45, %v2220_v39  ;;  %v1723_v39 = vsub.f32 %v699_v32, %v1211_v33  ;;  %v2234_v45 = vand.u32 2147483647, %v1722_v34  ;;  %v712_v33 = vld [vmem:[%s3242_s18 + $0xf10] sm:$0xff] }
 0x3d1   : > { %v1224_v34 = vld [vmem:[%s3236_s6 + $0xf10] sm:$0xff] }
 0x3d2   : > { %v2733_v55 = vadd.f32 %v2732_v50, %v2221_v44  ;;  %v1724_v44 = vsub.f32 %v700_v37, %v1212_v38  ;;  %v2235_v50 = vand.u32 2147483647, %v1723_v39  ;;  %v713_v38 = vld [vmem:[%s3242_s18 + $0xf18] sm:$0xff] }
 0x3d3   : > { %v1225_v39 = vld [vmem:[%s3236_s6 + $0xf18] sm:$0xff] }
 0x3d4   : > { %v2734_v60 = vadd.f32 %v2733_v55, %v2222_v49  ;;  %v1725_v49 = vsub.f32 %v701_v42, %v1213_v43  ;;  %v2236_v55 = vand.u32 2147483647, %v1724_v44  ;;  %v714_v43 = vld [vmem:[%s3242_s18 + $0xf20] sm:$0xff] }
 0x3d5   : > { %v1226_v44 = vld [vmem:[%s3236_s6 + $0xf20] sm:$0xff] }
 0x3d6   : > { %v2735_v1 = vadd.f32 %v2734_v60, %v2223_v54  ;;  %v1726_v54 = vsub.f32 %v702_v47, %v1214_v48  ;;  %v2237_v60 = vand.u32 2147483647, %v1725_v49  ;;  %v715_v48 = vld [vmem:[%s3242_s18 + $0xf28] sm:$0xff] }
 0x3d7   : > { %v1227_v49 = vld [vmem:[%s3236_s6 + $0xf28] sm:$0xff] }
 0x3d8   : > { %v2736_v6 = vadd.f32 %v2735_v1, %v2224_v59  ;;  %v1727_v59 = vsub.f32 %v703_v52, %v1215_v53  ;;  %v2238_v1 = vand.u32 2147483647, %v1726_v54  ;;  %v716_v53 = vld [vmem:[%s3242_s18 + $0xf30] sm:$0xff] }
 0x3d9   : > { %v1228_v54 = vld [vmem:[%s3236_s6 + $0xf30] sm:$0xff] }
 0x3da   : > { %v2737_v11 = vadd.f32 %v2736_v6, %v2225_v0  ;;  %v1728_v0 = vsub.f32 %v704_v57, %v1216_v58  ;;  %v2239_v6 = vand.u32 2147483647, %v1727_v59  ;;  %v717_v58 = vld [vmem:[%s3242_s18 + $0xf38] sm:$0xff] }
 0x3db   : > { %v1229_v59 = vld [vmem:[%s3236_s6 + $0xf38] sm:$0xff] }
 0x3dc   : > { %v2738_v16 = vadd.f32 %v2737_v11, %v2226_v5  ;;  %v1729_v5 = vsub.f32 %v705_v62, %v1217_v63  ;;  %v2240_v11 = vand.u32 2147483647, %v1728_v0  ;;  %v718_v63 = vld [vmem:[%s3242_s18 + $0xf40] sm:$0xff] }
 0x3dd   : > { %v1230_v0 = vld [vmem:[%s3236_s6 + $0xf40] sm:$0xff] }
 0x3de   : > { %v2739_v21 = vadd.f32 %v2738_v16, %v2227_v10  ;;  %v1730_v10 = vsub.f32 %v706_v3, %v1218_v4  ;;  %v2241_v16 = vand.u32 2147483647, %v1729_v5  ;;  %v719_v4 = vld [vmem:[%s3242_s18 + $0xf48] sm:$0xff] }
 0x3df   : > { %v1231_v5 = vld [vmem:[%s3236_s6 + $0xf48] sm:$0xff] }
 0x3e0   : > { %v2740_v26 = vadd.f32 %v2739_v21, %v2228_v15  ;;  %v1731_v15 = vsub.f32 %v707_v8, %v1219_v9  ;;  %v2242_v21 = vand.u32 2147483647, %v1730_v10  ;;  %v720_v9 = vld [vmem:[%s3242_s18 + $0xf50] sm:$0xff] }
 0x3e1   : > { %v1232_v10 = vld [vmem:[%s3236_s6 + $0xf50] sm:$0xff] }
 0x3e2   : > { %v2741_v31 = vadd.f32 %v2740_v26, %v2229_v20  ;;  %v1732_v20 = vsub.f32 %v708_v13, %v1220_v14  ;;  %v2243_v26 = vand.u32 2147483647, %v1731_v15  ;;  %v721_v14 = vld [vmem:[%s3242_s18 + $0xf58] sm:$0xff] }
 0x3e3   : > { %v1233_v15 = vld [vmem:[%s3236_s6 + $0xf58] sm:$0xff] }
 0x3e4   : > { %v2742_v36 = vadd.f32 %v2741_v31, %v2230_v25  ;;  %v1733_v25 = vsub.f32 %v709_v18, %v1221_v19  ;;  %v2244_v31 = vand.u32 2147483647, %v1732_v20  ;;  %v722_v19 = vld [vmem:[%s3242_s18 + $0xf60] sm:$0xff] }
 0x3e5   : > { %v1234_v20 = vld [vmem:[%s3236_s6 + $0xf60] sm:$0xff] }
 0x3e6   : > { %v2743_v41 = vadd.f32 %v2742_v36, %v2231_v30  ;;  %v1734_v30 = vsub.f32 %v710_v23, %v1222_v24  ;;  %v2245_v36 = vand.u32 2147483647, %v1733_v25  ;;  %v723_v24 = vld [vmem:[%s3242_s18 + $0xf68] sm:$0xff] }
 0x3e7   : > { %v1235_v25 = vld [vmem:[%s3236_s6 + $0xf68] sm:$0xff] }
 0x3e8   : > { %v2744_v46 = vadd.f32 %v2743_v41, %v2232_v35  ;;  %v1735_v35 = vsub.f32 %v711_v28, %v1223_v29  ;;  %v2246_v41 = vand.u32 2147483647, %v1734_v30  ;;  %v724_v29 = vld [vmem:[%s3242_s18 + $0xf70] sm:$0xff] }
 0x3e9   : > { %v1236_v30 = vld [vmem:[%s3236_s6 + $0xf70] sm:$0xff] }
 0x3ea   : > { %v2745_v51 = vadd.f32 %v2744_v46, %v2233_v40  ;;  %v1736_v40 = vsub.f32 %v712_v33, %v1224_v34  ;;  %v2247_v46 = vand.u32 2147483647, %v1735_v35  ;;  %v725_v34 = vld [vmem:[%s3242_s18 + $0xf78] sm:$0xff] }
 0x3eb   : > { %v1237_v35 = vld [vmem:[%s3236_s6 + $0xf78] sm:$0xff] }
 0x3ec   : > { %v2746_v56 = vadd.f32 %v2745_v51, %v2234_v45  ;;  %v1737_v45 = vsub.f32 %v713_v38, %v1225_v39  ;;  %v2248_v51 = vand.u32 2147483647, %v1736_v40  ;;  %v726_v39 = vld [vmem:[%s3242_s18 + $0xf80] sm:$0xff] }
 0x3ed   : > { %v1238_v40 = vld [vmem:[%s3236_s6 + $0xf80] sm:$0xff] }
 0x3ee   : > { %v2747_v61 = vadd.f32 %v2746_v56, %v2235_v50  ;;  %v1738_v50 = vsub.f32 %v714_v43, %v1226_v44  ;;  %v2249_v56 = vand.u32 2147483647, %v1737_v45  ;;  %v727_v44 = vld [vmem:[%s3242_s18 + $0xf88] sm:$0xff] }
 0x3ef   : > { %v1239_v45 = vld [vmem:[%s3236_s6 + $0xf88] sm:$0xff] }
 0x3f0   : > { %v2748_v2 = vadd.f32 %v2747_v61, %v2236_v55  ;;  %v1739_v55 = vsub.f32 %v715_v48, %v1227_v49  ;;  %v2250_v61 = vand.u32 2147483647, %v1738_v50  ;;  %v728_v49 = vld [vmem:[%s3242_s18 + $0xf90] sm:$0xff] }
 0x3f1   : > { %v1240_v50 = vld [vmem:[%s3236_s6 + $0xf90] sm:$0xff] }
 0x3f2   : > { %v2749_v7 = vadd.f32 %v2748_v2, %v2237_v60  ;;  %v1740_v60 = vsub.f32 %v716_v53, %v1228_v54  ;;  %v2251_v2 = vand.u32 2147483647, %v1739_v55  ;;  %v729_v54 = vld [vmem:[%s3242_s18 + $0xf98] sm:$0xff] }
 0x3f3   : > { %v1241_v55 = vld [vmem:[%s3236_s6 + $0xf98] sm:$0xff] }
 0x3f4   : > { %v2750_v12 = vadd.f32 %v2749_v7, %v2238_v1  ;;  %v1741_v1 = vsub.f32 %v717_v58, %v1229_v59  ;;  %v2252_v7 = vand.u32 2147483647, %v1740_v60  ;;  %v730_v59 = vld [vmem:[%s3242_s18 + $0xfa0] sm:$0xff] }
 0x3f5   : > { %v1242_v60 = vld [vmem:[%s3236_s6 + $0xfa0] sm:$0xff] }
 0x3f6   : > { %v2751_v17 = vadd.f32 %v2750_v12, %v2239_v6  ;;  %v1742_v6 = vsub.f32 %v718_v63, %v1230_v0  ;;  %v2253_v12 = vand.u32 2147483647, %v1741_v1  ;;  %v731_v0 = vld [vmem:[%s3242_s18 + $0xfa8] sm:$0xff] }
 0x3f7   : > { %v1243_v1 = vld [vmem:[%s3236_s6 + $0xfa8] sm:$0xff] }
 0x3f8   : > { %v2752_v22 = vadd.f32 %v2751_v17, %v2240_v11  ;;  %v1743_v11 = vsub.f32 %v719_v4, %v1231_v5  ;;  %v2254_v17 = vand.u32 2147483647, %v1742_v6  ;;  %v732_v5 = vld [vmem:[%s3242_s18 + $0xfb0] sm:$0xff] }
 0x3f9   : > { %v1244_v6 = vld [vmem:[%s3236_s6 + $0xfb0] sm:$0xff] }
 0x3fa   : > { %v2753_v27 = vadd.f32 %v2752_v22, %v2241_v16  ;;  %v1744_v16 = vsub.f32 %v720_v9, %v1232_v10  ;;  %v2255_v22 = vand.u32 2147483647, %v1743_v11  ;;  %v733_v10 = vld [vmem:[%s3242_s18 + $0xfb8] sm:$0xff] }
 0x3fb   : > { %v1245_v11 = vld [vmem:[%s3236_s6 + $0xfb8] sm:$0xff] }
 0x3fc   : > { %v2754_v32 = vadd.f32 %v2753_v27, %v2242_v21  ;;  %v1745_v21 = vsub.f32 %v721_v14, %v1233_v15  ;;  %v2256_v27 = vand.u32 2147483647, %v1744_v16  ;;  %v734_v15 = vld [vmem:[%s3242_s18 + $0xfc0] sm:$0xff] }
 0x3fd   : > { %v1246_v16 = vld [vmem:[%s3236_s6 + $0xfc0] sm:$0xff] }
 0x3fe   : > { %v2755_v37 = vadd.f32 %v2754_v32, %v2243_v26  ;;  %v1746_v26 = vsub.f32 %v722_v19, %v1234_v20  ;;  %v2257_v32 = vand.u32 2147483647, %v1745_v21  ;;  %v735_v20 = vld [vmem:[%s3242_s18 + $0xfc8] sm:$0xff] }
 0x3ff   : > { %v1247_v21 = vld [vmem:[%s3236_s6 + $0xfc8] sm:$0xff] }
 0x400   : > { %v2756_v42 = vadd.f32 %v2755_v37, %v2244_v31  ;;  %v1747_v31 = vsub.f32 %v723_v24, %v1235_v25  ;;  %v2258_v37 = vand.u32 2147483647, %v1746_v26  ;;  %v736_v25 = vld [vmem:[%s3242_s18 + $0xfd0] sm:$0xff] }
 0x401   : > { %v1248_v26 = vld [vmem:[%s3236_s6 + $0xfd0] sm:$0xff] }
 0x402   : > { %v2757_v47 = vadd.f32 %v2756_v42, %v2245_v36  ;;  %v1748_v36 = vsub.f32 %v724_v29, %v1236_v30  ;;  %v2259_v42 = vand.u32 2147483647, %v1747_v31  ;;  %v737_v30 = vld [vmem:[%s3242_s18 + $0xfd8] sm:$0xff] }
 0x403   : > { %v1249_v31 = vld [vmem:[%s3236_s6 + $0xfd8] sm:$0xff] }
 0x404   : > { %v2758_v52 = vadd.f32 %v2757_v47, %v2246_v41  ;;  %v1749_v41 = vsub.f32 %v725_v34, %v1237_v35  ;;  %v2260_v47 = vand.u32 2147483647, %v1748_v36  ;;  %v738_v35 = vld [vmem:[%s3242_s18 + $0xfe0] sm:$0xff] }
 0x405   : > { %v1250_v36 = vld [vmem:[%s3236_s6 + $0xfe0] sm:$0xff] }
 0x406   : > { %v2759_v57 = vadd.f32 %v2758_v52, %v2247_v46  ;;  %v1750_v46 = vsub.f32 %v726_v39, %v1238_v40  ;;  %v2261_v52 = vand.u32 2147483647, %v1749_v41  ;;  %v739_v40 = vld [vmem:[%s3242_s18 + $0xfe8] sm:$0xff] }
 0x407   : > { %v1251_v41 = vld [vmem:[%s3236_s6 + $0xfe8] sm:$0xff] }
 0x408   : > { %v2760_v62 = vadd.f32 %v2759_v57, %v2248_v51  ;;  %v1751_v51 = vsub.f32 %v727_v44, %v1239_v45  ;;  %v2262_v57 = vand.u32 2147483647, %v1750_v46  ;;  %v740_v45 = vld [vmem:[%s3242_s18 + $0xff0] sm:$0xff] }
 0x409   : > { %v1252_v46 = vld [vmem:[%s3236_s6 + $0xff0] sm:$0xff] }
 0x40a   : > { %v2761_v3 = vadd.f32 %v2760_v62, %v2249_v56  ;;  %v1752_v56 = vsub.f32 %v728_v49, %v1240_v50  ;;  %v2263_v62 = vand.u32 2147483647, %v1751_v51  ;;  %v741_v50 = vld [vmem:[%s3242_s18 + $0xff8] sm:$0xff] }
 0x40b   : > { %v1253_v51 = vld [vmem:[%s3236_s6 + $0xff8] sm:$0xff] }
 0x40c   : > { %v2762_v8 = vadd.f32 %v2761_v3, %v2250_v61  ;;  %v1753_v61 = vsub.f32 %v729_v54, %v1241_v55  ;;  %v2264_v3 = vand.u32 2147483647, %v1752_v56  ;;  %v1765_v55 = vsub.f32 %v741_v50, %v1253_v51 }
 0x40e   : > { %v2763_v13 = vadd.f32 %v2762_v8, %v2251_v2  ;;  %v1754_v2 = vsub.f32 %v730_v59, %v1242_v60  ;;  %v2265_v8 = vand.u32 2147483647, %v1753_v61  ;;  %v2277_v60 = vand.u32 2147483647, %v1765_v55 }
 0x410   : > { %v2764_v18 = vadd.f32 %v2763_v13, %v2252_v7  ;;  %v1755_v7 = vsub.f32 %v731_v0, %v1243_v1  ;;  %v2266_v13 = vand.u32 2147483647, %v1754_v2 }
 0x412   : > { %v2765_v23 = vadd.f32 %v2764_v18, %v2253_v12  ;;  %v1756_v12 = vsub.f32 %v732_v5, %v1244_v6  ;;  %v2267_v18 = vand.u32 2147483647, %v1755_v7 }
 0x414   : > { %v2766_v28 = vadd.f32 %v2765_v23, %v2254_v17  ;;  %v1757_v17 = vsub.f32 %v733_v10, %v1245_v11  ;;  %v2268_v23 = vand.u32 2147483647, %v1756_v12 }
 0x416   : > { %v2767_v33 = vadd.f32 %v2766_v28, %v2255_v22  ;;  %v1758_v22 = vsub.f32 %v734_v15, %v1246_v16  ;;  %v2269_v28 = vand.u32 2147483647, %v1757_v17 }
 0x418   : > { %v2768_v38 = vadd.f32 %v2767_v33, %v2256_v27  ;;  %v1759_v27 = vsub.f32 %v735_v20, %v1247_v21  ;;  %v2270_v33 = vand.u32 2147483647, %v1758_v22 }
 0x41a   : > { %v2769_v43 = vadd.f32 %v2768_v38, %v2257_v32  ;;  %v1760_v32 = vsub.f32 %v736_v25, %v1248_v26  ;;  %v2271_v38 = vand.u32 2147483647, %v1759_v27 }
 0x41c   : > { %v2770_v48 = vadd.f32 %v2769_v43, %v2258_v37  ;;  %v1761_v37 = vsub.f32 %v737_v30, %v1249_v31  ;;  %v2272_v43 = vand.u32 2147483647, %v1760_v32 }
 0x41e   : > { %v2771_v53 = vadd.f32 %v2770_v48, %v2259_v42  ;;  %v1762_v42 = vsub.f32 %v738_v35, %v1250_v36  ;;  %v2273_v48 = vand.u32 2147483647, %v1761_v37 }
 0x420   : > { %v2772_v58 = vadd.f32 %v2771_v53, %v2260_v47  ;;  %v1763_v47 = vsub.f32 %v739_v40, %v1251_v41  ;;  %v2274_v53 = vand.u32 2147483647, %v1762_v42 }
 0x422   : > { %v2773_v63 = vadd.f32 %v2772_v58, %v2261_v52  ;;  %v1764_v52 = vsub.f32 %v740_v45, %v1252_v46  ;;  %v2275_v56 = vand.u32 2147483647, %v1763_v47 }
 0x424   : > { %v2774_v4 = vadd.f32 %v2773_v63, %v2262_v57  ;;  %v2276_v58 = vand.u32 2147483647, %v1764_v52  ;;  %v2278_v63 = vld [vmem:[#allocation7] sm:$0xff] }
 0x426   : > { %v2775_v9 = vadd.f32 %v2774_v4, %v2263_v62 }
 0x428   : > { %v2776_v14 = vadd.f32 %v2775_v9, %v2264_v3 }
 0x42a   : > { %v2777_v19 = vadd.f32 %v2776_v14, %v2265_v8 }
 0x42c   : > { %v2778_v24 = vadd.f32 %v2777_v19, %v2266_v13 }
 0x42e   : > { %v2779_v29 = vadd.f32 %v2778_v24, %v2267_v18 }
 0x430   : > { %v2780_v34 = vadd.f32 %v2779_v29, %v2268_v23 }
 0x432   : > { %v2781_v39 = vadd.f32 %v2780_v34, %v2269_v28 }
 0x434   : > { %v2782_v44 = vadd.f32 %v2781_v39, %v2270_v33 }
 0x436   : > { %v2783_v49 = vadd.f32 %v2782_v44, %v2271_v38 }
 0x438   : > { %v2784_v54 = vadd.f32 %v2783_v49, %v2272_v43 }
 0x43a   : > { %v2785_v57 = vadd.f32 %v2784_v54, %v2273_v48 }
 0x43c   : > { %v2786_v59 = vadd.f32 %v2785_v57, %v2274_v53 }
 0x43e   : > { %v2787_v61 = vadd.f32 %v2786_v59, %v2275_v56 }
 0x440   : > { %v2788_v62 = vadd.f32 %v2787_v61, %v2276_v58 }
 0x442   : > { %v2789_v0 = vadd.f32 %v2788_v62, %v2277_v60 }
 0x444   : > { %v2790_v1 = vadd.f32 %v2789_v0, %v2278_v63 }
 0x446   : > { %2791 = vst [vmem:[#allocation7] sm:$0xff] %v2790_v1 }
 0x447   : > { %3047 = shalt.err (!%p3044_p11)
}
 0x448   : > { %2913 = dma.vmem_to_hbm [thread:$0]  (%p4275_p7), %s2802_s20, 128, %s4310_s2, [#allocation4]  }
 0x449   : > { %3091 = dma.done.wait (%p4275_p7), [#allocation4], 128  }
 0x44a   : > { %3093 = vsyncadd (%p4275_p7), [#allocation4], 4294967168 }
 0x44b PF: > { %s19_s14 = sadd.s32 1, %s3116_s14   ;;  %s4316_s9 = smov %s3100_s10 }
 0x44c   : > { %p16_p12 = scmp.ge.s32.totalorder %s19_s14, 4   ;;  %s4317_s10 = smov %s3104_s11 }
 0x44d   : > { %s4318_s11 = smov %s3190_s21  ;;  %s4319_s12 = smov %s3112_s13 }
 0x44e   : > { %s4320_s13 = smov %s4322_s16  ;;  %18 = sbr.rel (!%p16_p12) target bundleno = 7 (0x7), region = 83 }
 0x453   :  { %2814 = vsyncpa [#allocation3], 1 }
 0x454   :  { %2816 = vsyncpa [#allocation3 + $0x1], 1 }
 0x455   :  { %2817 = vsyncpa [#allocation6], 1 }
 0x456   :  { %2819 = vsyncpa [#allocation6 + $0x1], 1 }
 0x457   :  { %2820 = vsyncpa [#allocation4], 1 }
 0x458   :  { %2822 = vsyncpa [#allocation4 + $0x1], 1 }

</bundles_post_ra>
